<compile_context>
chip_gen: v6e
topology: v6e:2x2x1
jax: 0.10.0
libtpu: 0.0.40
codegen_flags: <defaults>
</compile_context>

<pallas_src>
import jax
import jax.numpy as jnp
from jax import lax
from jax.experimental import pallas as pl
from jax.experimental.pallas import tpu as pltpu

# ----------------------------- small synthetic dims --------------------------
C_IN        = 4      # frame channels (stands for RGB=3)
IMG         = 16     # H = W
N_FRAMES    = 4      # video length
CNN_DIM     = 64     # stands for ResNet-50's 2048-d pooled features
HIDDEN      = 32     # LSTM hidden size (stands for 768)
BERT_D      = 32     # BERT hidden size (stands for 768)
BERT_FF     = 4 * BERT_D
HEAD_HIDDEN = 128    # stands for 1024
N_DESCR     = 21
N_NONDESCR  = 4
VOCAB       = 50
MAX_POS     = 16
PATCH_K_RAW = 9 * C_IN    # 36 = real im2col K
PATCH_K     = 128         # zero-padded lane-dense im2col K
OUT_PAD     = 128         # lane-dense output slab width


# ============================== Pallas kernel =================================
def _layer_norm(x, eps=1e-12):
    # TODO(synk): learned LayerNorm gamma/beta omitted (equivalent to gamma=1, beta=0).
    m = jnp.mean(x, axis=-1, keepdims=True)
    v = jnp.mean((x - m) ** 2, axis=-1, keepdims=True)
    return (x - m) * lax.rsqrt(v + eps)


def fused_meta_kernel(
        patches_ref, pool_ref, sel_ref,
        cw_ref, cb_ref, wih_ref, whh_ref, lb_ref, h0_ref, c0_ref,
        x_ref, mask_ref,
        wq_ref, wk_ref, wv_ref, bq_ref, bk_ref, bv_ref,
        wo_ref, bo_ref, w1_ref, b1_ref, w2_ref, b2_ref,
        wp_ref, bp_ref,
        hw1v_ref, hw1p_ref, hb1_ref, hw2_ref, hb2_ref,
        o_ref):
    """Entire BertCNNModel forward for one model; grid axis 0 = model index."""
    # ---- CNN stand-in: 3x3 SAME conv as ONE im2col matmul (K zero-padded to 128) ----
    feat = jnp.dot(patches_ref[...], cw_ref[...],
                   preferred_element_type=jnp.float32)            # (N*HW, CNN_DIM)
    feat = jnp.maximum(feat + cb_ref[...], 0.0)

    # Per-frame global-average-pool as ONE MXU matmul against a constant
    # block-averaging matrix (keeps the GAP off the VPU/XLU reduce path).
    frame_emb = jnp.dot(pool_ref[...], feat,
                        preferred_element_type=jnp.float32)       # (T, CNN_DIM)

    # ---- LSTM (PyTorch i,f,g,o gate order; input projection hoisted; static unroll) ----
    gates_x = jnp.dot(frame_emb.astype(jnp.bfloat16), wih_ref[...],
                      preferred_element_type=jnp.float32) + lb_ref[...]   # (T, 4H)
    whh = whh_ref[...]
    H = h0_ref.shape[1]
    h = h0_ref[...]
    c = c0_ref[...]
    for t in range(gates_x.shape[0]):                             # static unroll
        gates = gates_x[t:t + 1, :] + jnp.dot(
            h.astype(jnp.bfloat16), whh, preferred_element_type=jnp.float32)
        sg = jax.nn.sigmoid(gates)     # one full-vreg EUP sigmoid for i, f, o
        tg = jnp.tanh(gates)           # one full-vreg EUP tanh for g
        i_g = sg[:, 0 * H:1 * H]
        f_g = sg[:, 1 * H:2 * H]
        g_g = tg[:, 2 * H:3 * H]
        o_g = sg[:, 3 * H:4 * H]
        c = f_g * c + i_g * g_g
        h = o_g * jnp.tanh(c)
    video = h                                                     # (1, HIDDEN)

    # ---- BERT encoder (block-diagonal batched attention over all sequences) ----
    # TODO(synk): real BERT-base is 12 layers x 12 heads with pretrained weights;
    # this is a synthetic 1-layer single-head stand-in.
    x = x_ref[...]                                                # (B*S, D) f32
    xb = x.astype(jnp.bfloat16)
    # Separate lane-aligned Q/K/V projections (no 32-lane slices out of a 96-lane
    # QKV block); the 1/sqrt(D) attention scale is folded into wq at init.
    q = jnp.dot(xb, wq_ref[...], preferred_element_type=jnp.float32) + bq_ref[...]
    k = jnp.dot(xb, wk_ref[...], preferred_element_type=jnp.float32) + bk_ref[...]
    v = jnp.dot(xb, wv_ref[...], preferred_element_type=jnp.float32) + bv_ref[...]
    s = lax.dot_general(q.astype(jnp.bfloat16), k.astype(jnp.bfloat16),
                        (((1,), (1,)), ((), ())),
                        preferred_element_type=jnp.float32)       # (B*S, B*S)
    s = s + mask_ref[...]              # block-diagonal + key-padding additive mask
    s = s - jnp.max(s, axis=-1, keepdims=True)
    p = jnp.exp(s)
    p = p * pl.reciprocal(jnp.sum(p, axis=-1, keepdims=True), approx=True)
    ctx = jnp.dot(p.astype(jnp.bfloat16), v.astype(jnp.bfloat16),
                  preferred_element_type=jnp.float32)             # (B*S, D)

    attn = jnp.dot(ctx.astype(jnp.bfloat16), wo_ref[...],
                   preferred_element_type=jnp.float32) + bo_ref[...]
    h1 = _layer_norm(x + attn)
    # TODO(synk): PyTorch BERT uses exact-erf GELU; tanh approximation used here.
    ff = jax.nn.gelu(jnp.dot(h1.astype(jnp.bfloat16), w1_ref[...],
                             preferred_element_type=jnp.float32) + b1_ref[...],
                     approximate=True)
    ff = jnp.dot(ff.astype(jnp.bfloat16), w2_ref[...],
                 preferred_element_type=jnp.float32) + b2_ref[...]
    h2 = _layer_norm(h1 + ff)

    # ---- tanh pooler on CLS rows (row selection via constant matmul, no relayouts) ----
    cls = jnp.dot(sel_ref[...], h2, preferred_element_type=jnp.float32)   # (B, D)
    pooled = jnp.tanh(jnp.dot(cls.astype(jnp.bfloat16), wp_ref[...],
                              preferred_element_type=jnp.float32) + bp_ref[...])

    # ---- task head: Linear(HIDDEN+D -> HEAD_HIDDEN) split into video/pooled halves
    # (equivalent to torch.hstack + one Linear); Dropout == identity at eval; ReLU;
    # final Linear zero-padded to a lane-dense 128-wide slab (sliced in glue). ----
    vh = jnp.dot(video.astype(jnp.bfloat16), hw1v_ref[...],
                 preferred_element_type=jnp.float32)              # (1, HEAD_HIDDEN)
    ph = jnp.dot(pooled.astype(jnp.bfloat16), hw1p_ref[...],
                 preferred_element_type=jnp.float32)              # (B, HEAD_HIDDEN)
    hfeat = jnp.maximum(vh + ph + hb1_ref[...], 0.0)
    y = jnp.dot(hfeat.astype(jnp.bfloat16), hw2_ref[...],
                preferred_element_type=jnp.float32) + hb2_ref[...]     # (B, OUT_PAD)

    m = pl.program_id(0)

    @pl.when(m == 0)
    def _():                        # descriptive head: raw logits
        o_ref[...] = y

    @pl.when(m == 1)
    def _():                        # nondescriptive head: Sigmoid
        o_ref[...] = jax.nn.sigmoid(y)


# ============================== Pallas wrapper ================================
def pallas_meta_fused(patches, pool_mat, cls_sel, per_model):
    """Single fused pallas_call; grid=(2,) over the model index.

    per_model: ordered list of (2, ...) stacked per-model arrays matching the
    kernel signature (conv/LSTM params, embeddings, mask, BERT + head params).
    """
    B = cls_sel.shape[0]
    in_specs = [
        pl.BlockSpec(patches.shape, lambda m: (0, 0)),            # shared
        pl.BlockSpec(pool_mat.shape, lambda m: (0, 0)),           # shared
        pl.BlockSpec(cls_sel.shape, lambda m: (0, 0)),            # shared
    ] + [pl.BlockSpec((None,) + a.shape[1:], lambda m: (m, 0, 0)) for a in per_model]

    return pl.pallas_call(
        fused_meta_kernel,
        out_shape=jax.ShapeDtypeStruct((2, B, OUT_PAD), jnp.float32),
        grid=(2,),
        in_specs=in_specs,
        out_specs=pl.BlockSpec((None, B, OUT_PAD), lambda m: (m, 0, 0)),
        compiler_params=pltpu.CompilerParams(
            # Model index is independent -> shards one model per TensorCore on v7x;
            # measured-neutral on single-TC v5e/v6e (where the win is the single launch).
            # TODO(synk): verify with xprof whether CORE_PARALLEL helps further on v7x.
            dimension_semantics=("parallel",)),
    )(patches, pool_mat, cls_sel, *per_model)


# ============================== model (glue + kernel) =========================
PM_CNN_LSTM = ["conv_w", "conv_b", "lstm_wih", "lstm_whh", "lstm_b", "h0", "c0"]
PM_BERT_HEAD = ["wq", "wk", "wv", "bq", "bk", "bv", "wo", "bo",
                "w1", "b1", "w2", "b2", "wp", "bp",
                "head_w1v", "head_w1p", "head_b1", "head_w2", "head_b2"]


def init_model_params(key, n_classes):
    ks = jax.random.split(key, 24)

    def nrm(k, shape, s=0.02):
        return s * jax.random.normal(k, shape, jnp.float32)

    bf = lambda a: a.astype(jnp.bfloat16)

    # 3x3 conv weights stored in im2col form, zero-padded on K from 36 to 128.
    conv_w = jnp.zeros((PATCH_K, CNN_DIM), jnp.float32)
    conv_w = conv_w.at[:PATCH_K_RAW].set(nrm(ks[0], (PATCH_K_RAW, CNN_DIM)))

    # final head layer zero-padded to a lane-dense 128-wide slab; sliced in glue.
    head_w2 = jnp.zeros((HEAD_HIDDEN, OUT_PAD), jnp.float32)
    head_w2 = head_w2.at[:, :n_classes].set(nrm(ks[14], (HEAD_HIDDEN, n_classes)))

    attn_scale = 1.0 / (BERT_D ** 0.5)   # folded into wq (and bq, which is zero)

    return {
        "n_classes": n_classes,
        "conv_w": bf(conv_w),
        "conv_b": jnp.zeros((1, CNN_DIM), jnp.float32),
        # LSTM (PyTorch gate order i, f, g, o; combined bias b_ih + b_hh)
        "lstm_wih": bf(nrm(ks[1], (CNN_DIM, 4 * HIDDEN))),
        "lstm_whh": bf(nrm(ks[2], (HIDDEN, 4 * HIDDEN))),
        "lstm_b": jnp.zeros((1, 4 * HIDDEN), jnp.float32),
        # h0 / c0 ~ N(0, 0.1) as in the PyTorch module
        "h0": 0.1 * jax.random.normal(ks[3], (1, HIDDEN), jnp.float32),
        "c0": 0.1 * jax.random.normal(ks[4], (1, HIDDEN), jnp.float32),
        # BERT stand-in (embeddings f32; matmul weights bf16)
        "word_emb": nrm(ks[5], (VOCAB, BERT_D)),
        "pos_emb": nrm(ks[6], (MAX_POS, BERT_D)),
        "type_emb": nrm(ks[7], (2, BERT_D)),
        "wq": bf(nrm(ks[8], (BERT_D, BERT_D)) * attn_scale),
        "wk": bf(nrm(ks[9], (BERT_D, BERT_D))),
        "wv": bf(nrm(ks[10], (BERT_D, BERT_D))),
        "bq": jnp.zeros((1, BERT_D), jnp.float32),
        "bk": jnp.zeros((1, BERT_D), jnp.float32),
        "bv": jnp.zeros((1, BERT_D), jnp.float32),
        "wo": bf(nrm(ks[11], (BERT_D, BERT_D))),
        "bo": jnp.zeros((1, BERT_D), jnp.float32),
        "w1": bf(nrm(ks[12], (BERT_D, BERT_FF))),
        "b1": jnp.zeros((1, BERT_FF), jnp.float32),
        "w2": bf(nrm(ks[13], (BERT_FF, BERT_D))),
        "b2": jnp.zeros((1, BERT_D), jnp.float32),
        "wp": bf(nrm(ks[15], (BERT_D, BERT_D))),
        "bp": jnp.zeros((1, BERT_D), jnp.float32),
        # task head: Linear(HIDDEN+BERT_D -> HEAD_HIDDEN) split into video / pooled
        # halves of the weight matrix (equivalent to hstack + one matmul).
        "head_w1v": bf(nrm(ks[16], (HIDDEN, HEAD_HIDDEN))),
        "head_w1p": bf(nrm(ks[17], (BERT_D, HEAD_HIDDEN))),
        "head_b1": jnp.zeros((1, HEAD_HIDDEN), jnp.float32),
        "head_w2": bf(head_w2),
        "head_b2": jnp.zeros((1, OUT_PAD), jnp.float32),
    }


def im2col_patches(frames_nchw):
    """NCHW frames -> (N*H*W, 128) bf16 im2col patches (3x3 SAME, K zero-padded)."""
    frames = jnp.transpose(frames_nchw, (0, 2, 3, 1))              # NCHW -> NHWC
    N, H, W, C = frames.shape
    xp = jnp.pad(frames, ((0, 0), (1, 1), (1, 1), (0, 0)))
    cols = [xp[:, kh:kh + H, kw:kw + W, :] for kh in range(3) for kw in range(3)]
    patches = jnp.concatenate(cols, axis=-1).reshape(N * H * W, 9 * C)
    patches = jnp.pad(patches, ((0, 0), (0, PATCH_K - 9 * C)))     # lane-dense K
    return patches.astype(jnp.bfloat16)


def make_pool_matrix(n_frames, hw):
    """(T, T*HW) constant block-averaging matrix (1/HW on each frame's rows)."""
    rows = jnp.arange(n_frames)[:, None]
    cols = jnp.arange(n_frames * hw)[None, :]
    return jnp.where(cols // hw == rows, 1.0 / hw, 0.0).astype(jnp.float32)


def make_cls_selector(B, S):
    """(B, B*S) constant 0/1 matrix selecting token 0 of every sequence."""
    rows = jnp.arange(B)[:, None]
    cols = jnp.arange(B * S)[None, :]
    return (cols == rows * S).astype(jnp.float32)


def bert_embed(p, tokens):
    """Embeddings (B*S, D) + block-diagonal additive attention mask (B*S, B*S)."""
    ids = tokens["input_ids"].astype(jnp.int32)                    # (B, S)
    mask = tokens["attention_mask"].astype(jnp.float32)            # (B, S)
    tt = tokens["token_type_ids"].astype(jnp.int32)                # (B, S)
    B, S = ids.shape
    emb = p["word_emb"][ids] + p["pos_emb"][:S][None, :, :] + p["type_emb"][tt]
    x2d = emb.astype(jnp.float32).reshape(B * S, BERT_D)
    seq_id = jnp.repeat(jnp.arange(B), S)                          # (B*S,)
    same_seq = seq_id[:, None] == seq_id[None, :]
    key_valid = mask.reshape(B * S) > 0.5
    allowed = jnp.logical_and(same_seq, key_valid[None, :])
    mask_add = jnp.where(allowed, 0.0, -1e9).astype(jnp.float32)   # (B*S, B*S)
    return x2d, mask_add


def meta_forward(meta_params, example):
    ques = example["ques_dict"]
    nondescr_keys = [k for k in ques if k != "descriptive"]
    all_nd = ["predictive", "explanatory", "counterfactual"]
    n_pred, n_expl, n_cf = [
        ques[k]["input_ids"].shape[0] if k in ques else 0 for k in all_nd]
    outer_keys = list(ques["descriptive"].keys())
    max_sizes = {ok: max(ques[k][ok].shape[1] if k in ques else 0 for k in all_nd)
                 for ok in outer_keys}
    nondescr_tokens = {
        ok: jnp.concatenate(
            [jnp.pad(ques[k][ok], ((0, 0), (0, max_sizes[ok] - ques[k][ok].shape[1])))
             for k in nondescr_keys], axis=0)
        for ok in outer_keys}

    pd = meta_params["descriptive"]
    pn = meta_params["nondescriptive"]

    # Pad both models' token batches to a shared (B, S) so one fused kernel handles both.
    d_tok = ques["descriptive"]
    B_d, S_d = d_tok["input_ids"].shape
    B_n, S_n = nondescr_tokens["input_ids"].shape
    B, S = max(B_d, B_n), max(S_d, S_n)

    def pad_tokens(tok):
        def pad(a):
            b, s = a.shape
            return jnp.pad(a, ((0, B - b), (0, S - s)))
        return {k: pad(v) for k, v in tok.items()}

    xd, md = bert_embed(pd, pad_tokens(d_tok))
    xn, mn = bert_embed(pn, pad_tokens(nondescr_tokens))
    x_emb = jnp.stack([xd, xn], axis=0)                            # (2, B*S, D)
    mask_add = jnp.stack([md, mn], axis=0)                         # (2, B*S, B*S)

    patches = im2col_patches(example["frames"])                    # shared
    pool_mat = make_pool_matrix(N_FRAMES, IMG * IMG)               # shared constant
    cls_sel = make_cls_selector(B, S)                              # shared constant

    stk = lambda name: jnp.stack([pd[name], pn[name]], axis=0)
    per_model = ([stk(n) for n in PM_CNN_LSTM]
                 + [x_emb, mask_add]
                 + [stk(n) for n in PM_BERT_HEAD])

    # ONE pallas_call for the whole meta-model forward (both models).
    out = pallas_meta_fused(patches, pool_mat, cls_sel, per_model)   # (2, B, OUT_PAD)

    preds = {"descriptive": out[0, :B_d, :pd["n_classes"]]}
    nondescr_preds = out[1, :B_n, :pn["n_classes"]]
    if n_pred != 0:
        preds["predictive"] = nondescr_preds[:n_pred]
    if n_expl != 0:
        preds["explanatory"] = nondescr_preds[n_pred:n_pred + n_expl]
    if n_cf != 0:
        preds["counterfactual"] = nondescr_preds[n_pred + n_expl:]
    return preds


# ============================== main ==========================================
def make_tokens(key, batch, seq):
    ids = jax.random.randint(key, (batch, seq), 1, VOCAB).astype(jnp.int32)
    return {"input_ids": ids,
            "attention_mask": jnp.ones((batch, seq), jnp.int32),
            "token_type_ids": jnp.zeros((batch, seq), jnp.int32)}


if __name__ == "__main__":
    key = jax.random.PRNGKey(0)
    kf, kd, kp, ke, kc = jax.random.split(key, 5)

    # frames kept in PyTorch NCHW order at the interface: (N, C, H, W)
    frames = jax.random.normal(kf, (N_FRAMES, C_IN, IMG, IMG), jnp.float32)
    example = {
        "frames": frames,
        "ques_dict": {
            "descriptive":    make_tokens(kd, 3, 8),
            "predictive":     make_tokens(kp, 2, 6),
            "explanatory":    make_tokens(ke, 2, 8),
            "counterfactual": make_tokens(kc, 1, 5),
        },
    }

    meta_params = {
        "descriptive":    init_model_params(jax.random.fold_in(key, 1), N_DESCR),
        "nondescriptive": init_model_params(jax.random.fold_in(key, 2), N_NONDESCR),
    }

    preds = meta_forward(meta_params, example)
    for v in preds.values():
        jax.block_until_ready(v)

    assert preds["descriptive"].shape == (3, N_DESCR)
    assert preds["predictive"].shape == (2, N_NONDESCR)
    assert preds["explanatory"].shape == (2, N_NONDESCR)
    assert preds["counterfactual"].shape == (1, N_NONDESCR)
    assert all(jnp.isfinite(v).all() for v in preds.values())

    print("KERNEL_OK")
</pallas_src>

<mosaic_0001>
module attributes {stable_mosaic.version = 11 : i64} {
  func.func @fused_meta_kernel(%arg0: i32, %arg1: memref<1024x128xbf16, #tpu.memory_space<vmem>>, %arg2: memref<4x1024xf32, #tpu.memory_space<vmem>>, %arg3: memref<5x40xf32, #tpu.memory_space<vmem>>, %arg4: memref<1x128x64xbf16, #tpu.memory_space<vmem>>, %arg5: memref<1x1x64xf32, #tpu.memory_space<vmem>>, %arg6: memref<1x64x128xbf16, #tpu.memory_space<vmem>>, %arg7: memref<1x32x128xbf16, #tpu.memory_space<vmem>>, %arg8: memref<1x1x128xf32, #tpu.memory_space<vmem>>, %arg9: memref<1x1x32xf32, #tpu.memory_space<vmem>>, %arg10: memref<1x1x32xf32, #tpu.memory_space<vmem>>, %arg11: memref<1x40x32xf32, #tpu.memory_space<vmem>>, %arg12: memref<1x40x40xf32, #tpu.memory_space<vmem>>, %arg13: memref<1x32x32xbf16, #tpu.memory_space<vmem>>, %arg14: memref<1x32x32xbf16, #tpu.memory_space<vmem>>, %arg15: memref<1x32x32xbf16, #tpu.memory_space<vmem>>, %arg16: memref<1x1x32xf32, #tpu.memory_space<vmem>>, %arg17: memref<1x1x32xf32, #tpu.memory_space<vmem>>, %arg18: memref<1x1x32xf32, #tpu.memory_space<vmem>>, %arg19: memref<1x32x32xbf16, #tpu.memory_space<vmem>>, %arg20: memref<1x1x32xf32, #tpu.memory_space<vmem>>, %arg21: memref<1x32x128xbf16, #tpu.memory_space<vmem>>, %arg22: memref<1x1x128xf32, #tpu.memory_space<vmem>>, %arg23: memref<1x128x32xbf16, #tpu.memory_space<vmem>>, %arg24: memref<1x1x32xf32, #tpu.memory_space<vmem>>, %arg25: memref<1x32x32xbf16, #tpu.memory_space<vmem>>, %arg26: memref<1x1x32xf32, #tpu.memory_space<vmem>>, %arg27: memref<1x32x128xbf16, #tpu.memory_space<vmem>>, %arg28: memref<1x32x128xbf16, #tpu.memory_space<vmem>>, %arg29: memref<1x1x128xf32, #tpu.memory_space<vmem>>, %arg30: memref<1x128x128xbf16, #tpu.memory_space<vmem>>, %arg31: memref<1x1x128xf32, #tpu.memory_space<vmem>>, %arg32: memref<1x5x128xf32, #tpu.memory_space<vmem>>) attributes {dimension_semantics = [#tpu.dimension_semantics<parallel>], iteration_bounds = array<i64: 2>, scalar_prefetch = 0 : i64, scratch_operands = 0 : i64, tpu.core_type = #tpu.core_type<tc>, window_params = [{pipeline_mode = #tpu.pipeline_mode<synchronous>, transform_indices = @transform_0, window_bounds = array<i64: 1024, 128>}, {pipeline_mode = #tpu.pipeline_mode<synchronous>, transform_indices = @transform_1, window_bounds = array<i64: 4, 1024>}, {pipeline_mode = #tpu.pipeline_mode<synchronous>, transform_indices = @transform_2, window_bounds = array<i64: 5, 40>}, {transform_indices = @transform_3, window_bounds = array<i64: 1, 128, 64>}, {transform_indices = @transform_4, window_bounds = array<i64: 1, 1, 64>}, {transform_indices = @transform_5, window_bounds = array<i64: 1, 64, 128>}, {transform_indices = @transform_6, window_bounds = array<i64: 1, 32, 128>}, {transform_indices = @transform_7, window_bounds = array<i64: 1, 1, 128>}, {transform_indices = @transform_8, window_bounds = array<i64: 1, 1, 32>}, {transform_indices = @transform_9, window_bounds = array<i64: 1, 1, 32>}, {transform_indices = @transform_10, window_bounds = array<i64: 1, 40, 32>}, {transform_indices = @transform_11, window_bounds = array<i64: 1, 40, 40>}, {transform_indices = @transform_12, window_bounds = array<i64: 1, 32, 32>}, {transform_indices = @transform_13, window_bounds = array<i64: 1, 32, 32>}, {transform_indices = @transform_14, window_bounds = array<i64: 1, 32, 32>}, {transform_indices = @transform_15, window_bounds = array<i64: 1, 1, 32>}, {transform_indices = @transform_16, window_bounds = array<i64: 1, 1, 32>}, {transform_indices = @transform_17, window_bounds = array<i64: 1, 1, 32>}, {transform_indices = @transform_18, window_bounds = array<i64: 1, 32, 32>}, {transform_indices = @transform_19, window_bounds = array<i64: 1, 1, 32>}, {transform_indices = @transform_20, window_bounds = array<i64: 1, 32, 128>}, {transform_indices = @transform_21, window_bounds = array<i64: 1, 1, 128>}, {transform_indices = @transform_22, window_bounds = array<i64: 1, 128, 32>}, {transform_indices = @transform_23, window_bounds = array<i64: 1, 1, 32>}, {transform_indices = @transform_24, window_bounds = array<i64: 1, 32, 32>}, {transform_indices = @transform_25, window_bounds = array<i64: 1, 1, 32>}, {transform_indices = @transform_26, window_bounds = array<i64: 1, 32, 128>}, {transform_indices = @transform_27, window_bounds = array<i64: 1, 32, 128>}, {transform_indices = @transform_28, window_bounds = array<i64: 1, 1, 128>}, {transform_indices = @transform_29, window_bounds = array<i64: 1, 128, 128>}, {transform_indices = @transform_30, window_bounds = array<i64: 1, 1, 128>}, {transform_indices = @transform_31, window_bounds = array<i64: 1, 5, 128>}]} {
    %c0 = arith.constant 0 : index
    %c0_0 = arith.constant 0 : index
    %0 = vector.load %arg1[%c0, %c0_0] : memref<1024x128xbf16, #tpu.memory_space<vmem>>, vector<1024x128xbf16>
    %c0_1 = arith.constant 0 : index
    %c0_2 = arith.constant 0 : index
    %c0_3 = arith.constant 0 : index
    %1 = vector.load %arg4[%c0_1, %c0_2, %c0_3] : memref<1x128x64xbf16, #tpu.memory_space<vmem>>, vector<1x128x64xbf16>
    %2 = vector.shape_cast %1 : vector<1x128x64xbf16> to vector<128x64xbf16>
    %cst = arith.constant dense<0.000000e+00> : vector<1024x64xf32>
    %3 = tpu.matmul %0, %2, %cst {dimension_numbers = #tpu.dot_dimension_numbers<[1], [0], [0], [1], [0, 0, 1, 1], [], []>} : vector<1024x128xbf16>, vector<128x64xbf16>, vector<1024x64xf32> -> vector<1024x64xf32>
    %c0_4 = arith.constant 0 : index
    %c0_5 = arith.constant 0 : index
    %c0_6 = arith.constant 0 : index
    %4 = vector.load %arg5[%c0_4, %c0_5, %c0_6] : memref<1x1x64xf32, #tpu.memory_space<vmem>>, vector<1x1x64xf32>
    %5 = vector.shape_cast %4 : vector<1x1x64xf32> to vector<1x64xf32>
    %6 = vector.broadcast %5 : vector<1x64xf32> to vector<1024x64xf32>
    %7 = arith.addf %3, %6 : vector<1024x64xf32>
    %cst_7 = arith.constant 0.000000e+00 : f32
    %8 = vector.broadcast %cst_7 : f32 to vector<1024x64xf32>
    %9 = arith.maximumf %7, %8 : vector<1024x64xf32>
    %c0_8 = arith.constant 0 : index
    %c0_9 = arith.constant 0 : index
    %10 = vector.load %arg2[%c0_8, %c0_9] : memref<4x1024xf32, #tpu.memory_space<vmem>>, vector<4x1024xf32>
    %cst_10 = arith.constant dense<0.000000e+00> : vector<4x64xf32>
    %11 = tpu.matmul %10, %9, %cst_10 {dimension_numbers = #tpu.dot_dimension_numbers<[1], [0], [0], [1], [0, 0, 1, 1], [], []>} : vector<4x1024xf32>, vector<1024x64xf32>, vector<4x64xf32> -> vector<4x64xf32>
    %12 = arith.truncf %11 : vector<4x64xf32> to vector<4x64xbf16>
    %c0_11 = arith.constant 0 : index
    %c0_12 = arith.constant 0 : index
    %c0_13 = arith.constant 0 : index
    %13 = vector.load %arg6[%c0_11, %c0_12, %c0_13] : memref<1x64x128xbf16, #tpu.memory_space<vmem>>, vector<1x64x128xbf16>
    %14 = vector.shape_cast %13 : vector<1x64x128xbf16> to vector<64x128xbf16>
    %cst_14 = arith.constant dense<0.000000e+00> : vector<4x128xf32>
    %15 = tpu.matmul %12, %14, %cst_14 {dimension_numbers = #tpu.dot_dimension_numbers<[1], [0], [0], [1], [0, 0, 1, 1], [], []>} : vector<4x64xbf16>, vector<64x128xbf16>, vector<4x128xf32> -> vector<4x128xf32>
    %c0_15 = arith.constant 0 : index
    %c0_16 = arith.constant 0 : index
    %c0_17 = arith.constant 0 : index
    %16 = vector.load %arg8[%c0_15, %c0_16, %c0_17] : memref<1x1x128xf32, #tpu.memory_space<vmem>>, vector<1x1x128xf32>
    %17 = vector.shape_cast %16 : vector<1x1x128xf32> to vector<1x128xf32>
    %18 = vector.broadcast %17 : vector<1x128xf32> to vector<4x128xf32>
    %19 = arith.addf %15, %18 : vector<4x128xf32>
    %c0_18 = arith.constant 0 : index
    %c0_19 = arith.constant 0 : index
    %c0_20 = arith.constant 0 : index
    %20 = vector.load %arg7[%c0_18, %c0_19, %c0_20] : memref<1x32x128xbf16, #tpu.memory_space<vmem>>, vector<1x32x128xbf16>
    %21 = vector.shape_cast %20 : vector<1x32x128xbf16> to vector<32x128xbf16>
    %c0_21 = arith.constant 0 : index
    %c0_22 = arith.constant 0 : index
    %c0_23 = arith.constant 0 : index
    %22 = vector.load %arg9[%c0_21, %c0_22, %c0_23] : memref<1x1x32xf32, #tpu.memory_space<vmem>>, vector<1x1x32xf32>
    %23 = vector.shape_cast %22 : vector<1x1x32xf32> to vector<1x32xf32>
    %c0_24 = arith.constant 0 : index
    %c0_25 = arith.constant 0 : index
    %c0_26 = arith.constant 0 : index
    %24 = vector.load %arg10[%c0_24, %c0_25, %c0_26] : memref<1x1x32xf32, #tpu.memory_space<vmem>>, vector<1x1x32xf32>
    %25 = vector.shape_cast %24 : vector<1x1x32xf32> to vector<1x32xf32>
    %26 = vector.extract_strided_slice %19 {offsets = [0, 0], sizes = [1, 128], strides = [1, 1]} : vector<4x128xf32> to vector<1x128xf32>
    %27 = arith.truncf %23 : vector<1x32xf32> to vector<1x32xbf16>
    %cst_27 = arith.constant dense<0.000000e+00> : vector<1x128xf32>
    %28 = tpu.matmul %27, %21, %cst_27 {dimension_numbers = #tpu.dot_dimension_numbers<[1], [0], [0], [1], [0, 0, 1, 1], [], []>} : vector<1x32xbf16>, vector<32x128xbf16>, vector<1x128xf32> -> vector<1x128xf32>
    %29 = arith.addf %26, %28 : vector<1x128xf32>
    %30 = arith.negf %29 : vector<1x128xf32>
    %31 = math.exp %30 : vector<1x128xf32>
    %cst_28 = arith.constant 1.000000e+00 : f32
    %32 = vector.broadcast %cst_28 : f32 to vector<1x128xf32>
    %33 = arith.addf %32, %31 : vector<1x128xf32>
    %34 = arith.divf %32, %33 : vector<1x128xf32>
    %35 = math.tanh %29 : vector<1x128xf32>
    %36 = vector.extract_strided_slice %34 {offsets = [0, 0], sizes = [1, 32], strides = [1, 1]} : vector<1x128xf32> to vector<1x32xf32>
    %37 = vector.extract_strided_slice %34 {offsets = [0, 32], sizes = [1, 32], strides = [1, 1]} : vector<1x128xf32> to vector<1x32xf32>
    %38 = vector.extract_strided_slice %35 {offsets = [0, 64], sizes = [1, 32], strides = [1, 1]} : vector<1x128xf32> to vector<1x32xf32>
    %39 = vector.extract_strided_slice %34 {offsets = [0, 96], sizes = [1, 32], strides = [1, 1]} : vector<1x128xf32> to vector<1x32xf32>
    %40 = arith.mulf %37, %25 : vector<1x32xf32>
    %41 = arith.mulf %36, %38 : vector<1x32xf32>
    %42 = arith.addf %40, %41 : vector<1x32xf32>
    %43 = math.tanh %42 : vector<1x32xf32>
    %44 = arith.mulf %39, %43 : vector<1x32xf32>
    %45 = vector.extract_strided_slice %19 {offsets = [1, 0], sizes = [1, 128], strides = [1, 1]} : vector<4x128xf32> to vector<1x128xf32>
    %46 = arith.truncf %44 : vector<1x32xf32> to vector<1x32xbf16>
    %cst_29 = arith.constant dense<0.000000e+00> : vector<1x128xf32>
    %47 = tpu.matmul %46, %21, %cst_29 {dimension_numbers = #tpu.dot_dimension_numbers<[1], [0], [0], [1], [0, 0, 1, 1], [], []>} : vector<1x32xbf16>, vector<32x128xbf16>, vector<1x128xf32> -> vector<1x128xf32>
    %48 = arith.addf %45, %47 : vector<1x128xf32>
    %49 = arith.negf %48 : vector<1x128xf32>
    %50 = math.exp %49 : vector<1x128xf32>
    %cst_30 = arith.constant 1.000000e+00 : f32
    %51 = vector.broadcast %cst_30 : f32 to vector<1x128xf32>
    %52 = arith.addf %51, %50 : vector<1x128xf32>
    %53 = arith.divf %51, %52 : vector<1x128xf32>
    %54 = math.tanh %48 : vector<1x128xf32>
    %55 = vector.extract_strided_slice %53 {offsets = [0, 0], sizes = [1, 32], strides = [1, 1]} : vector<1x128xf32> to vector<1x32xf32>
    %56 = vector.extract_strided_slice %53 {offsets = [0, 32], sizes = [1, 32], strides = [1, 1]} : vector<1x128xf32> to vector<1x32xf32>
    %57 = vector.extract_strided_slice %54 {offsets = [0, 64], sizes = [1, 32], strides = [1, 1]} : vector<1x128xf32> to vector<1x32xf32>
    %58 = vector.extract_strided_slice %53 {offsets = [0, 96], sizes = [1, 32], strides = [1, 1]} : vector<1x128xf32> to vector<1x32xf32>
    %59 = arith.mulf %56, %42 : vector<1x32xf32>
    %60 = arith.mulf %55, %57 : vector<1x32xf32>
    %61 = arith.addf %59, %60 : vector<1x32xf32>
    %62 = math.tanh %61 : vector<1x32xf32>
    %63 = arith.mulf %58, %62 : vector<1x32xf32>
    %64 = vector.extract_strided_slice %19 {offsets = [2, 0], sizes = [1, 128], strides = [1, 1]} : vector<4x128xf32> to vector<1x128xf32>
    %65 = arith.truncf %63 : vector<1x32xf32> to vector<1x32xbf16>
    %cst_31 = arith.constant dense<0.000000e+00> : vector<1x128xf32>
    %66 = tpu.matmul %65, %21, %cst_31 {dimension_numbers = #tpu.dot_dimension_numbers<[1], [0], [0], [1], [0, 0, 1, 1], [], []>} : vector<1x32xbf16>, vector<32x128xbf16>, vector<1x128xf32> -> vector<1x128xf32>
    %67 = arith.addf %64, %66 : vector<1x128xf32>
    %68 = arith.negf %67 : vector<1x128xf32>
    %69 = math.exp %68 : vector<1x128xf32>
    %cst_32 = arith.constant 1.000000e+00 : f32
    %70 = vector.broadcast %cst_32 : f32 to vector<1x128xf32>
    %71 = arith.addf %70, %69 : vector<1x128xf32>
    %72 = arith.divf %70, %71 : vector<1x128xf32>
    %73 = math.tanh %67 : vector<1x128xf32>
    %74 = vector.extract_strided_slice %72 {offsets = [0, 0], sizes = [1, 32], strides = [1, 1]} : vector<1x128xf32> to vector<1x32xf32>
    %75 = vector.extract_strided_slice %72 {offsets = [0, 32], sizes = [1, 32], strides = [1, 1]} : vector<1x128xf32> to vector<1x32xf32>
    %76 = vector.extract_strided_slice %73 {offsets = [0, 64], sizes = [1, 32], strides = [1, 1]} : vector<1x128xf32> to vector<1x32xf32>
    %77 = vector.extract_strided_slice %72 {offsets = [0, 96], sizes = [1, 32], strides = [1, 1]} : vector<1x128xf32> to vector<1x32xf32>
    %78 = arith.mulf %75, %61 : vector<1x32xf32>
    %79 = arith.mulf %74, %76 : vector<1x32xf32>
    %80 = arith.addf %78, %79 : vector<1x32xf32>
    %81 = math.tanh %80 : vector<1x32xf32>
    %82 = arith.mulf %77, %81 : vector<1x32xf32>
    %83 = vector.extract_strided_slice %19 {offsets = [3, 0], sizes = [1, 128], strides = [1, 1]} : vector<4x128xf32> to vector<1x128xf32>
    %84 = arith.truncf %82 : vector<1x32xf32> to vector<1x32xbf16>
    %cst_33 = arith.constant dense<0.000000e+00> : vector<1x128xf32>
    %85 = tpu.matmul %84, %21, %cst_33 {dimension_numbers = #tpu.dot_dimension_numbers<[1], [0], [0], [1], [0, 0, 1, 1], [], []>} : vector<1x32xbf16>, vector<32x128xbf16>, vector<1x128xf32> -> vector<1x128xf32>
    %86 = arith.addf %83, %85 : vector<1x128xf32>
    %87 = arith.negf %86 : vector<1x128xf32>
    %88 = math.exp %87 : vector<1x128xf32>
    %cst_34 = arith.constant 1.000000e+00 : f32
    %89 = vector.broadcast %cst_34 : f32 to vector<1x128xf32>
    %90 = arith.addf %89, %88 : vector<1x128xf32>
    %91 = arith.divf %89, %90 : vector<1x128xf32>
    %92 = math.tanh %86 : vector<1x128xf32>
    %93 = vector.extract_strided_slice %91 {offsets = [0, 0], sizes = [1, 32], strides = [1, 1]} : vector<1x128xf32> to vector<1x32xf32>
    %94 = vector.extract_strided_slice %91 {offsets = [0, 32], sizes = [1, 32], strides = [1, 1]} : vector<1x128xf32> to vector<1x32xf32>
    %95 = vector.extract_strided_slice %92 {offsets = [0, 64], sizes = [1, 32], strides = [1, 1]} : vector<1x128xf32> to vector<1x32xf32>
    %96 = vector.extract_strided_slice %91 {offsets = [0, 96], sizes = [1, 32], strides = [1, 1]} : vector<1x128xf32> to vector<1x32xf32>
    %97 = arith.mulf %94, %80 : vector<1x32xf32>
    %98 = arith.mulf %93, %95 : vector<1x32xf32>
    %99 = arith.addf %97, %98 : vector<1x32xf32>
    %100 = math.tanh %99 : vector<1x32xf32>
    %101 = arith.mulf %96, %100 : vector<1x32xf32>
    %c0_35 = arith.constant 0 : index
    %c0_36 = arith.constant 0 : index
    %c0_37 = arith.constant 0 : index
    %102 = vector.load %arg11[%c0_35, %c0_36, %c0_37] : memref<1x40x32xf32, #tpu.memory_space<vmem>>, vector<1x40x32xf32>
    %103 = vector.shape_cast %102 : vector<1x40x32xf32> to vector<40x32xf32>
    %104 = arith.truncf %103 : vector<40x32xf32> to vector<40x32xbf16>
    %c0_38 = arith.constant 0 : index
    %c0_39 = arith.constant 0 : index
    %c0_40 = arith.constant 0 : index
    %105 = vector.load %arg13[%c0_38, %c0_39, %c0_40] : memref<1x32x32xbf16, #tpu.memory_space<vmem>>, vector<1x32x32xbf16>
    %106 = vector.shape_cast %105 : vector<1x32x32xbf16> to vector<32x32xbf16>
    %cst_41 = arith.constant dense<0.000000e+00> : vector<40x32xf32>
    %107 = tpu.matmul %104, %106, %cst_41 {dimension_numbers = #tpu.dot_dimension_numbers<[1], [0], [0], [1], [0, 0, 1, 1], [], []>} : vector<40x32xbf16>, vector<32x32xbf16>, vector<40x32xf32> -> vector<40x32xf32>
    %c0_42 = arith.constant 0 : index
    %c0_43 = arith.constant 0 : index
    %c0_44 = arith.constant 0 : index
    %108 = vector.load %arg16[%c0_42, %c0_43, %c0_44] : memref<1x1x32xf32, #tpu.memory_space<vmem>>, vector<1x1x32xf32>
    %109 = vector.shape_cast %108 : vector<1x1x32xf32> to vector<1x32xf32>
    %110 = vector.broadcast %109 : vector<1x32xf32> to vector<40x32xf32>
    %111 = arith.addf %107, %110 : vector<40x32xf32>
    %c0_45 = arith.constant 0 : index
    %c0_46 = arith.constant 0 : index
    %c0_47 = arith.constant 0 : index
    %112 = vector.load %arg14[%c0_45, %c0_46, %c0_47] : memref<1x32x32xbf16, #tpu.memory_space<vmem>>, vector<1x32x32xbf16>
    %113 = vector.shape_cast %112 : vector<1x32x32xbf16> to vector<32x32xbf16>
    %cst_48 = arith.constant dense<0.000000e+00> : vector<40x32xf32>
    %114 = tpu.matmul %104, %113, %cst_48 {dimension_numbers = #tpu.dot_dimension_numbers<[1], [0], [0], [1], [0, 0, 1, 1], [], []>} : vector<40x32xbf16>, vector<32x32xbf16>, vector<40x32xf32> -> vector<40x32xf32>
    %c0_49 = arith.constant 0 : index
    %c0_50 = arith.constant 0 : index
    %c0_51 = arith.constant 0 : index
    %115 = vector.load %arg17[%c0_49, %c0_50, %c0_51] : memref<1x1x32xf32, #tpu.memory_space<vmem>>, vector<1x1x32xf32>
    %116 = vector.shape_cast %115 : vector<1x1x32xf32> to vector<1x32xf32>
    %117 = vector.broadcast %116 : vector<1x32xf32> to vector<40x32xf32>
    %118 = arith.addf %114, %117 : vector<40x32xf32>
    %c0_52 = arith.constant 0 : index
    %c0_53 = arith.constant 0 : index
    %c0_54 = arith.constant 0 : index
    %119 = vector.load %arg15[%c0_52, %c0_53, %c0_54] : memref<1x32x32xbf16, #tpu.memory_space<vmem>>, vector<1x32x32xbf16>
    %120 = vector.shape_cast %119 : vector<1x32x32xbf16> to vector<32x32xbf16>
    %cst_55 = arith.constant dense<0.000000e+00> : vector<40x32xf32>
    %121 = tpu.matmul %104, %120, %cst_55 {dimension_numbers = #tpu.dot_dimension_numbers<[1], [0], [0], [1], [0, 0, 1, 1], [], []>} : vector<40x32xbf16>, vector<32x32xbf16>, vector<40x32xf32> -> vector<40x32xf32>
    %c0_56 = arith.constant 0 : index
    %c0_57 = arith.constant 0 : index
    %c0_58 = arith.constant 0 : index
    %122 = vector.load %arg18[%c0_56, %c0_57, %c0_58] : memref<1x1x32xf32, #tpu.memory_space<vmem>>, vector<1x1x32xf32>
    %123 = vector.shape_cast %122 : vector<1x1x32xf32> to vector<1x32xf32>
    %124 = vector.broadcast %123 : vector<1x32xf32> to vector<40x32xf32>
    %125 = arith.addf %121, %124 : vector<40x32xf32>
    %126 = arith.truncf %111 : vector<40x32xf32> to vector<40x32xbf16>
    %127 = arith.truncf %118 : vector<40x32xf32> to vector<40x32xbf16>
    %cst_59 = arith.constant dense<0.000000e+00> : vector<40x40xf32>
    %128 = tpu.matmul %126, %127, %cst_59 {dimension_numbers = #tpu.dot_dimension_numbers<[1], [1], [0], [0], [0, 0, 1, 0], [], []>} : vector<40x32xbf16>, vector<40x32xbf16>, vector<40x40xf32> -> vector<40x40xf32>
    %c0_60 = arith.constant 0 : index
    %c0_61 = arith.constant 0 : index
    %c0_62 = arith.constant 0 : index
    %129 = vector.load %arg12[%c0_60, %c0_61, %c0_62] : memref<1x40x40xf32, #tpu.memory_space<vmem>>, vector<1x40x40xf32>
    %130 = vector.shape_cast %129 : vector<1x40x40xf32> to vector<40x40xf32>
    %131 = arith.addf %128, %130 : vector<40x40xf32>
    %cst_63 = arith.constant dense<0xFF800000> : vector<40xf32>
    %132 = vector.multi_reduction <maximumf>, %131, %cst_63 [1] : vector<40x40xf32> to vector<40xf32>
    %133 = vector.shape_cast %132 : vector<40xf32> to vector<40x1xf32>
    %134 = vector.broadcast %133 : vector<40x1xf32> to vector<40x40xf32>
    %135 = arith.subf %131, %134 : vector<40x40xf32>
    %136 = math.exp %135 : vector<40x40xf32>
    %cst_64 = arith.constant dense<0.000000e+00> : vector<40xf32>
    %137 = vector.multi_reduction <add>, %136, %cst_64 [1] : vector<40x40xf32> to vector<40xf32>
    %138 = vector.shape_cast %137 : vector<40xf32> to vector<40x1xf32>
    %139 = tpu.reciprocal %138 {approx = true} : vector<40x1xf32> -> vector<40x1xf32>
    %140 = vector.broadcast %139 : vector<40x1xf32> to vector<40x40xf32>
    %141 = arith.mulf %136, %140 : vector<40x40xf32>
    %142 = arith.truncf %141 : vector<40x40xf32> to vector<40x40xbf16>
    %143 = arith.truncf %125 : vector<40x32xf32> to vector<40x32xbf16>
    %cst_65 = arith.constant dense<0.000000e+00> : vector<40x32xf32>
    %144 = tpu.matmul %142, %143, %cst_65 {dimension_numbers = #tpu.dot_dimension_numbers<[1], [0], [0], [1], [0, 0, 1, 1], [], []>} : vector<40x40xbf16>, vector<40x32xbf16>, vector<40x32xf32> -> vector<40x32xf32>
    %145 = arith.truncf %144 : vector<40x32xf32> to vector<40x32xbf16>
    %c0_66 = arith.constant 0 : index
    %c0_67 = arith.constant 0 : index
    %c0_68 = arith.constant 0 : index
    %146 = vector.load %arg19[%c0_66, %c0_67, %c0_68] : memref<1x32x32xbf16, #tpu.memory_space<vmem>>, vector<1x32x32xbf16>
    %147 = vector.shape_cast %146 : vector<1x32x32xbf16> to vector<32x32xbf16>
    %cst_69 = arith.constant dense<0.000000e+00> : vector<40x32xf32>
    %148 = tpu.matmul %145, %147, %cst_69 {dimension_numbers = #tpu.dot_dimension_numbers<[1], [0], [0], [1], [0, 0, 1, 1], [], []>} : vector<40x32xbf16>, vector<32x32xbf16>, vector<40x32xf32> -> vector<40x32xf32>
    %c0_70 = arith.constant 0 : index
    %c0_71 = arith.constant 0 : index
    %c0_72 = arith.constant 0 : index
    %149 = vector.load %arg20[%c0_70, %c0_71, %c0_72] : memref<1x1x32xf32, #tpu.memory_space<vmem>>, vector<1x1x32xf32>
    %150 = vector.shape_cast %149 : vector<1x1x32xf32> to vector<1x32xf32>
    %151 = vector.broadcast %150 : vector<1x32xf32> to vector<40x32xf32>
    %152 = arith.addf %148, %151 : vector<40x32xf32>
    %153 = arith.addf %103, %152 : vector<40x32xf32>
    %cst_73 = arith.constant dense<0.000000e+00> : vector<40xf32>
    %154 = vector.multi_reduction <add>, %153, %cst_73 [1] : vector<40x32xf32> to vector<40xf32>
    %155 = vector.shape_cast %154 : vector<40xf32> to vector<40x1xf32>
    %cst_74 = arith.constant 3.200000e+01 : f32
    %156 = vector.broadcast %cst_74 : f32 to vector<40x1xf32>
    %157 = arith.divf %155, %156 : vector<40x1xf32>
    %158 = vector.broadcast %157 : vector<40x1xf32> to vector<40x32xf32>
    %159 = arith.subf %153, %158 : vector<40x32xf32>
    %160 = arith.mulf %159, %159 : vector<40x32xf32>
    %cst_75 = arith.constant dense<0.000000e+00> : vector<40xf32>
    %161 = vector.multi_reduction <add>, %160, %cst_75 [1] : vector<40x32xf32> to vector<40xf32>
    %162 = vector.shape_cast %161 : vector<40xf32> to vector<40x1xf32>
    %cst_76 = arith.constant 3.200000e+01 : f32
    %163 = vector.broadcast %cst_76 : f32 to vector<40x1xf32>
    %164 = arith.divf %162, %163 : vector<40x1xf32>
    %165 = vector.broadcast %157 : vector<40x1xf32> to vector<40x32xf32>
    %166 = arith.subf %153, %165 : vector<40x32xf32>
    %cst_77 = arith.constant 9.99999996E-13 : f32
    %167 = vector.broadcast %cst_77 : f32 to vector<40x1xf32>
    %168 = arith.addf %164, %167 : vector<40x1xf32>
    %169 = math.rsqrt %168 : vector<40x1xf32>
    %170 = vector.broadcast %169 : vector<40x1xf32> to vector<40x32xf32>
    %171 = arith.mulf %166, %170 : vector<40x32xf32>
    %172 = arith.truncf %171 : vector<40x32xf32> to vector<40x32xbf16>
    %c0_78 = arith.constant 0 : index
    %c0_79 = arith.constant 0 : index
    %c0_80 = arith.constant 0 : index
    %173 = vector.load %arg21[%c0_78, %c0_79, %c0_80] : memref<1x32x128xbf16, #tpu.memory_space<vmem>>, vector<1x32x128xbf16>
    %174 = vector.shape_cast %173 : vector<1x32x128xbf16> to vector<32x128xbf16>
    %cst_81 = arith.constant dense<0.000000e+00> : vector<40x128xf32>
    %175 = tpu.matmul %172, %174, %cst_81 {dimension_numbers = #tpu.dot_dimension_numbers<[1], [0], [0], [1], [0, 0, 1, 1], [], []>} : vector<40x32xbf16>, vector<32x128xbf16>, vector<40x128xf32> -> vector<40x128xf32>
    %c0_82 = arith.constant 0 : index
    %c0_83 = arith.constant 0 : index
    %c0_84 = arith.constant 0 : index
    %176 = vector.load %arg22[%c0_82, %c0_83, %c0_84] : memref<1x1x128xf32, #tpu.memory_space<vmem>>, vector<1x1x128xf32>
    %177 = vector.shape_cast %176 : vector<1x1x128xf32> to vector<1x128xf32>
    %178 = vector.broadcast %177 : vector<1x128xf32> to vector<40x128xf32>
    %179 = arith.addf %175, %178 : vector<40x128xf32>
    %180 = arith.mulf %179, %179 : vector<40x128xf32>
    %181 = arith.mulf %179, %180 : vector<40x128xf32>
    %cst_85 = arith.constant 4.471500e-02 : f32
    %182 = vector.broadcast %cst_85 : f32 to vector<40x128xf32>
    %183 = arith.mulf %182, %181 : vector<40x128xf32>
    %184 = arith.addf %179, %183 : vector<40x128xf32>
    %cst_86 = arith.constant 0.797884583 : f32
    %185 = vector.broadcast %cst_86 : f32 to vector<40x128xf32>
    %186 = arith.mulf %185, %184 : vector<40x128xf32>
    %187 = math.tanh %186 : vector<40x128xf32>
    %cst_87 = arith.constant 1.000000e+00 : f32
    %188 = vector.broadcast %cst_87 : f32 to vector<40x128xf32>
    %189 = arith.addf %188, %187 : vector<40x128xf32>
    %cst_88 = arith.constant 5.000000e-01 : f32
    %190 = vector.broadcast %cst_88 : f32 to vector<40x128xf32>
    %191 = arith.mulf %190, %189 : vector<40x128xf32>
    %192 = arith.mulf %179, %191 : vector<40x128xf32>
    %193 = arith.truncf %192 : vector<40x128xf32> to vector<40x128xbf16>
    %c0_89 = arith.constant 0 : index
    %c0_90 = arith.constant 0 : index
    %c0_91 = arith.constant 0 : index
    %194 = vector.load %arg23[%c0_89, %c0_90, %c0_91] : memref<1x128x32xbf16, #tpu.memory_space<vmem>>, vector<1x128x32xbf16>
    %195 = vector.shape_cast %194 : vector<1x128x32xbf16> to vector<128x32xbf16>
    %cst_92 = arith.constant dense<0.000000e+00> : vector<40x32xf32>
    %196 = tpu.matmul %193, %195, %cst_92 {dimension_numbers = #tpu.dot_dimension_numbers<[1], [0], [0], [1], [0, 0, 1, 1], [], []>} : vector<40x128xbf16>, vector<128x32xbf16>, vector<40x32xf32> -> vector<40x32xf32>
    %c0_93 = arith.constant 0 : index
    %c0_94 = arith.constant 0 : index
    %c0_95 = arith.constant 0 : index
    %197 = vector.load %arg24[%c0_93, %c0_94, %c0_95] : memref<1x1x32xf32, #tpu.memory_space<vmem>>, vector<1x1x32xf32>
    %198 = vector.shape_cast %197 : vector<1x1x32xf32> to vector<1x32xf32>
    %199 = vector.broadcast %198 : vector<1x32xf32> to vector<40x32xf32>
    %200 = arith.addf %196, %199 : vector<40x32xf32>
    %201 = arith.addf %171, %200 : vector<40x32xf32>
    %cst_96 = arith.constant dense<0.000000e+00> : vector<40xf32>
    %202 = vector.multi_reduction <add>, %201, %cst_96 [1] : vector<40x32xf32> to vector<40xf32>
    %203 = vector.shape_cast %202 : vector<40xf32> to vector<40x1xf32>
    %cst_97 = arith.constant 3.200000e+01 : f32
    %204 = vector.broadcast %cst_97 : f32 to vector<40x1xf32>
    %205 = arith.divf %203, %204 : vector<40x1xf32>
    %206 = vector.broadcast %205 : vector<40x1xf32> to vector<40x32xf32>
    %207 = arith.subf %201, %206 : vector<40x32xf32>
    %208 = arith.mulf %207, %207 : vector<40x32xf32>
    %cst_98 = arith.constant dense<0.000000e+00> : vector<40xf32>
    %209 = vector.multi_reduction <add>, %208, %cst_98 [1] : vector<40x32xf32> to vector<40xf32>
    %210 = vector.shape_cast %209 : vector<40xf32> to vector<40x1xf32>
    %cst_99 = arith.constant 3.200000e+01 : f32
    %211 = vector.broadcast %cst_99 : f32 to vector<40x1xf32>
    %212 = arith.divf %210, %211 : vector<40x1xf32>
    %213 = vector.broadcast %205 : vector<40x1xf32> to vector<40x32xf32>
    %214 = arith.subf %201, %213 : vector<40x32xf32>
    %cst_100 = arith.constant 9.99999996E-13 : f32
    %215 = vector.broadcast %cst_100 : f32 to vector<40x1xf32>
    %216 = arith.addf %212, %215 : vector<40x1xf32>
    %217 = math.rsqrt %216 : vector<40x1xf32>
    %218 = vector.broadcast %217 : vector<40x1xf32> to vector<40x32xf32>
    %219 = arith.mulf %214, %218 : vector<40x32xf32>
    %c0_101 = arith.constant 0 : index
    %c0_102 = arith.constant 0 : index
    %220 = vector.load %arg3[%c0_101, %c0_102] : memref<5x40xf32, #tpu.memory_space<vmem>>, vector<5x40xf32>
    %cst_103 = arith.constant dense<0.000000e+00> : vector<5x32xf32>
    %221 = tpu.matmul %220, %219, %cst_103 {dimension_numbers = #tpu.dot_dimension_numbers<[1], [0], [0], [1], [0, 0, 1, 1], [], []>} : vector<5x40xf32>, vector<40x32xf32>, vector<5x32xf32> -> vector<5x32xf32>
    %222 = arith.truncf %221 : vector<5x32xf32> to vector<5x32xbf16>
    %c0_104 = arith.constant 0 : index
    %c0_105 = arith.constant 0 : index
    %c0_106 = arith.constant 0 : index
    %223 = vector.load %arg25[%c0_104, %c0_105, %c0_106] : memref<1x32x32xbf16, #tpu.memory_space<vmem>>, vector<1x32x32xbf16>
    %224 = vector.shape_cast %223 : vector<1x32x32xbf16> to vector<32x32xbf16>
    %cst_107 = arith.constant dense<0.000000e+00> : vector<5x32xf32>
    %225 = tpu.matmul %222, %224, %cst_107 {dimension_numbers = #tpu.dot_dimension_numbers<[1], [0], [0], [1], [0, 0, 1, 1], [], []>} : vector<5x32xbf16>, vector<32x32xbf16>, vector<5x32xf32> -> vector<5x32xf32>
    %c0_108 = arith.constant 0 : index
    %c0_109 = arith.constant 0 : index
    %c0_110 = arith.constant 0 : index
    %226 = vector.load %arg26[%c0_108, %c0_109, %c0_110] : memref<1x1x32xf32, #tpu.memory_space<vmem>>, vector<1x1x32xf32>
    %227 = vector.shape_cast %226 : vector<1x1x32xf32> to vector<1x32xf32>
    %228 = vector.broadcast %227 : vector<1x32xf32> to vector<5x32xf32>
    %229 = arith.addf %225, %228 : vector<5x32xf32>
    %230 = math.tanh %229 : vector<5x32xf32>
    %231 = arith.truncf %101 : vector<1x32xf32> to vector<1x32xbf16>
    %c0_111 = arith.constant 0 : index
    %c0_112 = arith.constant 0 : index
    %c0_113 = arith.constant 0 : index
    %232 = vector.load %arg27[%c0_111, %c0_112, %c0_113] : memref<1x32x128xbf16, #tpu.memory_space<vmem>>, vector<1x32x128xbf16>
    %233 = vector.shape_cast %232 : vector<1x32x128xbf16> to vector<32x128xbf16>
    %cst_114 = arith.constant dense<0.000000e+00> : vector<1x128xf32>
    %234 = tpu.matmul %231, %233, %cst_114 {dimension_numbers = #tpu.dot_dimension_numbers<[1], [0], [0], [1], [0, 0, 1, 1], [], []>} : vector<1x32xbf16>, vector<32x128xbf16>, vector<1x128xf32> -> vector<1x128xf32>
    %235 = arith.truncf %230 : vector<5x32xf32> to vector<5x32xbf16>
    %c0_115 = arith.constant 0 : index
    %c0_116 = arith.constant 0 : index
    %c0_117 = arith.constant 0 : index
    %236 = vector.load %arg28[%c0_115, %c0_116, %c0_117] : memref<1x32x128xbf16, #tpu.memory_space<vmem>>, vector<1x32x128xbf16>
    %237 = vector.shape_cast %236 : vector<1x32x128xbf16> to vector<32x128xbf16>
    %cst_118 = arith.constant dense<0.000000e+00> : vector<5x128xf32>
    %238 = tpu.matmul %235, %237, %cst_118 {dimension_numbers = #tpu.dot_dimension_numbers<[1], [0], [0], [1], [0, 0, 1, 1], [], []>} : vector<5x32xbf16>, vector<32x128xbf16>, vector<5x128xf32> -> vector<5x128xf32>
    %239 = vector.broadcast %234 : vector<1x128xf32> to vector<5x128xf32>
    %240 = arith.addf %239, %238 : vector<5x128xf32>
    %c0_119 = arith.constant 0 : index
    %c0_120 = arith.constant 0 : index
    %c0_121 = arith.constant 0 : index
    %241 = vector.load %arg29[%c0_119, %c0_120, %c0_121] : memref<1x1x128xf32, #tpu.memory_space<vmem>>, vector<1x1x128xf32>
    %242 = vector.shape_cast %241 : vector<1x1x128xf32> to vector<1x128xf32>
    %243 = vector.broadcast %242 : vector<1x128xf32> to vector<5x128xf32>
    %244 = arith.addf %240, %243 : vector<5x128xf32>
    %cst_122 = arith.constant 0.000000e+00 : f32
    %245 = vector.broadcast %cst_122 : f32 to vector<5x128xf32>
    %246 = arith.maximumf %244, %245 : vector<5x128xf32>
    %247 = arith.truncf %246 : vector<5x128xf32> to vector<5x128xbf16>
    %c0_123 = arith.constant 0 : index
    %c0_124 = arith.constant 0 : index
    %c0_125 = arith.constant 0 : index
    %248 = vector.load %arg30[%c0_123, %c0_124, %c0_125] : memref<1x128x128xbf16, #tpu.memory_space<vmem>>, vector<1x128x128xbf16>
    %249 = vector.shape_cast %248 : vector<1x128x128xbf16> to vector<128x128xbf16>
    %cst_126 = arith.constant dense<0.000000e+00> : vector<5x128xf32>
    %250 = tpu.matmul %247, %249, %cst_126 {dimension_numbers = #tpu.dot_dimension_numbers<[1], [0], [0], [1], [0, 0, 1, 1], [], []>} : vector<5x128xbf16>, vector<128x128xbf16>, vector<5x128xf32> -> vector<5x128xf32>
    %c0_127 = arith.constant 0 : index
    %c0_128 = arith.constant 0 : index
    %c0_129 = arith.constant 0 : index
    %251 = vector.load %arg31[%c0_127, %c0_128, %c0_129] : memref<1x1x128xf32, #tpu.memory_space<vmem>>, vector<1x1x128xf32>
    %252 = vector.shape_cast %251 : vector<1x1x128xf32> to vector<1x128xf32>
    %253 = vector.broadcast %252 : vector<1x128xf32> to vector<5x128xf32>
    %254 = arith.addf %250, %253 : vector<5x128xf32>
    %c0_i32 = arith.constant 0 : i32
    %255 = arith.cmpi eq, %arg0, %c0_i32 : i32
    %256 = arith.extui %255 : i1 to i32
    %c0_i32_130 = arith.constant 0 : i32
    %257 = arith.cmpi ne, %256, %c0_i32_130 : i32
    scf.if %257 {
      %c0_132 = arith.constant 0 : index
      %c0_133 = arith.constant 0 : index
      %c0_134 = arith.constant 0 : index
      %261 = vector.load %arg32[%c0_132, %c0_133, %c0_134] : memref<1x5x128xf32, #tpu.memory_space<vmem>>, vector<1x5x128xf32>
      %262 = vector.shape_cast %261 : vector<1x5x128xf32> to vector<5x128xf32>
      %263 = vector.shape_cast %254 : vector<5x128xf32> to vector<1x5x128xf32>
      tpu.vector_store %arg32[%c0_132, %c0_133, %c0_134], %263 {strides = array<i32>} : memref<1x5x128xf32, #tpu.memory_space<vmem>>, vector<1x5x128xf32>,
    } else {
    }
    %c1_i32 = arith.constant 1 : i32
    %258 = arith.cmpi eq, %arg0, %c1_i32 : i32
    %259 = arith.extui %258 : i1 to i32
    %c0_i32_131 = arith.constant 0 : i32
    %260 = arith.cmpi ne, %259, %c0_i32_131 : i32
    scf.if %260 {
      %261 = arith.negf %254 : vector<5x128xf32>
      %262 = math.exp %261 : vector<5x128xf32>
      %cst_132 = arith.constant 1.000000e+00 : f32
      %263 = vector.broadcast %cst_132 : f32 to vector<5x128xf32>
      %264 = arith.addf %263, %262 : vector<5x128xf32>
      %265 = arith.divf %263, %264 : vector<5x128xf32>
      %c0_133 = arith.constant 0 : index
      %c0_134 = arith.constant 0 : index
      %c0_135 = arith.constant 0 : index
      %266 = vector.load %arg32[%c0_133, %c0_134, %c0_135] : memref<1x5x128xf32, #tpu.memory_space<vmem>>, vector<1x5x128xf32>
      %267 = vector.shape_cast %266 : vector<1x5x128xf32> to vector<5x128xf32>
      %268 = vector.shape_cast %265 : vector<5x128xf32> to vector<1x5x128xf32>
      tpu.vector_store %arg32[%c0_133, %c0_134, %c0_135], %268 {strides = array<i32>} : memref<1x5x128xf32, #tpu.memory_space<vmem>>, vector<1x5x128xf32>,
    } else {
    }
    return
  }
  func.func @transform_0(%arg0: i32) -> (i32, i32) {
    %c0_i32 = arith.constant 0 : i32
    %c0_i32_0 = arith.constant 0 : i32
    %c0_i32_1 = arith.constant 0 : i32
    return %c0_i32, %c0_i32_0 : i32, i32
  }
  func.func @transform_1(%arg0: i32) -> (i32, i32) {
    %c0_i32 = arith.constant 0 : i32
    %c0_i32_0 = arith.constant 0 : i32
    %c0_i32_1 = arith.constant 0 : i32
    return %c0_i32, %c0_i32_0 : i32, i32
  }
  func.func @transform_2(%arg0: i32) -> (i32, i32) {
    %c0_i32 = arith.constant 0 : i32
    %c0_i32_0 = arith.constant 0 : i32
    %c0_i32_1 = arith.constant 0 : i32
    return %c0_i32, %c0_i32_0 : i32, i32
  }
  func.func @transform_3(%arg0: i32) -> (i32, i32, i32) {
    %c0_i32 = arith.constant 0 : i32
    %c0_i32_0 = arith.constant 0 : i32
    %c0_i32_1 = arith.constant 0 : i32
    return %arg0, %c0_i32, %c0_i32_0 : i32, i32, i32
  }
  func.func @transform_4(%arg0: i32) -> (i32, i32, i32) {
    %c0_i32 = arith.constant 0 : i32
    %c0_i32_0 = arith.constant 0 : i32
    %c0_i32_1 = arith.constant 0 : i32
    return %arg0, %c0_i32, %c0_i32_0 : i32, i32, i32
  }
  func.func @transform_5(%arg0: i32) -> (i32, i32, i32) {
    %c0_i32 = arith.constant 0 : i32
    %c0_i32_0 = arith.constant 0 : i32
    %c0_i32_1 = arith.constant 0 : i32
    return %arg0, %c0_i32, %c0_i32_0 : i32, i32, i32
  }
  func.func @transform_6(%arg0: i32) -> (i32, i32, i32) {
    %c0_i32 = arith.constant 0 : i32
    %c0_i32_0 = arith.constant 0 : i32
    %c0_i32_1 = arith.constant 0 : i32
    return %arg0, %c0_i32, %c0_i32_0 : i32, i32, i32
  }
  func.func @transform_7(%arg0: i32) -> (i32, i32, i32) {
    %c0_i32 = arith.constant 0 : i32
    %c0_i32_0 = arith.constant 0 : i32
    %c0_i32_1 = arith.constant 0 : i32
    return %arg0, %c0_i32, %c0_i32_0 : i32, i32, i32
  }
  func.func @transform_8(%arg0: i32) -> (i32, i32, i32) {
    %c0_i32 = arith.constant 0 : i32
    %c0_i32_0 = arith.constant 0 : i32
    %c0_i32_1 = arith.constant 0 : i32
    return %arg0, %c0_i32, %c0_i32_0 : i32, i32, i32
  }
  func.func @transform_9(%arg0: i32) -> (i32, i32, i32) {
    %c0_i32 = arith.constant 0 : i32
    %c0_i32_0 = arith.constant 0 : i32
    %c0_i32_1 = arith.constant 0 : i32
    return %arg0, %c0_i32, %c0_i32_0 : i32, i32, i32
  }
  func.func @transform_10(%arg0: i32) -> (i32, i32, i32) {
    %c0_i32 = arith.constant 0 : i32
    %c0_i32_0 = arith.constant 0 : i32
    %c0_i32_1 = arith.constant 0 : i32
    return %arg0, %c0_i32, %c0_i32_0 : i32, i32, i32
  }
  func.func @transform_11(%arg0: i32) -> (i32, i32, i32) {
    %c0_i32 = arith.constant 0 : i32
    %c0_i32_0 = arith.constant 0 : i32
    %c0_i32_1 = arith.constant 0 : i32
    return %arg0, %c0_i32, %c0_i32_0 : i32, i32, i32
  }
  func.func @transform_12(%arg0: i32) -> (i32, i32, i32) {
    %c0_i32 = arith.constant 0 : i32
    %c0_i32_0 = arith.constant 0 : i32
    %c0_i32_1 = arith.constant 0 : i32
    return %arg0, %c0_i32, %c0_i32_0 : i32, i32, i32
  }
  func.func @transform_13(%arg0: i32) -> (i32, i32, i32) {
    %c0_i32 = arith.constant 0 : i32
    %c0_i32_0 = arith.constant 0 : i32
    %c0_i32_1 = arith.constant 0 : i32
    return %arg0, %c0_i32, %c0_i32_0 : i32, i32, i32
  }
  func.func @transform_14(%arg0: i32) -> (i32, i32, i32) {
    %c0_i32 = arith.constant 0 : i32
    %c0_i32_0 = arith.constant 0 : i32
    %c0_i32_1 = arith.constant 0 : i32
    return %arg0, %c0_i32, %c0_i32_0 : i32, i32, i32
  }
  func.func @transform_15(%arg0: i32) -> (i32, i32, i32) {
    %c0_i32 = arith.constant 0 : i32
    %c0_i32_0 = arith.constant 0 : i32
    %c0_i32_1 = arith.constant 0 : i32
    return %arg0, %c0_i32, %c0_i32_0 : i32, i32, i32
  }
  func.func @transform_16(%arg0: i32) -> (i32, i32, i32) {
    %c0_i32 = arith.constant 0 : i32
    %c0_i32_0 = arith.constant 0 : i32
    %c0_i32_1 = arith.constant 0 : i32
    return %arg0, %c0_i32, %c0_i32_0 : i32, i32, i32
  }
  func.func @transform_17(%arg0: i32) -> (i32, i32, i32) {
    %c0_i32 = arith.constant 0 : i32
    %c0_i32_0 = arith.constant 0 : i32
    %c0_i32_1 = arith.constant 0 : i32
    return %arg0, %c0_i32, %c0_i32_0 : i32, i32, i32
  }
  func.func @transform_18(%arg0: i32) -> (i32, i32, i32) {
    %c0_i32 = arith.constant 0 : i32
    %c0_i32_0 = arith.constant 0 : i32
    %c0_i32_1 = arith.constant 0 : i32
    return %arg0, %c0_i32, %c0_i32_0 : i32, i32, i32
  }
  func.func @transform_19(%arg0: i32) -> (i32, i32, i32) {
    %c0_i32 = arith.constant 0 : i32
    %c0_i32_0 = arith.constant 0 : i32
    %c0_i32_1 = arith.constant 0 : i32
    return %arg0, %c0_i32, %c0_i32_0 : i32, i32, i32
  }
  func.func @transform_20(%arg0: i32) -> (i32, i32, i32) {
    %c0_i32 = arith.constant 0 : i32
    %c0_i32_0 = arith.constant 0 : i32
    %c0_i32_1 = arith.constant 0 : i32
    return %arg0, %c0_i32, %c0_i32_0 : i32, i32, i32
  }
  func.func @transform_21(%arg0: i32) -> (i32, i32, i32) {
    %c0_i32 = arith.constant 0 : i32
    %c0_i32_0 = arith.constant 0 : i32
    %c0_i32_1 = arith.constant 0 : i32
    return %arg0, %c0_i32, %c0_i32_0 : i32, i32, i32
  }
  func.func @transform_22(%arg0: i32) -> (i32, i32, i32) {
    %c0_i32 = arith.constant 0 : i32
    %c0_i32_0 = arith.constant 0 : i32
    %c0_i32_1 = arith.constant 0 : i32
    return %arg0, %c0_i32, %c0_i32_0 : i32, i32, i32
  }
  func.func @transform_23(%arg0: i32) -> (i32, i32, i32) {
    %c0_i32 = arith.constant 0 : i32
    %c0_i32_0 = arith.constant 0 : i32
    %c0_i32_1 = arith.constant 0 : i32
    return %arg0, %c0_i32, %c0_i32_0 : i32, i32, i32
  }
  func.func @transform_24(%arg0: i32) -> (i32, i32, i32) {
    %c0_i32 = arith.constant 0 : i32
    %c0_i32_0 = arith.constant 0 : i32
    %c0_i32_1 = arith.constant 0 : i32
    return %arg0, %c0_i32, %c0_i32_0 : i32, i32, i32
  }
  func.func @transform_25(%arg0: i32) -> (i32, i32, i32) {
    %c0_i32 = arith.constant 0 : i32
    %c0_i32_0 = arith.constant 0 : i32
    %c0_i32_1 = arith.constant 0 : i32
    return %arg0, %c0_i32, %c0_i32_0 : i32, i32, i32
  }
  func.func @transform_26(%arg0: i32) -> (i32, i32, i32) {
    %c0_i32 = arith.constant 0 : i32
    %c0_i32_0 = arith.constant 0 : i32
    %c0_i32_1 = arith.constant 0 : i32
    return %arg0, %c0_i32, %c0_i32_0 : i32, i32, i32
  }
  func.func @transform_27(%arg0: i32) -> (i32, i32, i32) {
    %c0_i32 = arith.constant 0 : i32
    %c0_i32_0 = arith.constant 0 : i32
    %c0_i32_1 = arith.constant 0 : i32
    return %arg0, %c0_i32, %c0_i32_0 : i32, i32, i32
  }
  func.func @transform_28(%arg0: i32) -> (i32, i32, i32) {
    %c0_i32 = arith.constant 0 : i32
    %c0_i32_0 = arith.constant 0 : i32
    %c0_i32_1 = arith.constant 0 : i32
    return %arg0, %c0_i32, %c0_i32_0 : i32, i32, i32
  }
  func.func @transform_29(%arg0: i32) -> (i32, i32, i32) {
    %c0_i32 = arith.constant 0 : i32
    %c0_i32_0 = arith.constant 0 : i32
    %c0_i32_1 = arith.constant 0 : i32
    return %arg0, %c0_i32, %c0_i32_0 : i32, i32, i32
  }
  func.func @transform_30(%arg0: i32) -> (i32, i32, i32) {
    %c0_i32 = arith.constant 0 : i32
    %c0_i32_0 = arith.constant 0 : i32
    %c0_i32_1 = arith.constant 0 : i32
    return %arg0, %c0_i32, %c0_i32_0 : i32, i32, i32
  }
  func.func @transform_31(%arg0: i32) -> (i32, i32, i32) {
    %c0_i32 = arith.constant 0 : i32
    %c0_i32_0 = arith.constant 0 : i32
    %c0_i32_1 = arith.constant 0 : i32
    return %arg0, %c0_i32, %c0_i32_0 : i32, i32, i32
  }
}

</mosaic_0001>

<bundles_post_ra>
// kernel: tpu_custom_call.1
= control target key start
LH: loop header
LB: loop body
LE: loop exit
PB: predicated region body
PF: predicated region fallthrough
CT: control target
= control target key end

     0   :  { %s7251_s6 = smov 1   ;;  %s7252_s10 = smov 2   ;;  %s8568_s0 = inlined_call_operand.smem [shape: u32[32], index: -1, kind: input, shape index: {}] }
   0x1   :  { %s7311_s5 = sld [smem:[%s8568_s0]]   ;;  %s7253_s14 = smov 3  }
   0x2   :  { %s7316_s9 = sld [smem:[%s8568_s0 + %s7251_s6]]   ;;  %s7254_s18 = smov 4  }
   0x3   :  { %s7321_s13 = sld [smem:[%s8568_s0 + %s7252_s10]]   ;;  %s7255_s22 = smov 5  }
   0x4   :  { %s7326_s17 = sld [smem:[%s8568_s0 + %s7253_s14]]   ;;  %s7256_s26 = smov 6  }
   0x5   :  { %s7331_s21 = sld [smem:[%s8568_s0 + %s7254_s18]]   ;;  %s7257_s30 = smov 7  }
   0x6   :  { %s7336_s25 = sld [smem:[%s8568_s0 + %s7255_s22]]   ;;  %s7258_s4 = smov 8  }
   0x7   :  { %8589 = sst [smem:[#allocation22_spill]] %s7311_s5  ;;  %s7259_s10 = smov 9  }
   0x8   :  { %8590 = sst [smem:[#allocation23_spill]] %s7316_s9  ;;  %s7260_s15 = smov 10  }
   0x9   :  { %8591 = sst [smem:[#allocation24_spill]] %s7321_s13  ;;  %s7261_s20 = smov 11  }
   0xa   :  { %8592 = sst [smem:[#allocation25_spill]] %s7326_s17  ;;  %s7263_s1 = smov 13  }
   0xb   :  { %s7341_s29 = sld [smem:[%s8568_s0 + %s7256_s26]]   ;;  %s7262_s26 = smov 12  }
   0xc   :  { %8593 = sst [smem:[#allocation26_spill]] %s7336_s25  ;;  %s7264_s7 = smov 14  }
   0xd   :  { %s7346_s3 = sld [smem:[%s8568_s0 + %s7257_s30]]   ;;  %s7266_s22 = smov 16  }
   0xe   :  { %s7351_s8 = sld [smem:[%s8568_s0 + %s7258_s4]]   ;;  %s7267_s28 = smov 17  }
   0xf   :  { %s7356_s14 = sld [smem:[%s8568_s0 + %s7259_s10]]  }
  0x10   :  { %s7361_s19 = sld [smem:[%s8568_s0 + %s7260_s15]]   ;;  %s7265_s15 = smov 15  }
  0x11   :  { %8594 = sst [smem:[#allocation27_spill]] %s7341_s29 }
  0x12   :  { %s7366_s24 = sld [smem:[%s8568_s0 + %s7261_s20]]  }
  0x13   :  { %8595 = sst [smem:[#allocation28_spill]] %s7346_s3 }
  0x14   :  { %8596 = sst [smem:[#allocation29_spill]] %s7351_s8 }
  0x15   :  { %s7371_s30 = sld [smem:[%s8568_s0 + %s7262_s26]]  }
  0x16   :  { %8597 = sst [smem:[#allocation30_spill]] %s7361_s19 }
  0x17   :  { %s7376_s6 = sld [smem:[%s8568_s0 + %s7263_s1]]  }
  0x18   :  { %8598 = sst [smem:[#allocation31_spill]] %s7366_s24 }
  0x19   :  { %s7381_s12 = sld [smem:[%s8568_s0 + %s7264_s7]]   ;;  %s7268_s7 = smov 18  }
  0x1a   :  { %s7386_s20 = sld [smem:[%s8568_s0 + %s7265_s15]]   ;;  %s7269_s15 = smov 19  }
  0x1b   :  { %8599 = sst [smem:[#allocation32_spill]] %s7371_s30 }
  0x1c   :  { %s7391_s27 = sld [smem:[%s8568_s0 + %s7266_s22]]   ;;  %s7270_s22 = smov 20  }
  0x1d   :  { %8600 = sst [smem:[#allocation33_spill]] %s7376_s6 }
  0x1e   :  { %s7396_s4 = sld [smem:[%s8568_s0 + %s7267_s28]]   ;;  %s7271_s28 = smov 21  }
  0x1f   :  { %8601 = sst [smem:[#allocation34_spill]] %s7381_s12 }
  0x20   :  { %s7401_s24 = sld [smem:[%s8568_s0 + %s7268_s7]]   ;;  %s7272_s7 = smov 22  }
  0x21   :  { %s7406_s19 = sld [smem:[%s8568_s0 + %s7269_s15]]   ;;  %s7273_s15 = smov 23  }
  0x22   :  { %s7411_s6 = sld [smem:[%s8568_s0 + %s7270_s22]]   ;;  %s7274_s22 = smov 24  }
  0x23   :  { %s7416_s30 = sld [smem:[%s8568_s0 + %s7271_s28]]   ;;  %s7275_s28 = smov 25  }
  0x24   :  { %s7426_s29 = sld [smem:[%s8568_s0 + %s7273_s15]]   ;;  %s7277_s15 = smov 27  }
  0x25   :  { %s7431_s25 = sld [smem:[%s8568_s0 + %s7274_s22]]   ;;  %s7278_s22 = smov 28  }
  0x26   :  { %8602 = sst [smem:[#allocation35_spill]] %s7401_s24 }
  0x27   :  { %s7421_s24 = sld [smem:[%s8568_s0 + %s7272_s7]]   ;;  %s7276_s7 = smov 26  }
  0x28   :  { %s7441_s9 = sld [smem:[%s8568_s0 + %s7276_s7]]   ;;  %s7280_s7 = smov 30  }
  0x29   :  { %8603 = sst [smem:[#allocation36_spill]] %s7416_s30 }
  0x2a   :  { %8605 = sst [smem:[#allocation38_spill]] %s7426_s29 }
  0x2b   :  { %s7436_s30 = sld [smem:[%s8568_s0 + %s7275_s28]]   ;;  %s7279_s28 = smov 29  }
  0x2c   :  { %s7446_s29 = sld [smem:[%s8568_s0 + %s7277_s15]]   ;;  %s7281_s15 = smov 31  }
  0x2d   :  { %8604 = sst [smem:[#allocation37_spill]] %s7421_s24 }
  0x2e   :  { %s7451_s24 = sld [smem:[%s8568_s0 + %s7278_s22]]  }
  0x2f   :  { %s7461_s17 = sld [smem:[%s8568_s0 + %s7280_s7]]  }
  0x30   :  { %s7466_s13 = sld [smem:[%s8568_s0 + %s7281_s15]]  }
  0x31   :  { %8606 = sst [smem:[#allocation39_spill]] %s7436_s30 }
  0x32   :  { %s7456_s30 = sld [smem:[%s8568_s0 + %s7279_s28]]  }
  0x34   :  { %8607 = sst [smem:[#allocation40_spill]] %s7451_s24 }
  0x35   :  { %8609 = sst [smem:[#allocation42_spill]] %s7461_s17 }
  0x36   :  { %8610 = sst [smem:[#allocation43_spill]] %s7466_s13 }
  0x38   :  { %8608 = sst [smem:[#allocation41_spill]] %s7456_s30 }
  0x39   :  { %68 = vsyncpa [#allocation3], 0 }
  0x3a   :  { %69 = vsyncpa [#allocation5], 0  ;;  %s7468_s22 = smov 0   ;;  %s7470_s23 = smov 0  }
  0x3b   :  { %s7472_s26 = smov 0   ;;  %s7474_s28 = smov 0  }
  0x3c LB: > { %s8611_s12 = sld [smem:[#allocation34_spill]]  ;;  %s7487_s0 = sadd.s32 4294967295, %s7249_s28   ;;  %s7245_s26 = sphi %s7472_s26, %s8660_s26   ;;  %s7241_s23 = sphi %s7470_s23, %s8659_s23   ;;  %s7237_s22 = sphi %s7468_s22, %s8658_s22   ;;  %s7249_s28 = sphi %s7474_s28, %s8657_s28  }
  0x3d   : > { %s8612_s8 = sld [smem:[#allocation29_spill]]  ;;  %s7490_s1 = sadd.s32 1, %s7249_s28  }
  0x3e   : > { %s8613_s3 = sld [smem:[#allocation28_spill]]  ;;  %s168_s2 = ssub.s32 %s7249_s28, %s7490_s1 }
  0x3f   : > { %8614 = sst [smem:[#allocation44_spill]] %s7241_s23  ;;  %s171_s7 = sadd.s32 1, %s7245_s26 }
  0x40   : > { %8615 = sst [smem:[#allocation45_spill]] %s7245_s26  ;;  %p169_p0 = scmp.eq.s32.totalorder %s168_s2, 0 }
  0x41   : > { %8616 = sst [smem:[#allocation46_spill]] %s7490_s1  ;;  %p178_p1 = scmp.ne.s32.totalorder %s7245_s26, %s7241_s23 }
  0x42   : > { %p179_p2 = scmp.eq.s32.totalorder %s7249_s28, 0  ;;  %p184_p3 = scmp.ne.s32.totalorder %s7241_s23, %s7237_s22 }
  0x43   : > { %s7500_s10 = scalar_select %p169_p0, %s7245_s26, %s171_s7  }
  0x44   : > { %p7502_p4 = por %p179_p2, %p178_p1  ;;  %p8572_p5 = scmp.eq.s32.totalorder %s7487_s0, 0 }
  0x45   : > { %8617 = sst [smem:[#allocation47_spill]] %s7500_s10  ;;  %p5513_p6 = scmp.ge.s32.totalorder %s7249_s28, 1 }
  0x46   : > { %p897_p7 = scmp.lt.s32.totalorder %s7249_s28, 3  ;;  %p7511_p8 = por %p8572_p5, %p184_p3 }
  0x47   : > { %s7282_s18 = smov [#allocation2]   ;;  %p6515_p13 = scmp.lt.s32.totalorder %s7249_s28, 2 }
  0x48   : > { %s8619_s15 = scalar_select %p7511_p8, 1, 0 }
  0x49   : > { %p7516_p10 = pnand %p5513_p6, %p897_p7  ;;  %s909_s22 = sshll.u32 %s7282_s18, 4  ;;  %s910_s22 = int_to_ptr.vmem [resolvable:$true] %s909_s22 }
  0x4a   : > { %8620 = sst [smem:[#allocation48_spill]] %s8619_s15  ;;  %s7530_s7 = sand.u32 1, %s7245_s26  }
  0x4b   : > { %s8621_s16 = scalar_select %p7516_p10, 1, 0 }
  0x4c   : > { %p6466_p11 = pneg %p7516_p10  ;;  %s945_s10 = sand.u32 1, %s7249_s28  }
  0x4d   : > { %p7535_p0 = pnand %p6515_p13, %p7502_p4  ;;  %s6802_s18 = scalar_lea.vmem %s910_s22, 8192 }
  0x4e   : > { %p7524_p12 = pnand %p6466_p11, %p8572_p5  ;;  %p6803_p2 = scmp.ne.s32.totalorder %s910_s22, %s6802_s18 }
  0x4f   : > { %p6810_p7 = scmp.lt.s32.totalorder %s910_s22, %s910_s22  ;;  %p6811_p11 = scmp.lt.s32.totalorder %s6802_s18, %s6802_s18 }
  0x50   : > { %s8622_s2 = scalar_select %p7524_p12, 1, 0 }
  0x51   : > { %p8577_p1 = pneg %p7524_p12  ;;  %p6812_p9 = por %p6811_p11, %p6810_p7 }
  0x53   : > { %p6805_p3 = pnand %p6803_p2, %p8577_p1 }
  0x55   : > { %p6806_p6 = pneg %p6805_p3 }
  0x57   : > { %p6813_p5 = pnand %p6812_p9, %p6806_p6 }
  0x59   : > { %6816 = shalt.err (!%p6813_p5)
}
  0x5a   : > { %s8579_s26 = smov 64   ;;  %s8624_s5 = sld [smem:[#allocation22_spill]] }
  0x5b   : > { %s8581_s11 = smov 4   ;;  %s7551_s17 = sshll.u32 %s7249_s28, 4 }
  0x5c   : > { %s7555_s18 = scalar_lea.hbm %s7331_s21, %s7551_s17  ;;  %s948_s24 = scalar_lea.vmem [#allocation6], %s7530_s7 }
  0x5d   : > { %s955_s30 = sshll.u32 %s948_s24, 4  ;;  %s7558_s13 = scalar_lea.sflag [#allocation3], %s945_s10  ;;  %s956_s30 = int_to_ptr.vmem [resolvable:$true] %s955_s30 }
  0x5e   : > { %s6817_s15 = scalar_lea.hbm %s7555_s18, 16  ;;  %p7564_p5 = pneg %p7535_p0 }
  0x5f   : > { %p6818_p4 = scmp.ne.s32.totalorder %s7555_s18, %s6817_s15  ;;  %p6823_p2 = scmp.lt.s32.totalorder %s7555_s18, %s7331_s21 }
  0x60   : > { %6469 = dma.hbm_to_vmem [thread:$0]  (!%p7524_p12), %s8624_s5, 8192, %s910_s22, [#allocation3], %s8579_s26, %s8579_s26, %s8581_s11  }
  0x61   : > { %p6820_p9 = pnand %p7564_p5, %p6818_p4  ;;  %s6822_s22 = scalar_lea.hbm %s7331_s21, 32 }
  0x62   : > { %p6824_p3 = scmp.lt.s32.totalorder %s6822_s22, %s6817_s15 }
  0x63   : > { %p6821_p13 = pneg %p6820_p9 }
  0x64   : > { %p6825_p6 = por %p6824_p3, %p6823_p2 }
  0x66   : > { %p6826_p7 = pnand %p6825_p6, %p6821_p13 }
  0x68   : > { %6829 = shalt.err (!%p6826_p7)
}
  0x69   : > { %s6830_s24 = scalar_lea.vmem %s956_s30, 16  ;;  %s7285_s10 = smov [#allocation6]  }
  0x6a   : > { %p6831_p11 = scmp.ne.s32.totalorder %s956_s30, %s6830_s24  ;;  %s6835_s26 = sshll.u32 %s7285_s10, 4  ;;  %s6836_s26 = int_to_ptr.vmem [resolvable:$false] %s6835_s26 }
  0x6b   : > { %s6837_s11 = scalar_lea.vmem %s6836_s26, 32  ;;  %p6838_p10 = scmp.lt.s32.totalorder %s956_s30, %s6836_s26 }
  0x6c   : > { %p6833_p1 = pnand %p6831_p11, %p7564_p5  ;;  %p6839_p12 = scmp.lt.s32.totalorder %s6837_s11, %s6830_s24 }
  0x6e   : > { %p6834_p8 = pneg %p6833_p1  ;;  %p6840_p4 = por %p6839_p12, %p6838_p10 }
  0x70   : > { %p6841_p9 = pnand %p6840_p4, %p6834_p8 }
  0x72   : > { %6844 = shalt.err (!%p6841_p9)
}
  0x73   : > { %6476 = dma.hbm_to_vmem [thread:$0]  (!%p7535_p0), %s7555_s18, 16, %s956_s30, %s7558_s13  }
  0x74   : > { %s986_s15 = scalar_lea.hbm %s8613_s3, %s7551_s17  ;;  %s981_s22 = scalar_lea.vmem [#allocation7], %s7530_s7 }
  0x75   : > { %s988_s10 = sshll.u32 %s981_s22, 4  ;;  %s6845_s26 = scalar_lea.hbm %s986_s15, 16  ;;  %s989_s10 = int_to_ptr.vmem [resolvable:$true] %s988_s10 }
  0x76   : > { %p6846_p1 = scmp.ne.s32.totalorder %s986_s15, %s6845_s26  ;;  %s6850_s11 = scalar_lea.hbm %s8613_s3, 32 }
  0x77   : > { %p6851_p12 = scmp.lt.s32.totalorder %s986_s15, %s8613_s3  ;;  %p6852_p13 = scmp.lt.s32.totalorder %s6850_s11, %s6845_s26 }
  0x78   : > { %p6848_p8 = pnand %p6846_p1, %p7564_p5 }
  0x79   : > { %p6853_p2 = por %p6852_p13, %p6851_p12 }
  0x7a   : > { %p6849_p10 = pneg %p6848_p8 }
  0x7c   : > { %p6854_p3 = pnand %p6853_p2, %p6849_p10 }
  0x7e   : > { %6857 = shalt.err (!%p6854_p3)
}
  0x7f   : > { %s6858_s24 = scalar_lea.vmem %s989_s10, 16  ;;  %s7286_s30 = smov [#allocation7]  }
  0x80   : > { %p6859_p6 = scmp.ne.s32.totalorder %s989_s10, %s6858_s24  ;;  %s6863_s18 = sshll.u32 %s7286_s30, 4  ;;  %s6864_s18 = int_to_ptr.vmem [resolvable:$false] %s6863_s18 }
  0x81   : > { %s6865_s22 = scalar_lea.vmem %s6864_s18, 32  ;;  %p6866_p4 = scmp.lt.s32.totalorder %s989_s10, %s6864_s18 }
  0x82   : > { %p6861_p7 = pnand %p6859_p6, %p7564_p5  ;;  %p6867_p9 = scmp.lt.s32.totalorder %s6865_s22, %s6858_s24 }
  0x84   : > { %p6862_p11 = pneg %p6861_p7  ;;  %p6868_p1 = por %p6867_p9, %p6866_p4 }
  0x86   : > { %p6869_p8 = pnand %p6868_p1, %p6862_p11 }
  0x88   : > { %6872 = shalt.err (!%p6869_p8)
}
  0x89   : > { %6479 = dma.hbm_to_vmem [thread:$0]  (!%p7535_p0), %s986_s15, 16, %s989_s10, %s7558_s13  }
  0x8a   : > { %s1003_s26 = scalar_lea.hbm %s8612_s8, %s7551_s17  ;;  %s998_s11 = scalar_lea.vmem [#allocation8], %s7530_s7 }
  0x8b   : > { %s1005_s30 = sshll.u32 %s998_s11, 4  ;;  %s6873_s3 = scalar_lea.hbm %s1003_s26, 16  ;;  %s1006_s30 = int_to_ptr.vmem [resolvable:$true] %s1005_s30 }
  0x8c   : > { %p6874_p10 = scmp.ne.s32.totalorder %s1003_s26, %s6873_s3  ;;  %s6878_s24 = scalar_lea.hbm %s8612_s8, 32 }
  0x8d   : > { %p6879_p2 = scmp.lt.s32.totalorder %s1003_s26, %s8612_s8  ;;  %p6880_p3 = scmp.lt.s32.totalorder %s6878_s24, %s6873_s3 }
  0x8e   : > { %p6876_p12 = pnand %p6874_p10, %p7564_p5 }
  0x8f   : > { %p6881_p6 = por %p6880_p3, %p6879_p2 }
  0x90   : > { %p6877_p13 = pneg %p6876_p12 }
  0x92   : > { %p6882_p7 = pnand %p6881_p6, %p6877_p13 }
  0x94   : > { %6885 = shalt.err (!%p6882_p7)
}
  0x95   : > { %s6886_s18 = scalar_lea.vmem %s1006_s30, 16  ;;  %s7287_s15 = smov [#allocation8]  }
  0x96   : > { %p6887_p11 = scmp.ne.s32.totalorder %s1006_s30, %s6886_s18  ;;  %s6891_s10 = sshll.u32 %s7287_s15, 4  ;;  %s6892_s10 = int_to_ptr.vmem [resolvable:$false] %s6891_s10 }
  0x97   : > { %s6893_s22 = scalar_lea.vmem %s6892_s10, 32  ;;  %p6894_p1 = scmp.lt.s32.totalorder %s1006_s30, %s6892_s10 }
  0x98   : > { %p6889_p4 = pnand %p6887_p11, %p7564_p5  ;;  %p6895_p8 = scmp.lt.s32.totalorder %s6893_s22, %s6886_s18 }
  0x9a   : > { %p6890_p9 = pneg %p6889_p4  ;;  %p6896_p10 = por %p6895_p8, %p6894_p1 }
  0x9c   : > { %p6897_p12 = pnand %p6896_p10, %p6890_p9 }
  0x9e   : > { %6900 = shalt.err (!%p6897_p12)
}
  0x9f   : > { %6482 = dma.hbm_to_vmem [thread:$0]  (!%p7535_p0), %s1003_s26, 16, %s1006_s30, %s7558_s13  }
  0xa0   : > { %s7605_s3 = scalar_lea.hbm %s7356_s14, %s7551_s17  ;;  %s1015_s11 = scalar_lea.vmem [#allocation9], %s7530_s7 }
  0xa1   : > { %s1022_s24 = sshll.u32 %s1015_s11, 4  ;;  %s7609_s18 = sshll.u32 %s7530_s7, 4  ;;  %s1023_s24 = int_to_ptr.vmem [resolvable:$true] %s1022_s24 }
  0xa2   : > { %s6901_s15 = scalar_lea.hbm %s7605_s3, 16  ;;  %s6906_s10 = scalar_lea.hbm %s7356_s14, 32 }
  0xa3   : > { %p6902_p13 = scmp.ne.s32.totalorder %s7605_s3, %s6901_s15  ;;  %p6907_p6 = scmp.lt.s32.totalorder %s7605_s3, %s7356_s14 }
  0xa4   : > { %p6908_p7 = scmp.lt.s32.totalorder %s6906_s10, %s6901_s15 }
  0xa5   : > { %p6904_p2 = pnand %p6902_p13, %p7564_p5 }
  0xa6   : > { %p6909_p11 = por %p6908_p7, %p6907_p6 }
  0xa7   : > { %p6905_p3 = pneg %p6904_p2 }
  0xa9   : > { %p6910_p4 = pnand %p6909_p11, %p6905_p3 }
  0xab   : > { %6913 = shalt.err (!%p6910_p4)
}
  0xac   : > { %s6914_s26 = scalar_lea.vmem %s1023_s24, 16  ;;  %s7288_s30 = smov [#allocation9]  }
  0xad   : > { %p6915_p9 = scmp.ne.s32.totalorder %s1023_s24, %s6914_s26  ;;  %s6919_s22 = sshll.u32 %s7288_s30, 4  ;;  %s6920_s22 = int_to_ptr.vmem [resolvable:$false] %s6919_s22 }
  0xae   : > { %s6921_s11 = scalar_lea.vmem %s6920_s22, 32  ;;  %p6922_p10 = scmp.lt.s32.totalorder %s1023_s24, %s6920_s22 }
  0xaf   : > { %p6917_p1 = pnand %p6915_p9, %p7564_p5  ;;  %p6923_p12 = scmp.lt.s32.totalorder %s6921_s11, %s6914_s26 }
  0xb1   : > { %p6918_p8 = pneg %p6917_p1  ;;  %p6924_p13 = por %p6923_p12, %p6922_p10 }
  0xb3   : > { %p6925_p2 = pnand %p6924_p13, %p6918_p8 }
  0xb5   : > { %6928 = shalt.err (!%p6925_p2)
}
  0xb6   : > { %6485 = dma.hbm_to_vmem [thread:$0]  (!%p7535_p0), %s7605_s3, 16, %s1023_s24, %s7558_s13  }
  0xb7   : > { %s7625_s15 = sshll.u32 %s7249_s28, 8  ;;  %s1065_s26 = scalar_lea.vmem [#allocation10], %s7609_s18 }
  0xb8   : > { %s7629_s10 = scalar_lea.hbm %s8611_s12, %s7625_s15  ;;  %s1072_s30 = sshll.u32 %s1065_s26, 4  ;;  %s1073_s30 = int_to_ptr.vmem [resolvable:$true] %s1072_s30 }
  0xb9   : > { %s6929_s22 = scalar_lea.hbm %s7629_s10, 256  ;;  %s6934_s11 = scalar_lea.hbm %s8611_s12, 512 }
  0xba   : > { %p6930_p3 = scmp.ne.s32.totalorder %s7629_s10, %s6929_s22  ;;  %p6935_p11 = scmp.lt.s32.totalorder %s7629_s10, %s8611_s12 }
  0xbb   : > { %p6936_p4 = scmp.lt.s32.totalorder %s6934_s11, %s6929_s22 }
  0xbc   : > { %p6932_p6 = pnand %p6930_p3, %p7564_p5 }
  0xbd   : > { %p6937_p9 = por %p6936_p4, %p6935_p11 }
  0xbe   : > { %p6933_p7 = pneg %p6932_p6 }
  0xc0   : > { %p6938_p1 = pnand %p6937_p9, %p6933_p7 }
  0xc2   : > { %6941 = shalt.err (!%p6938_p1)
}
  0xc3   : > { %s6942_s28 = scalar_lea.vmem %s1073_s30, 256  ;;  %s7289_s3 = smov [#allocation10]  }
  0xc4   : > { %p6943_p8 = scmp.ne.s32.totalorder %s1073_s30, %s6942_s28  ;;  %s6947_s24 = sshll.u32 %s7289_s3, 4  ;;  %s6948_s24 = int_to_ptr.vmem [resolvable:$false] %s6947_s24 }
  0xc5   : > { %s6949_s26 = scalar_lea.vmem %s6948_s24, 512  ;;  %p6950_p13 = scmp.lt.s32.totalorder %s1073_s30, %s6948_s24 }
  0xc6   : > { %p6945_p10 = pnand %p6943_p8, %p7564_p5  ;;  %p6951_p2 = scmp.lt.s32.totalorder %s6949_s26, %s6942_s28 }
  0xc8   : > { %p6946_p12 = pneg %p6945_p10  ;;  %p6952_p3 = por %p6951_p2, %p6950_p13 }
  0xca   : > { %p6953_p6 = pnand %p6952_p3, %p6946_p12 }
  0xcc   : > { %6956 = shalt.err (!%p6953_p6)
}
  0xcd   : > { %s8626_s22 = smov 4   ;;  %s8627_s11 = smov 64  }
  0xce   : > { %6488 = dma.hbm_to_vmem [thread:$0]  (!%p7535_p0), %s7629_s10, 256, %s1073_s30, %s7558_s13, %s8627_s11, %s8627_s11, %s8626_s22  }
  0xcf   : > { %s1090_s3 = scalar_lea.hbm %s7386_s20, %s7551_s17  ;;  %s1085_s24 = scalar_lea.vmem [#allocation11], %s7530_s7 }
  0xd0   : > { %s1092_s28 = sshll.u32 %s1085_s24, 4  ;;  %s6957_s26 = scalar_lea.hbm %s1090_s3, 16  ;;  %s1093_s28 = int_to_ptr.vmem [resolvable:$true] %s1092_s28 }
  0xd1   : > { %p6958_p7 = scmp.ne.s32.totalorder %s1090_s3, %s6957_s26  ;;  %s6962_s5 = scalar_lea.hbm %s7386_s20, 32 }
  0xd2   : > { %p6963_p9 = scmp.lt.s32.totalorder %s1090_s3, %s7386_s20  ;;  %p6964_p1 = scmp.lt.s32.totalorder %s6962_s5, %s6957_s26 }
  0xd3   : > { %p6960_p11 = pnand %p6958_p7, %p7564_p5 }
  0xd4   : > { %p6965_p8 = por %p6964_p1, %p6963_p9 }
  0xd5   : > { %p6961_p4 = pneg %p6960_p11 }
  0xd7   : > { %p6966_p10 = pnand %p6965_p8, %p6961_p4 }
  0xd9   : > { %6969 = shalt.err (!%p6966_p10)
}
  0xda   : > { %s6970_s8 = scalar_lea.vmem %s1093_s28, 16  ;;  %s7290_s10 = smov [#allocation11]  }
  0xdb   : > { %p6971_p12 = scmp.ne.s32.totalorder %s1093_s28, %s6970_s8  ;;  %s6975_s30 = sshll.u32 %s7290_s10, 4  ;;  %s6976_s30 = int_to_ptr.vmem [resolvable:$false] %s6975_s30 }
  0xdc   : > { %s6977_s24 = scalar_lea.vmem %s6976_s30, 32  ;;  %p6978_p3 = scmp.lt.s32.totalorder %s1093_s28, %s6976_s30 }
  0xdd   : > { %p6973_p13 = pnand %p6971_p12, %p7564_p5  ;;  %p6979_p6 = scmp.lt.s32.totalorder %s6977_s24, %s6970_s8 }
  0xdf   : > { %p6974_p2 = pneg %p6973_p13  ;;  %p6980_p7 = por %p6979_p6, %p6978_p3 }
  0xe1   : > { %p6981_p11 = pnand %p6980_p7, %p6974_p2 }
  0xe3   : > { %6984 = shalt.err (!%p6981_p11)
}
  0xe4   : > { %6491 = dma.hbm_to_vmem [thread:$0]  (!%p7535_p0), %s1090_s3, 16, %s1093_s28, %s7558_s13  }
  0xe5   : > { %s1107_s5 = scalar_lea.hbm %s7391_s27, %s7551_s17  ;;  %s1102_s26 = scalar_lea.vmem [#allocation12], %s7530_s7 }
  0xe6   : > { %s1109_s10 = sshll.u32 %s1102_s26, 4  ;;  %s6985_s12 = scalar_lea.hbm %s1107_s5, 16  ;;  %s1110_s10 = int_to_ptr.vmem [resolvable:$true] %s1109_s10 }
  0xe7   : > { %p6986_p4 = scmp.ne.s32.totalorder %s1107_s5, %s6985_s12  ;;  %s6990_s8 = scalar_lea.hbm %s7391_s27, 32 }
  0xe8   : > { %p6991_p8 = scmp.lt.s32.totalorder %s1107_s5, %s7391_s27  ;;  %p6992_p10 = scmp.lt.s32.totalorder %s6990_s8, %s6985_s12 }
  0xe9   : > { %p6988_p9 = pnand %p6986_p4, %p7564_p5 }
  0xea   : > { %p6993_p12 = por %p6992_p10, %p6991_p8 }
  0xeb   : > { %p6989_p1 = pneg %p6988_p9 }
  0xed   : > { %p6994_p13 = pnand %p6993_p12, %p6989_p1 }
  0xef   : > { %6997 = shalt.err (!%p6994_p13)
}
  0xf0   : > { %s6998_s30 = scalar_lea.vmem %s1110_s10, 16  ;;  %s7291_s3 = smov [#allocation12]  }
  0xf1   : > { %p6999_p2 = scmp.ne.s32.totalorder %s1110_s10, %s6998_s30  ;;  %s7003_s28 = sshll.u32 %s7291_s3, 4  ;;  %s7004_s28 = int_to_ptr.vmem [resolvable:$false] %s7003_s28 }
  0xf2   : > { %s7005_s24 = scalar_lea.vmem %s7004_s28, 32  ;;  %p7006_p7 = scmp.lt.s32.totalorder %s1110_s10, %s7004_s28 }
  0xf3   : > { %p7001_p3 = pnand %p6999_p2, %p7564_p5  ;;  %p7007_p11 = scmp.lt.s32.totalorder %s7005_s24, %s6998_s30 }
  0xf5   : > { %p7002_p6 = pneg %p7001_p3  ;;  %p7008_p4 = por %p7007_p11, %p7006_p7 }
  0xf7   : > { %p7009_p9 = pnand %p7008_p4, %p7002_p6 }
  0xf9   : > { %7012 = shalt.err (!%p7009_p9)
}
  0xfa   : > { %6494 = dma.hbm_to_vmem [thread:$0]  (!%p7535_p0), %s1107_s5, 16, %s1110_s10, %s7558_s13  }
  0xfb   : > { %s1124_s12 = scalar_lea.hbm %s7396_s4, %s7551_s17  ;;  %s1119_s26 = scalar_lea.vmem [#allocation13], %s7530_s7 }
  0xfc   : > { %s1126_s8 = sshll.u32 %s1119_s26, 4  ;;  %s7013_s3 = scalar_lea.hbm %s1124_s12, 16  ;;  %s1127_s8 = int_to_ptr.vmem [resolvable:$true] %s1126_s8 }
  0xfd   : > { %p7014_p1 = scmp.ne.s32.totalorder %s1124_s12, %s7013_s3  ;;  %s7018_s30 = scalar_lea.hbm %s7396_s4, 32 }
  0xfe   : > { %p7019_p12 = scmp.lt.s32.totalorder %s1124_s12, %s7396_s4  ;;  %p7020_p13 = scmp.lt.s32.totalorder %s7018_s30, %s7013_s3 }
  0xff   : > { %p7016_p8 = pnand %p7014_p1, %p7564_p5 }
 0x100   : > { %p7021_p2 = por %p7020_p13, %p7019_p12 }
 0x101   : > { %p7017_p10 = pneg %p7016_p8 }
 0x103   : > { %p7022_p3 = pnand %p7021_p2, %p7017_p10 }
 0x105   : > { %7025 = shalt.err (!%p7022_p3)
}
 0x106   : > { %s7026_s28 = scalar_lea.vmem %s1127_s8, 16  ;;  %s7292_s5 = smov [#allocation13]  }
 0x107   : > { %p7027_p6 = scmp.ne.s32.totalorder %s1127_s8, %s7026_s28  ;;  %s7031_s10 = sshll.u32 %s7292_s5, 4  ;;  %s7032_s10 = int_to_ptr.vmem [resolvable:$false] %s7031_s10 }
 0x108   : > { %s7033_s24 = scalar_lea.vmem %s7032_s10, 32  ;;  %p7034_p4 = scmp.lt.s32.totalorder %s1127_s8, %s7032_s10 }
 0x109   : > { %p7029_p7 = pnand %p7027_p6, %p7564_p5  ;;  %p7035_p9 = scmp.lt.s32.totalorder %s7033_s24, %s7026_s28 }
 0x10b   : > { %p7030_p11 = pneg %p7029_p7  ;;  %p7036_p1 = por %p7035_p9, %p7034_p4 }
 0x10d   : > { %p7037_p8 = pnand %p7036_p1, %p7030_p11 }
 0x10f   : > { %7040 = shalt.err (!%p7037_p8)
}
 0x110   : > { %6497 = dma.hbm_to_vmem [thread:$0]  (!%p7535_p0), %s1124_s12, 16, %s1127_s8, %s7558_s13  }
 0x111   : > { %s1149_s26 = scalar_lea.hbm %s7406_s19, %s7551_s17  ;;  %s1144_s3 = scalar_lea.vmem [#allocation14], %s7530_s7 }
 0x112   : > { %s1151_s30 = sshll.u32 %s1144_s3, 4  ;;  %s7041_s5 = scalar_lea.hbm %s1149_s26, 16  ;;  %s1152_s30 = int_to_ptr.vmem [resolvable:$true] %s1151_s30 }
 0x113   : > { %p7042_p10 = scmp.ne.s32.totalorder %s1149_s26, %s7041_s5  ;;  %s7046_s28 = scalar_lea.hbm %s7406_s19, 32 }
 0x114   : > { %p7047_p2 = scmp.lt.s32.totalorder %s1149_s26, %s7406_s19  ;;  %p7048_p3 = scmp.lt.s32.totalorder %s7046_s28, %s7041_s5 }
 0x115   : > { %p7044_p12 = pnand %p7042_p10, %p7564_p5 }
 0x116   : > { %p7049_p6 = por %p7048_p3, %p7047_p2 }
 0x117   : > { %p7045_p13 = pneg %p7044_p12 }
 0x119   : > { %p7050_p7 = pnand %p7049_p6, %p7045_p13 }
 0x11b   : > { %7053 = shalt.err (!%p7050_p7)
}
 0x11c   : > { %s7054_s10 = scalar_lea.vmem %s1152_s30, 16  ;;  %s7293_s17 = smov [#allocation14]  }
 0x11d   : > { %p7055_p11 = scmp.ne.s32.totalorder %s1152_s30, %s7054_s10  ;;  %s7059_s7 = sshll.u32 %s7293_s17, 4  ;;  %s7060_s7 = int_to_ptr.vmem [resolvable:$false] %s7059_s7 }
 0x11e   : > { %s7061_s12 = scalar_lea.vmem %s7060_s7, 32  ;;  %p7062_p1 = scmp.lt.s32.totalorder %s1152_s30, %s7060_s7 }
 0x11f   : > { %p7057_p4 = pnand %p7055_p11, %p7564_p5  ;;  %p7063_p8 = scmp.lt.s32.totalorder %s7061_s12, %s7054_s10 }
 0x121   : > { %p7058_p9 = pneg %p7057_p4  ;;  %p7064_p10 = por %p7063_p8, %p7062_p1 }
 0x123   : > { %p7065_p12 = pnand %p7064_p10, %p7058_p9 }
 0x125   : > { %7068 = shalt.err (!%p7065_p12)
}
 0x126   : > { %6500 = dma.hbm_to_vmem [thread:$0]  (!%p7535_p0), %s1149_s26, 16, %s1152_s30, %s7558_s13  }
 0x127   : > { %s7698_s8 = scalar_lea.hbm %s7411_s6, %s7625_s15  ;;  %s1162_s24 = scalar_lea.vmem [#allocation15], %s7609_s18 }
 0x128   : > { %s1169_s3 = sshll.u32 %s1162_s24, 4  ;;  %s7069_s5 = scalar_lea.hbm %s7698_s8, 256  ;;  %s1170_s3 = int_to_ptr.vmem [resolvable:$true] %s1169_s3 }
 0x129   : > { %p7070_p13 = scmp.ne.s32.totalorder %s7698_s8, %s7069_s5  ;;  %s7074_s28 = scalar_lea.hbm %s7411_s6, 512 }
 0x12a   : > { %p7075_p6 = scmp.lt.s32.totalorder %s7698_s8, %s7411_s6  ;;  %p7076_p7 = scmp.lt.s32.totalorder %s7074_s28, %s7069_s5 }
 0x12b   : > { %p7072_p2 = pnand %p7070_p13, %p7564_p5 }
 0x12c   : > { %p7077_p11 = por %p7076_p7, %p7075_p6 }
 0x12d   : > { %p7073_p3 = pneg %p7072_p2 }
 0x12f   : > { %p7078_p4 = pnand %p7077_p11, %p7073_p3 }
 0x131   : > { %7081 = shalt.err (!%p7078_p4)
}
 0x132   : > { %s7082_s26 = scalar_lea.vmem %s1170_s3, 256  ;;  %s7294_s30 = smov [#allocation15]  }
 0x133   : > { %p7083_p9 = scmp.ne.s32.totalorder %s1170_s3, %s7082_s26  ;;  %s7087_s10 = sshll.u32 %s7294_s30, 4  ;;  %s7088_s10 = int_to_ptr.vmem [resolvable:$false] %s7087_s10 }
 0x134   : > { %s7089_s17 = scalar_lea.vmem %s7088_s10, 512  ;;  %p7090_p10 = scmp.lt.s32.totalorder %s1170_s3, %s7088_s10 }
 0x135   : > { %p7085_p1 = pnand %p7083_p9, %p7564_p5  ;;  %p7091_p12 = scmp.lt.s32.totalorder %s7089_s17, %s7082_s26 }
 0x137   : > { %p7086_p8 = pneg %p7085_p1  ;;  %p7092_p13 = por %p7091_p12, %p7090_p10 }
 0x139   : > { %p7093_p2 = pnand %p7092_p13, %p7086_p8 }
 0x13b   : > { %7096 = shalt.err (!%p7093_p2)
}
 0x13c   : > { %6503 = dma.hbm_to_vmem [thread:$0]  (!%p7535_p0), %s7698_s8, 256, %s1170_s3, %s7558_s13, %s8627_s11, %s8627_s11, %s8626_s22  }
 0x13d   : > { %s7719_s7 = scalar_lea.hbm %s7431_s25, %s7625_s15  ;;  %s1203_s12 = scalar_lea.vmem [#allocation16], %s7609_s18 }
 0x13e   : > { %s1210_s24 = sshll.u32 %s1203_s12, 4  ;;  %s7097_s5 = scalar_lea.hbm %s7719_s7, 256  ;;  %s1211_s24 = int_to_ptr.vmem [resolvable:$true] %s1210_s24 }
 0x13f   : > { %p7098_p3 = scmp.ne.s32.totalorder %s7719_s7, %s7097_s5  ;;  %s7102_s28 = scalar_lea.hbm %s7431_s25, 512 }
 0x140   : > { %p7103_p11 = scmp.lt.s32.totalorder %s7719_s7, %s7431_s25  ;;  %p7104_p4 = scmp.lt.s32.totalorder %s7102_s28, %s7097_s5 }
 0x141   : > { %p7100_p6 = pnand %p7098_p3, %p7564_p5 }
 0x142   : > { %p7105_p9 = por %p7104_p4, %p7103_p11 }
 0x143   : > { %p7101_p7 = pneg %p7100_p6 }
 0x145   : > { %p7106_p1 = pnand %p7105_p9, %p7101_p7 }
 0x147   : > { %7109 = shalt.err (!%p7106_p1)
}
 0x148   : > { %s7110_s8 = scalar_lea.vmem %s1211_s24, 256  ;;  %s7295_s3 = smov [#allocation16]  }
 0x149   : > { %p7111_p8 = scmp.ne.s32.totalorder %s1211_s24, %s7110_s8  ;;  %s7115_s26 = sshll.u32 %s7295_s3, 4  ;;  %s7116_s26 = int_to_ptr.vmem [resolvable:$false] %s7115_s26 }
 0x14a   : > { %s7117_s30 = scalar_lea.vmem %s7116_s26, 512  ;;  %p7118_p13 = scmp.lt.s32.totalorder %s1211_s24, %s7116_s26 }
 0x14b   : > { %p7113_p10 = pnand %p7111_p8, %p7564_p5  ;;  %p7119_p2 = scmp.lt.s32.totalorder %s7117_s30, %s7110_s8 }
 0x14d   : > { %p7114_p12 = pneg %p7113_p10  ;;  %p7120_p3 = por %p7119_p2, %p7118_p13 }
 0x14f   : > { %p7121_p6 = pnand %p7120_p3, %p7114_p12 }
 0x151   : > { %7124 = shalt.err (!%p7121_p6)
}
 0x152   : > { %6506 = dma.hbm_to_vmem [thread:$0]  (!%p7535_p0), %s7719_s7, 256, %s1211_s24, %s7558_s13, %s8627_s11, %s8627_s11, %s8626_s22  }
 0x153   : > { %s7740_s10 = scalar_lea.hbm %s7441_s9, %s7625_s15  ;;  %s1230_s17 = scalar_lea.vmem [#allocation17], %s7609_s18 }
 0x154   : > { %s1237_s12 = sshll.u32 %s1230_s17, 4  ;;  %s7125_s5 = scalar_lea.hbm %s7740_s10, 256  ;;  %s1238_s12 = int_to_ptr.vmem [resolvable:$true] %s1237_s12 }
 0x155   : > { %p7126_p7 = scmp.ne.s32.totalorder %s7740_s10, %s7125_s5  ;;  %s7130_s28 = scalar_lea.hbm %s7441_s9, 512 }
 0x156   : > { %p7131_p9 = scmp.lt.s32.totalorder %s7740_s10, %s7441_s9  ;;  %p7132_p1 = scmp.lt.s32.totalorder %s7130_s28, %s7125_s5 }
 0x157   : > { %p7128_p11 = pnand %p7126_p7, %p7564_p5 }
 0x158   : > { %p7133_p8 = por %p7132_p1, %p7131_p9 }
 0x159   : > { %p7129_p4 = pneg %p7128_p11 }
 0x15b   : > { %p7134_p10 = pnand %p7133_p8, %p7129_p4 }
 0x15d   : > { %7137 = shalt.err (!%p7134_p10)
}
 0x15e   : > { %s7138_s7 = scalar_lea.vmem %s1238_s12, 256  ;;  %s7296_s24 = smov [#allocation17]  }
 0x15f   : > { %p7139_p12 = scmp.ne.s32.totalorder %s1238_s12, %s7138_s7  ;;  %s7143_s8 = sshll.u32 %s7296_s24, 4  ;;  %s7144_s8 = int_to_ptr.vmem [resolvable:$false] %s7143_s8 }
 0x160   : > { %s7145_s3 = scalar_lea.vmem %s7144_s8, 512  ;;  %p7146_p3 = scmp.lt.s32.totalorder %s1238_s12, %s7144_s8 }
 0x161   : > { %p7141_p13 = pnand %p7139_p12, %p7564_p5  ;;  %p7147_p6 = scmp.lt.s32.totalorder %s7145_s3, %s7138_s7 }
 0x163   : > { %p7142_p2 = pneg %p7141_p13  ;;  %p7148_p7 = por %p7147_p6, %p7146_p3 }
 0x165   : > { %p7149_p11 = pnand %p7148_p7, %p7142_p2 }
 0x167   : > { %7152 = shalt.err (!%p7149_p11)
}
 0x168   : > { %6509 = dma.hbm_to_vmem [thread:$0]  (!%p7535_p0), %s7740_s10, 256, %s1238_s12, %s7558_s13, %s8627_s11, %s8627_s11, %s8626_s22  }
 0x169   : > { %s7297_s26 = smov [#allocation4]   ;;  %s7761_s17 = scalar_lea.hbm %s7446_s29, %s7625_s15 }
 0x16a   : > { %s926_s30 = sshll.u32 %s7297_s26, 4  ;;  %p8628_p9 = scmp.ne.s32.totalorder %s8622_s2, 0  ;;  %s927_s30 = int_to_ptr.vmem [resolvable:$true] %s926_s30 }
 0x16b   : > { %s7164_s5 = scalar_lea.vmem %s927_s30, 128  ;;  %p7172_p12 = scmp.lt.s32.totalorder %s927_s30, %s927_s30 }
 0x16c   : > { %p7165_p4 = scmp.ne.s32.totalorder %s927_s30, %s7164_s5  ;;  %p8629_p1 = pneg %p8628_p9 }
 0x16d   : > { %p7173_p13 = scmp.lt.s32.totalorder %s7164_s5, %s7164_s5 }
 0x16e   : > { %p7167_p8 = pnand %p7165_p4, %p8629_p1 }
 0x16f   : > { %p7174_p2 = por %p7173_p13, %p7172_p12 }
 0x170   : > { %p7168_p10 = pneg %p7167_p8 }
 0x172   : > { %p7175_p3 = pnand %p7174_p2, %p7168_p10 }
 0x174   : > { %7178 = shalt.err (!%p7175_p3)
}
 0x175   : > { %s8630_s28 = sld [smem:[#allocation24_spill]]  ;;  %s1251_s15 = scalar_lea.vmem [#allocation18], %s7609_s18 }
 0x176   : > { %s1258_s10 = sshll.u32 %s1251_s15, 4  ;;  %s7179_s12 = scalar_lea.hbm %s7761_s17, 256  ;;  %s1259_s10 = int_to_ptr.vmem [resolvable:$true] %s1258_s10 }
 0x177   : > { %p7180_p6 = scmp.ne.s32.totalorder %s7761_s17, %s7179_s12  ;;  %s7184_s7 = scalar_lea.hbm %s7446_s29, 512 }
 0x178   : > { %p7185_p4 = scmp.lt.s32.totalorder %s7761_s17, %s7446_s29  ;;  %p7186_p1 = scmp.lt.s32.totalorder %s7184_s7, %s7179_s12 }
 0x179   : > { %p7182_p7 = pnand %p7180_p6, %p7564_p5 }
 0x17a   : > { %p7187_p8 = por %p7186_p1, %p7185_p4 }
 0x17b   : > { %6472 = dma.hbm_to_vmem [thread:$0]  (!%p8628_p9), %s8630_s28, 128, %s927_s30, [#allocation5]  }
 0x17c   : > { %p7183_p11 = pneg %p7182_p7 }
 0x17e   : > { %p7188_p10 = pnand %p7187_p8, %p7183_p11 }
 0x180   : > { %7191 = shalt.err (!%p7188_p10)
}
 0x181   : > { %s7192_s2 = scalar_lea.vmem %s1259_s10, 256  ;;  %s7298_s18 = smov [#allocation18]  }
 0x182   : > { %p7193_p12 = scmp.ne.s32.totalorder %s1259_s10, %s7192_s2  ;;  %s7197_s24 = sshll.u32 %s7298_s18, 4  ;;  %s7198_s24 = int_to_ptr.vmem [resolvable:$false] %s7197_s24 }
 0x183   : > { %s7199_s8 = scalar_lea.vmem %s7198_s24, 512  ;;  %p7200_p2 = scmp.lt.s32.totalorder %s1259_s10, %s7198_s24 }
 0x184   : > { %p7195_p13 = pnand %p7193_p12, %p7564_p5  ;;  %p7201_p3 = scmp.lt.s32.totalorder %s7199_s8, %s7192_s2 }
 0x186   : > { %p7196_p9 = pneg %p7195_p13  ;;  %p7202_p6 = por %p7201_p3, %p7200_p2 }
 0x188   : > { %p7203_p7 = pnand %p7202_p6, %p7196_p9 }
 0x18a   : > { %7206 = shalt.err (!%p7203_p7)
}
 0x18b   : > { %6512 = dma.hbm_to_vmem [thread:$0]  (!%p7535_p0), %s7761_s17, 256, %s1259_s10, %s7558_s13, %s8627_s11, %s8627_s11, %s8626_s22  }
 0x18c   : > { %p8631_p5 = scmp.ne.s32.totalorder %s8621_s16, 0 }
 0x18d   : > { %p8632_p11 = scmp.eq.s32.totalorder (!%p8631_p5), %s7487_s0, 0 }
 0x18e   : > { %1290 = sbr.rel (%p8631_p5) target bundleno = 6321 (0x18b1), region = 144 }
 0x193   : > { %7224 = dma.done.wait (%p8632_p11), [#allocation3], 8192   ;;  %p8633_p4 = pmov %p8632_p11 }
 0x195   : > { %7226 = vsyncadd (%p8633_p4), [#allocation3], 4294959104  ;;  %p8634_p1 = pmov %p8633_p4 }
 0x197   : > { %7228 = dma.done.wait (%p8634_p1), [#allocation5], 128   ;;  %p8635_p8 = pmov %p8634_p1 }
 0x198   : > { %s8636_s23 = sld [smem:[#allocation44_spill]]  ;;  %s1300_s3 = sand.u32 1, %s7487_s0  }
 0x199   : > { %7230 = vsyncadd (%p8635_p8), [#allocation5], 4294967168  ;;  %s8637_s1 = sld [smem:[#allocation48_spill]]  ;;  %s1301_s16 = scalar_lea.sflag [#allocation3], %s1300_s3 }
 0x19e   : > { %s7798_s13 = sand.u32 1, %s8636_s23  }
 0x19f   : > { %s1303_s22 = scalar_lea.vmem [#allocation6], %s7798_s13  ;;  %p8638_p0 = scmp.ne.s32.totalorder %s8637_s1, 0 }
 0x1a1   : > { %7232 = dma.done.wait (%p8638_p0), %s1301_s16, 1408  }
 0x1a2   : > { %7234 = vsyncadd (%p8638_p0), %s1301_s16, 4294965888  ;;  %s8639_s11 = sld [smem:[#allocation25_spill]]  ;;  %p1599_p10 = scmp.lt.s32.totalorder %s7487_s0, 1  ;;  %v6597_v4 = vld [vmem:[#allocation2] sm:$0xff]   ;;  %v6598_v9 = vld [vmem:[#allocation2 + $0x8] sm:$0xff]   ;;  %vm7300_vm0 = vmmov 0  }
 0x1a3   : > { %s8640_s26 = sld [smem:[#allocation43_spill]]  ;;  %6058 = vmatprep.mubr.bf16.mxu0 %v6597_v4  ;;  %v6599_v10 = vld [vmem:[#allocation2 + $0x10] sm:$0xff]   ;;  %v6600_v11 = vld [vmem:[#allocation2 + $0x18] sm:$0xff]   ;;  %v6601_v12 = vld [vmem:[#allocation2 + $0x20] sm:$0xff]   ;;  %vm3261_vm1 = vcmask 523264   ;;  %vm3324_vm2 = vcmask 261120  }
 0x1a4   : > { %s7807_s30 = scalar_select %p1599_p10, %s7487_s0, 1  ;;  %v6602_v13 = vld [vmem:[#allocation2 + $0x28] sm:$0xff]   ;;  %v6603_v14 = vld [vmem:[#allocation2 + $0x30] sm:$0xff]   ;;  %v6604_v15 = vld [vmem:[#allocation2 + $0x38] sm:$0xff]   ;;  %vm4048_vm3 = vcmask 1043456   ;;  %vm3977_vm4 = vcmask 326656  }
 0x1a5   : > { %s8641_s10 = sld [smem:[#allocation37_spill]]  ;;  %v6605_v16 = vld [vmem:[#allocation2 + $0x40] sm:$0xff]   ;;  %v6606_v17 = vld [vmem:[#allocation2 + $0x48] sm:$0xff]   ;;  %v6607_v18 = vld [vmem:[#allocation2 + $0x50] sm:$0xff]   ;;  %p8656_p12 = scmp.ne.s32.totalorder %s7487_s0, 0 }
 0x1a6   : > { %s7810_s17 = sshll.u32 %s7807_s30, 6  ;;  %s5566_s5 = sshll.u32 %s7807_s30, 3  ;;  %v6608_v19 = vld [vmem:[#allocation2 + $0x58] sm:$0xff]   ;;  %v6609_v20 = vld [vmem:[#allocation2 + $0x60] sm:$0xff]   ;;  %v6610_v21 = vld [vmem:[#allocation2 + $0x68] sm:$0xff]  }
 0x1a7   : > { %s8642_s12 = sld [smem:[#allocation41_spill]]  ;;  %v6611_v22 = vld [vmem:[#allocation2 + $0x70] sm:$0xff]   ;;  %v6612_v23 = vld [vmem:[#allocation2 + $0x78] sm:$0xff]   ;;  %v6613_v24 = vld [vmem:[#allocation2 + $0x80] sm:$0xff]   ;;  %s5734_s8 = sshll.u32 %s7807_s30, 5 }
 0x1a8   : > { %s1603_s28 = scalar_lea.vmem %s8639_s11, %s7810_s17  ;;  %v6614_v25 = vld [vmem:[#allocation2 + $0x88] sm:$0xff]   ;;  %v6615_v26 = vld [vmem:[#allocation2 + $0x90] sm:$0xff]   ;;  %v6616_v27 = vld [vmem:[#allocation2 + $0x98] sm:$0xff]   ;;  %s8643_s18 = sld [smem:[#allocation23_spill]] }
 0x1a9   : > { %s7816_s15 = scalar_lea.vmem %s8640_s26, %s5566_s5  ;;  %v6589_v0 = vld [vmem:[%s1603_s28 + $0x38] sm:$0xff]   ;;  %v6590_v1 = vld [vmem:[%s1603_s28 + $0x30] sm:$0xff]   ;;  %v6591_v2 = vld [vmem:[%s1603_s28 + $0x28] sm:$0xff]   ;;  %s8644_s24 = sld [smem:[#allocation26_spill]] }
 0x1aa   : > { %6042 = vmatprep.subr.bf16.mxu0 %v6589_v0  ;;  %v6592_v3 = vld [vmem:[%s1603_s28 + $0x20] sm:$0xff]   ;;  %v6593_v5 = vld [vmem:[%s1603_s28 + $0x18] sm:$0xff]   ;;  %v6594_v6 = vld [vmem:[%s1603_s28 + $0x10] sm:$0xff]   ;;  %s8645_s23 = sld [smem:[#allocation27_spill]]  ;;  %s8209_s3 = sshll.u32 %s7807_s30, 4 }
 0x1ab   : > { %6043 = vmatpush3.bf16.msra.mxu0 %v6589_v0  ;;  %v6595_v7 = vld [vmem:[%s1603_s28 + $0x8] sm:$0xff]   ;;  %v6596_v8 = vld [vmem:[%s1603_s28] sm:$0xff]   ;;  %s7820_s7 = scalar_lea.vmem %s8641_s10, %s7810_s17  ;;  %v6619_v30 = vld [vmem:[#allocation2 + $0xb0] sm:$0xff]   ;;  %s1311_s11 = scalar_lea.vmem [#allocation7], %s7798_s13 }
 0x1ac   : > { %6044 = vmatprep.subr.bf16.mxu0 %v6590_v1  ;;  %v6617_v28 = vld [vmem:[#allocation2 + $0xa0] sm:$0xff]   ;;  %v6618_v29 = vld [vmem:[#allocation2 + $0xa8] sm:$0xff]   ;;  %v6620_v31 = vld [vmem:[#allocation2 + $0xb8] sm:$0xff]   ;;  %s7301_s26 = smov 64   ;;  %s7302_s5 = smov 32  }
 0x1ad   : > { %s7824_s2 = scalar_lea.vmem %s8642_s12, %s7810_s17  ;;  %v6621_v32 = vld [vmem:[#allocation2 + $0xc0] sm:$0xff]   ;;  %v6622_v33 = vld [vmem:[#allocation2 + $0xc8] sm:$0xff]   ;;  %v6623_v34 = vld [vmem:[#allocation2 + $0xd0] sm:$0xff]   ;;  %s1327_s17 = scalar_lea.vmem [#allocation9], %s7798_s13 }
 0x1ae   : > { %v6624_v35 = vld [vmem:[#allocation2 + $0xd8] sm:$0xff]   ;;  %v6625_v36 = vld [vmem:[#allocation2 + $0xe0] sm:$0xff]   ;;  %v6626_v37 = vld [vmem:[#allocation2 + $0xe8] sm:$0xff]   ;;  %s8646_s28 = sld [smem:[#allocation32_spill]] }
 0x1af   : > { %6045 = vmatpush3.bf16.msra.mxu0 %v6590_v1  ;;  %v6627_v38 = vld [vmem:[#allocation2 + $0xf0] sm:$0xff]   ;;  %v6628_v39 = vld [vmem:[#allocation2 + $0xf8] sm:$0xff]   ;;  %v6629_v40 = vld [vmem:[#allocation2 + $0x100] sm:$0xff]   ;;  %s1608_s1 = scalar_lea.vmem %s8644_s24, %s5734_s8  ;;  %s8647_s10 = sld [smem:[#allocation33_spill]] }
 0x1b0   : > { %6046 = vmatprep.subr.bf16.mxu0 %v6591_v2  ;;  %v6630_v41 = vld [vmem:[#allocation2 + $0x108] sm:$0xff]   ;;  %v6631_v42 = vld [vmem:[#allocation2 + $0x110] sm:$0xff]   ;;  %v6632_v43 = vld [vmem:[#allocation2 + $0x118] sm:$0xff]   ;;  %s1613_s16 = scalar_lea.vmem %s8645_s23, %s8209_s3  ;;  %s8648_s12 = sld [smem:[#allocation30_spill]] }
 0x1b1   : > { %v6633_v44 = vld [vmem:[#allocation2 + $0x120] sm:$0xff]   ;;  %v6634_v45 = vld [vmem:[#allocation2 + $0x128] sm:$0xff]   ;;  %v6635_v46 = vld [vmem:[#allocation2 + $0x130] sm:$0xff]   ;;  %s6431_s23 = smul.u32 40, %s7807_s30 }
 0x1b2   : > { %v6636_v47 = vld [vmem:[#allocation2 + $0x138] sm:$0xff]   ;;  %v6637_v48 = vld [vmem:[#allocation2 + $0x140] sm:$0xff]   ;;  %v6638_v49 = vld [vmem:[#allocation2 + $0x148] sm:$0xff]  }
 0x1b3   : > { %6047 = vmatpush3.bf16.msra.mxu0 %v6591_v2  ;;  %v6639_v50 = vld [vmem:[#allocation2 + $0x150] sm:$0xff]   ;;  %v6640_v51 = vld [vmem:[#allocation2 + $0x158] sm:$0xff]   ;;  %v6641_v52 = vld [vmem:[#allocation2 + $0x160] sm:$0xff]  }
 0x1b4   : > { %6048 = vmatprep.subr.bf16.mxu0 %v6592_v3  ;;  %v6642_v53 = vld [vmem:[#allocation2 + $0x168] sm:$0xff]   ;;  %v6643_v54 = vld [vmem:[#allocation2 + $0x170] sm:$0xff]   ;;  %v6644_v55 = vld [vmem:[#allocation2 + $0x178] sm:$0xff]   ;;  %s1628_s24 = scalar_lea.vmem %s8646_s28, %s8209_s3  ;;  %s1360_s28 = scalar_lea.vmem [#allocation13], %s7798_s13 }
 0x1b5   : > { %v6645_v56 = vld [vmem:[#allocation2 + $0x180] sm:$0xff]   ;;  %v6646_v57 = vld [vmem:[#allocation2 + $0x188] sm:$0xff]   ;;  %v6647_v58 = vld [vmem:[#allocation2 + $0x190] sm:$0xff]   ;;  %s1633_s8 = scalar_lea.vmem %s8647_s10, %s8209_s3  ;;  %s8649_s10 = sld [smem:[#allocation31_spill]] }
 0x1b6   : > { %v7827_v59 = vld [vmem:[%s8643_s18] sm:$0xff]  ;;  %v6648_v0 = vld [vmem:[#allocation2 + $0x198] sm:$0xff]  }
 0x1b7   : > { %6049 = vmatpush3.bf16.msra.mxu0 %v6592_v3  ;;  %v2933_v60 = vcombine.high %v7827_v59, %v7827_v59  ;;  %v6649_v1 = vld [vmem:[#allocation2 + $0x1a0] sm:$0xff]  }
 0x1b8   : > { %6050 = vmatprep.subr.bf16.mxu0 %v6593_v5 }
 0x1b9   : > { %3005 = vmatprep.mubr.f32.mxu1 %v2933_v60 }
 0x1bb   : > { %6051 = vmatpush3.bf16.msra.mxu0 %v6593_v5 }
 0x1bc   : > { %6052 = vmatprep.subr.bf16.mxu0 %v6594_v6 }
 0x1bf   : > { %6053 = vmatpush3.bf16.msra.mxu0 %v6594_v6  ;;  %v6650_v6 = vld [vmem:[#allocation2 + $0x1a8] sm:$0xff]  }
 0x1c0   : > { %6054 = vmatprep.subr.bf16.mxu0 %v6595_v7 }
 0x1c3   : > { %6055 = vmatpush3.bf16.msra.mxu0 %v6595_v7  ;;  %v6651_v7 = vld [vmem:[#allocation2 + $0x1b0] sm:$0xff]  }
 0x1c4   : > { %6056 = vmatprep.subr.bf16.mxu0 %v6596_v8 }
 0x1c7   : > { %6057 = vmatpush3.bf16.msra.mxu0 %v6596_v8 }
 0x1ca   : > { %6059 = vmatmul.mubr.bf16.vlgmr.msra.gmra.mxu0 %v6598_v9 }
 0x1cb   : > { %6062 = vmatprep.mubr.bf16.mxu0 %v6599_v10 }
 0x1d2   : > { %6063 = vmatmul.mubr.bf16.gmra.mxu0 %v6600_v11 }
 0x1d3   : > { %6066 = vmatprep.mubr.bf16.mxu0 %v6601_v12  ;;  %v6652_v12 = vld [vmem:[#allocation2 + $0x1b8] sm:$0xff]  }
 0x1da   : > { %6067 = vmatmul.mubr.bf16.gmra.mxu0 %v6602_v13  ;;  %v6653_v13 = vld [vmem:[#allocation2 + $0x1c0] sm:$0xff]  }
 0x1db   : > { %6070 = vmatprep.mubr.bf16.mxu0 %v6603_v14 }
 0x1e2   : > { %6071 = vmatmul.mubr.bf16.gmra.mxu0 %v6604_v15 }
 0x1e3   : > { %6074 = vmatprep.mubr.bf16.mxu0 %v6605_v16 }
 0x1ea   : > { %6075 = vmatmul.mubr.bf16.gmra.mxu0 %v6606_v17 }
 0x1eb   : > { %6078 = vmatprep.mubr.bf16.mxu0 %v6607_v18  ;;  %v6654_v18 = vld [vmem:[#allocation2 + $0x1c8] sm:$0xff]  }
 0x1f2   : > { %6079 = vmatmul.mubr.bf16.gmra.mxu0 %v6608_v19  ;;  %v6655_v19 = vld [vmem:[#allocation2 + $0x1d0] sm:$0xff]  }
 0x1f3   : > { %6082 = vmatprep.mubr.bf16.mxu0 %v6609_v20 }
 0x1fa   : > { %6083 = vmatmul.mubr.bf16.gmra.mxu0 %v6610_v21 }
 0x1fb   : > { %6086 = vmatprep.mubr.bf16.mxu0 %v6611_v22 }
 0x202   : > { %6087 = vmatmul.mubr.bf16.gmra.mxu0 %v6612_v23 }
 0x203   : > { %6090 = vmatprep.mubr.bf16.mxu0 %v6613_v24  ;;  %v6656_v24 = vld [vmem:[#allocation2 + $0x1d8] sm:$0xff]  }
 0x20a   : > { %6091 = vmatmul.mubr.bf16.gmra.mxu0 %v6614_v25  ;;  %v6657_v25 = vld [vmem:[#allocation2 + $0x1e0] sm:$0xff]  }
 0x20b   : > { %6094 = vmatprep.mubr.bf16.mxu0 %v6615_v26 }
 0x212   : > { %6095 = vmatmul.mubr.bf16.gmra.mxu0 %v6616_v27 }
 0x213   : > { %6098 = vmatprep.mubr.bf16.mxu0 %v6617_v28 }
 0x21a   : > { %6099 = vmatmul.mubr.bf16.gmra.mxu0 %v6618_v29 }
 0x21b   : > { %6102 = vmatprep.mubr.bf16.mxu0 %v6619_v30  ;;  %v6658_v30 = vld [vmem:[#allocation2 + $0x1e8] sm:$0xff]  }
 0x222   : > { %6103 = vmatmul.mubr.bf16.gmra.mxu0 %v6620_v31  ;;  %v6659_v31 = vld [vmem:[#allocation2 + $0x1f0] sm:$0xff]  }
 0x223   : > { %6106 = vmatprep.mubr.bf16.mxu0 %v6621_v32 }
 0x22a   : > { %6107 = vmatmul.mubr.bf16.gmra.mxu0 %v6622_v33 }
 0x22b   : > { %6110 = vmatprep.mubr.bf16.mxu0 %v6623_v34 }
 0x232   : > { %6111 = vmatmul.mubr.bf16.gmra.mxu0 %v6624_v35 }
 0x233   : > { %6114 = vmatprep.mubr.bf16.mxu0 %v6625_v36  ;;  %v6660_v36 = vld [vmem:[#allocation2 + $0x1f8] sm:$0xff]  }
 0x23a   : > { %6115 = vmatmul.mubr.bf16.gmra.mxu0 %v6626_v37 }
 0x23b   : > { %6118 = vmatprep.mubr.bf16.mxu0 %v6627_v38 }
 0x242   : > { %6119 = vmatmul.mubr.bf16.gmra.mxu0 %v6628_v39 }
 0x243   : > { %6122 = vmatprep.mubr.bf16.mxu0 %v6629_v40  ;;  %v7869_v40 = vld [vmem:[%s1303_s22] ss:$0 sm:$0xff]  ;;  %s1319_s22 = scalar_lea.vmem [#allocation8], %s7798_s13 }
 0x24a   : > { %6123 = vmatmul.mubr.bf16.gmra.mxu0 %v6630_v41 }
 0x24b   : > { %6126 = vmatprep.mubr.bf16.mxu0 %v6631_v42 }
 0x252   : > { %6127 = vmatmul.mubr.bf16.gmra.mxu0 %v6632_v43 }
 0x253   : > { %6130 = vmatprep.mubr.bf16.mxu0 %v6633_v44 }
 0x25a   : > { %6131 = vmatmul.mubr.bf16.gmra.mxu0 %v6634_v45 }
 0x25b   : > { %6134 = vmatprep.mubr.bf16.mxu0 %v6635_v46 }
 0x262   : > { %6135 = vmatmul.mubr.bf16.gmra.mxu0 %v6636_v47 }
 0x263   : > { %6138 = vmatprep.mubr.bf16.mxu0 %v6637_v48 }
 0x26a   : > { %6139 = vmatmul.mubr.bf16.gmra.mxu0 %v6638_v49 }
 0x26b   : > { %6142 = vmatprep.mubr.bf16.mxu0 %v6639_v50 }
 0x272   : > { %6143 = vmatmul.mubr.bf16.gmra.mxu0 %v6640_v51 }
 0x273   : > { %6146 = vmatprep.mubr.bf16.mxu0 %v6641_v52 }
 0x27a   : > { %6147 = vmatmul.mubr.bf16.gmra.mxu0 %v6642_v53 }
 0x27b   : > { %6150 = vmatprep.mubr.bf16.mxu0 %v6643_v54 }
 0x282   : > { %6151 = vmatmul.mubr.bf16.gmra.mxu0 %v6644_v55 }
 0x283   : > { %6154 = vmatprep.mubr.bf16.mxu0 %v6645_v56 }
 0x28a   : > { %v7831_v61 = vpop.f32.mrf.mxu0  ;;  %6155 = vmatmul.mubr.bf16.gmra.mxu0 %v6646_v57 }
 0x28b   : > { %6158 = vmatprep.mubr.bf16.mxu0 %v6647_v58 }
 0x28c   : > { %v7833_v62 = vpop.f32.mrf.mxu0 }
 0x28e   : > { %v7835_v63 = vpop.f32.mrf.mxu0 }
 0x290   : > { %v7837_v2 = vpop.f32.mrf.mxu0 }
 0x292   : > { %v7839_v3 = vpop.f32.mrf.mxu0  ;;  %6159 = vmatmul.mubr.bf16.gmra.mxu0 %v6648_v0 }
 0x293   : > { %6162 = vmatprep.mubr.bf16.mxu0 %v6649_v1 }
 0x294   : > { %v7841_v4 = vpop.f32.mrf.mxu0 }
 0x296   : > { %v7843_v5 = vpop.f32.mrf.mxu0 }
 0x298   : > { %v7845_v8 = vpop.f32.mrf.mxu0 }
 0x29a   : > { %v7847_v9 = vpop.f32.mrf.mxu0  ;;  %6163 = vmatmul.mubr.bf16.gmra.mxu0 %v6650_v6 }
 0x29b   : > { %6166 = vmatprep.mubr.bf16.mxu0 %v6651_v7 }
 0x29c   : > { %v7849_v10 = vpop.f32.mrf.mxu0 }
 0x29e   : > { %v6069_v11 = vpop.f32.mrf.mxu0 }
 0x29f   : > { %v2330_v60 = vadd.f32 %v6069_v11, %v7869_v40 }
 0x2a0   : > { %v7851_v14 = vpop.f32.mrf.mxu0 }
 0x2a1   : > { %v2808_v11 = vmax.f32 %v2330_v60, 0.0  ;;  %v2287_v60 = vadd.f32 %v7869_v40, %v7833_v62 }
 0x2a2   : > { %v6072_v15 = vpop.f32.mrf.mxu0  ;;  %6167 = vmatmul.mubr.bf16.gmra.mxu0 %v6652_v12  ;;  %v2327_v12 = vadd.f32 %v7847_v9, %v7869_v40 }
 0x2a3   : > { %6170 = vmatprep.mubr.bf16.mxu0 %v6653_v13  ;;  %v2343_v45 = vadd.f32 %v6072_v15, %v7869_v40 }
 0x2a4   : > { %v2334_v16 = vpop.f32.mrf.mxu0  ;;  %v2807_v9 = vmax.f32 %v2327_v12, 0.0 }
 0x2a5   : > { %v2811_v54 = vmax.f32 %v2343_v45, 0.0  ;;  %v2335_v55 = vadd.f32 %v7869_v40, %v2334_v16  ;;  %v2303_v45 = vadd.f32 %v7869_v40, %v7841_v4  ;;  %v2295_v4 = vadd.f32 %v7831_v61, %v7869_v40 }
 0x2a6   : > { %v6073_v17 = vpop.f32.mrf.mxu0 }
 0x2a7   : > { %v2346_v41 = vadd.f32 %v6073_v17, %v7869_v40  ;;  %v2809_v13 = vmax.f32 %v2335_v55, 0.0  ;;  %v2290_v55 = vadd.f32 %v7869_v40, %v7837_v2 }
 0x2a8   : > { %v2337_v20 = vpop.f32.mrf.mxu0 }
 0x2a9   : > { %v2812_v49 = vmax.f32 %v2346_v41, 0.0  ;;  %v2338_v50 = vadd.f32 %v7869_v40, %v2337_v20 }
 0x2aa   : > { %v7853_v21 = vpop.f32.mrf.mxu0  ;;  %6171 = vmatmul.mubr.bf16.gmra.mxu0 %v6654_v18  ;;  %v2322_v18 = vadd.f32 %v7869_v40, %v7851_v14  ;;  %v2314_v14 = vadd.f32 %v7843_v5, %v7869_v40 }
 0x2ab   : > { %6174 = vmatprep.mubr.bf16.mxu0 %v6655_v19  ;;  %v2810_v0 = vmax.f32 %v2338_v50, 0.0 }
 0x2ac   : > { %v7855_v22 = vpop.f32.mrf.mxu0  ;;  %v2804_v41 = vmax.f32 %v2314_v14, 0.0 }
 0x2ad   : > { %v2351_v61 = vadd.f32 %v7869_v40, %v7855_v22 }
 0x2ae   : > { %v7857_v23 = vpop.f32.mrf.mxu0 }
 0x2af   : > { %v2813_v2 = vmax.f32 %v2351_v61, 0.0 }
 0x2b0   : > { %v7859_v26 = vpop.f32.mrf.mxu0 }
 0x2b2   : > { %v7861_v27 = vpop.f32.mrf.mxu0  ;;  %6175 = vmatmul.mubr.bf16.gmra.mxu0 %v6656_v24 }
 0x2b3   : > { %6178 = vmatprep.mubr.bf16.mxu0 %v6657_v25  ;;  %v2319_v25 = vadd.f32 %v7869_v40, %v7849_v10  ;;  %v2311_v10 = vadd.f32 %v7839_v3, %v7869_v40 }
 0x2b4   : > { %v7863_v28 = vpop.f32.mrf.mxu0 }
 0x2b5   : > { %v2367_v3 = vadd.f32 %v7869_v40, %v7863_v28  ;;  %v2359_v28 = vadd.f32 %v7853_v21, %v7869_v40 }
 0x2b6   : > { %v6081_v29 = vpop.f32.mrf.mxu0 }
 0x2b7   : > { %v2817_v50 = vmax.f32 %v2367_v3, 0.0 }
 0x2b8   : > { %v7865_v32 = vpop.f32.mrf.mxu0 }
 0x2b9   : > { %v2370_v5 = vadd.f32 %v7869_v40, %v7865_v32  ;;  %v2362_v32 = vadd.f32 %v7857_v23, %v7869_v40 }
 0x2ba   : > { %v6084_v33 = vpop.f32.mrf.mxu0  ;;  %6179 = vmatmul.mubr.bf16.gmra.mxu0 %v6658_v30 }
 0x2bb   : > { %6182 = vmatprep.mubr.bf16.mxu0 %v6659_v31  ;;  %v2391_v6 = vadd.f32 %v6084_v33, %v7869_v40  ;;  %v2378_v31 = vadd.f32 %v6081_v29, %v7869_v40  ;;  %v2816_v23 = vmax.f32 %v2362_v32, 0.0 }
 0x2bc   : > { %v2382_v34 = vpop.f32.mrf.mxu0 }
 0x2bd   : > { %v2823_v20 = vmax.f32 %v2391_v6, 0.0  ;;  %v2383_v24 = vadd.f32 %v7869_v40, %v2382_v34  ;;  %v2375_v34 = vadd.f32 %v7861_v27, %v7869_v40  ;;  %v2820_v29 = vmax.f32 %v2378_v31, 0.0 }
 0x2be   : > { %v6085_v35 = vpop.f32.mrf.mxu0 }
 0x2bf   : > { %v2394_v57 = vadd.f32 %v6085_v35, %v7869_v40  ;;  %v2806_v35 = vmax.f32 %v2322_v18, 0.0  ;;  %v2819_v27 = vmax.f32 %v2375_v34, 0.0 }
 0x2c0   : > { %v2385_v37 = vpop.f32.mrf.mxu0 }
 0x2c1   : > { %v2824_v16 = vmax.f32 %v2394_v57, 0.0  ;;  %v2386_v17 = vadd.f32 %v7869_v40, %v2385_v37  ;;  %v2821_v37 = vmax.f32 %v2383_v24, 0.0  ;;  %v2815_v57 = vmax.f32 %v2359_v28, 0.0 }
 0x2c2   : > { %v6088_v38 = vpop.f32.mrf.mxu0  ;;  %6183 = vmatmul.mubr.bf16.gmra.mxu0 %v6660_v36 }
 0x2c3   : > { %v2407_v43 = vadd.f32 %v6088_v38, %v7869_v40  ;;  %v2822_v33 = vmax.f32 %v2386_v17, 0.0  ;;  %v2805_v38 = vmax.f32 %v2319_v25, 0.0 }
 0x2c4   : > { %v2398_v39 = vpop.f32.mrf.mxu0 }
 0x2c5   : > { %v2827_v52 = vmax.f32 %v2407_v43, 0.0  ;;  %v2399_v53 = vadd.f32 %v7869_v40, %v2398_v39 }
 0x2c6   : > { %v6089_v42 = vpop.f32.mrf.mxu0 }
 0x2c7   : > { %v2410_v44 = vadd.f32 %v6089_v42, %v7869_v40  ;;  %v2825_v7 = vmax.f32 %v2399_v53, 0.0  ;;  %v2306_v42 = vadd.f32 %v7869_v40, %v7845_v8  ;;  %v2298_v8 = vadd.f32 %v7835_v63, %v7869_v40 }
 0x2c8   : > { %v2401_v46 = vpop.f32.mrf.mxu0  ;;  %v2354_v63 = vadd.f32 %v7869_v40, %v7859_v26  ;;  %v7946_v26 = vld [vmem:[%s8643_s18 + $0x8] sm:$0xff] }
 0x2c9   : > { %v2402_v47 = vadd.f32 %v7869_v40, %v2401_v46  ;;  %v2828_v48 = vmax.f32 %v2410_v44, 0.0  ;;  %v2803_v44 = vmax.f32 %v2311_v10, 0.0  ;;  %v2934_v22 = vcombine.high %v7946_v26, %v7946_v26 }
 0x2ca   : > { %v7877_v51 = vpop.f32.mrf.mxu0  ;;  %v2814_v6 = vmax.f32 %v2354_v63, 0.0 }
 0x2cb   : > { %5813 = vmatprep.subr.mxu1 %v2828_v48  ;;  %v2826_v58 = vmax.f32 %v2402_v47, 0.0  ;;  %v2818_v47 = vmax.f32 %v2370_v5, 0.0  ;;  %v2802_v48 = vmax.f32 %v2306_v42, 0.0 }
 0x2cc   : > { %v7881_v56 = vpop.f32.mrf.mxu0  ;;  %5814 = vmatpush3.msra.mxu1 %v2812_v49 }
 0x2cd   : > { %5815 = vmatprep.subr.mxu1 %v2827_v52  ;;  %v2801_v52 = vmax.f32 %v2303_v45, 0.0 }
 0x2ce   : > { %v7885_v1 = vpop.f32.mrf.mxu0  ;;  %5816 = vmatpush3.msra.mxu1 %v2811_v54  ;;  %v2800_v54 = vmax.f32 %v2298_v8, 0.0 }
 0x2cf   : > { %5817 = vmatprep.subr.mxu1 %v2826_v58  ;;  %v2799_v58 = vmax.f32 %v2295_v4, 0.0 }
 0x2d0   : > { %v7890_v15 = vpop.f32.mrf.mxu0  ;;  %5818 = vmatpush3.msra.mxu1 %v2810_v0 }
 0x2d1   : > { %5819 = vmatprep.subr.mxu1 %v2825_v7  ;;  %v2798_v7 = vmax.f32 %v2290_v55, 0.0 }
 0x2d2   : > { %v7895_v19 = vpop.f32.mrf.mxu0  ;;  %5820 = vmatpush3.msra.mxu1 %v2809_v13  ;;  %v2797_v13 = vmax.f32 %v2287_v60, 0.0 }
 0x2d3   : > { %5821 = vmatprep.subr.mxu1 %v2824_v16 }
 0x2d4   : > { %v7900_v30 = vpop.f32.mrf.mxu0  ;;  %5822 = vmatpush3.msra.mxu1 %v2808_v11 }
 0x2d5   : > { %5823 = vmatprep.subr.mxu1 %v2823_v20 }
 0x2d6   : > { %v7905_v36 = vpop.f32.mrf.mxu0  ;;  %5824 = vmatpush3.msra.mxu1 %v2807_v9 }
 0x2d7   : > { %5825 = vmatprep.subr.mxu1 %v2822_v33 }
 0x2d8   : > { %v7911_v39 = vpop.f32.mrf.mxu0  ;;  %5826 = vmatpush3.msra.mxu1 %v2806_v35 }
 0x2d9   : > { %5827 = vmatprep.subr.mxu1 %v2821_v37 }
 0x2da   : > { %v7917_v43 = vpop.f32.mrf.mxu0  ;;  %5828 = vmatpush3.msra.mxu1 %v2805_v38 }
 0x2db   : > { %5829 = vmatprep.subr.mxu1 %v2820_v29 }
 0x2dc   : > { %v7923_v46 = vpop.f32.mrf.mxu0  ;;  %5830 = vmatpush3.msra.mxu1 %v2804_v41 }
 0x2dd   : > { %5831 = vmatprep.subr.mxu1 %v2819_v27 }
 0x2de   : > { %v7929_v49 = vpop.f32.mrf.mxu0  ;;  %5832 = vmatpush3.msra.mxu1 %v2803_v44 }
 0x2df   : > { %5833 = vmatprep.subr.mxu1 %v2818_v47 }
 0x2e0   : > { %v7935_v53 = vpop.f32.mrf.mxu0  ;;  %5834 = vmatpush3.msra.mxu1 %v2802_v48 }
 0x2e1   : > { %5835 = vmatprep.subr.mxu1 %v2817_v50 }
 0x2e2   : > { %v6104_v21 = vpop.f32.mrf.mxu0  ;;  %5836 = vmatpush3.msra.mxu1 %v2801_v52  ;;  %v2458_v52 = vadd.f32 %v7929_v49, %v7869_v40 }
 0x2e3   : > { %5837 = vmatprep.subr.mxu1 %v2816_v23  ;;  %v2471_v5 = vadd.f32 %v6104_v21, %v7869_v40  ;;  %v2455_v21 = vadd.f32 %v7917_v43, %v7869_v40 }
 0x2e4   : > { %v2462_v0 = vpop.f32.mrf.mxu0  ;;  %5838 = vmatpush3.msra.mxu1 %v2800_v54  ;;  %v2840_v49 = vmax.f32 %v2458_v52, 0.0  ;;  %v2415_v52 = vadd.f32 %v7869_v40, %v7881_v56 }
 0x2e5   : > { %5839 = vmatprep.subr.mxu1 %v2815_v57  ;;  %v2843_v8 = vmax.f32 %v2471_v5, 0.0  ;;  %v2463_v48 = vadd.f32 %v7869_v40, %v2462_v0  ;;  %v2450_v0 = vadd.f32 %v7869_v40, %v7935_v53  ;;  %v2839_v43 = vmax.f32 %v2455_v21, 0.0 }
 0x2e6   : > { %v6105_v12 = vpop.f32.mrf.mxu0  ;;  %5840 = vmatpush3.msra.mxu1 %v2799_v58  ;;  %v2442_v53 = vadd.f32 %v7905_v36, %v7869_v40  ;;  %v2431_v5 = vadd.f32 %v7869_v40, %v7900_v30  ;;  %v2423_v30 = vadd.f32 %v7877_v51, %v7869_v40 }
 0x2e7   : > { %5841 = vmatprep.subr.mxu1 %v2814_v6  ;;  %v2474_v37 = vadd.f32 %v6105_v12, %v7869_v40  ;;  %v2841_v57 = vmax.f32 %v2463_v48, 0.0  ;;  %v2418_v48 = vadd.f32 %v7869_v40, %v7890_v15 }
 0x2e8   : > { %v2465_v16 = vpop.f32.mrf.mxu0  ;;  %5842 = vmatpush3.msra.mxu1 %v2798_v7 }
 0x2e9   : > { %5843 = vmatprep.subr.mxu1 %v2813_v2  ;;  %v2844_v3 = vmax.f32 %v2474_v37, 0.0  ;;  %v2466_v44 = vadd.f32 %v7869_v40, %v2465_v16  ;;  %v2447_v2 = vadd.f32 %v7869_v40, %v7923_v46  ;;  %v2439_v46 = vadd.f32 %v7895_v19, %v7869_v40 }
 0x2ea   : > { %v7950_v17 = vpop.f32.mrf.mxu0  ;;  %5844 = vmatpush3.msra.mxu1 %v2797_v13  ;;  %v2836_v37 = vmax.f32 %v2442_v53, 0.0 }
 0x2eb   : > { %3006 = vmatmul.mubr.f32.vlgmr.msra.gmra.mxu1 %v7827_v59  ;;  %v2842_v23 = vmax.f32 %v2466_v44, 0.0 }
 0x2ec   : > { %v7953_v62 = vpop.f32.mrf.mxu0  ;;  %3075 = vmatprep.mubr.f32.mxu1 %v2934_v22 }
 0x2ed   : > { %v2479_v51 = vadd.f32 %v7869_v40, %v7953_v62 }
 0x2ee   : > { %v7955_v11 = vpop.f32.mrf.mxu0 }
 0x2ef   : > { %v2845_v15 = vmax.f32 %v2479_v51, 0.0 }
 0x2f0   : > { %v7957_v18 = vpop.f32.mrf.mxu0 }
 0x2f2   : > { %v7959_v20 = vpop.f32.mrf.mxu0 }
 0x2f4   : > { %v7961_v24 = vpop.f32.mrf.mxu0 }
 0x2f5   : > { %v2495_v19 = vadd.f32 %v7869_v40, %v7961_v24  ;;  %v2487_v24 = vadd.f32 %v7950_v17, %v7869_v40 }
 0x2f6   : > { %v6113_v9 = vpop.f32.mrf.mxu0 }
 0x2f7   : > { %v2506_v16 = vadd.f32 %v6113_v9, %v7869_v40  ;;  %v2849_v44 = vmax.f32 %v2495_v19, 0.0 }
 0x2f8   : > { %v7963_v25 = vpop.f32.mrf.mxu0 }
 0x2f9   : > { %v2852_v9 = vmax.f32 %v2506_v16, 0.0  ;;  %v2498_v36 = vadd.f32 %v7869_v40, %v7963_v25  ;;  %v2490_v25 = vadd.f32 %v7955_v11, %v7869_v40 }
 0x2fa   : > { %v6116_v31 = vpop.f32.mrf.mxu0 }
 0x2fb   : > { %v2519_v54 = vadd.f32 %v6116_v31, %v7869_v40  ;;  %v2838_v31 = vmax.f32 %v2450_v0, 0.0  ;;  %v2848_v11 = vmax.f32 %v2490_v25, 0.0 }
 0x2fc   : > { %v2510_v33 = vpop.f32.mrf.mxu0 }
 0x2fd   : > { %v2855_v7 = vmax.f32 %v2519_v54, 0.0  ;;  %v2511_v12 = vadd.f32 %v7869_v40, %v2510_v33  ;;  %v2503_v33 = vadd.f32 %v7959_v20, %v7869_v40 }
 0x2fe   : > { %v6117_v14 = vpop.f32.mrf.mxu0 }
 0x2ff   : > { %v2522_v50 = vadd.f32 %v6117_v14, %v7869_v40  ;;  %v2851_v20 = vmax.f32 %v2503_v33, 0.0 }
 0x300   : > { %v2513_v35 = vpop.f32.mrf.mxu0 }
 0x301   : > { %v2856_v58 = vmax.f32 %v2522_v50, 0.0  ;;  %v2514_v60 = vadd.f32 %v7869_v40, %v2513_v35  ;;  %v2853_v35 = vmax.f32 %v2511_v12, 0.0  ;;  %v2847_v50 = vmax.f32 %v2487_v24, 0.0 }
 0x302   : > { %v6120_v34 = vpop.f32.mrf.mxu0 }
 0x303   : > { %v2535_v38 = vadd.f32 %v6120_v34, %v7869_v40  ;;  %v2854_v22 = vmax.f32 %v2514_v60, 0.0  ;;  %v2837_v34 = vmax.f32 %v2447_v2, 0.0 }
 0x304   : > { %v2526_v59 = vpop.f32.mrf.mxu0 }
 0x305   : > { %v2859_v32 = vmax.f32 %v2535_v38, 0.0  ;;  %v2527_v47 = vadd.f32 %v7869_v40, %v2526_v59 }
 0x306   : > { %v6121_v10 = vpop.f32.mrf.mxu0 }
 0x307   : > { %v2538_v29 = vadd.f32 %v6121_v10, %v7869_v40  ;;  %v2857_v55 = vmax.f32 %v2527_v47, 0.0  ;;  %v2434_v10 = vadd.f32 %v7869_v40, %v7911_v39  ;;  %v2426_v39 = vadd.f32 %v7885_v1, %v7869_v40 }
 0x308   : > { %v2529_v41 = vpop.f32.mrf.mxu0  ;;  %v2482_v1 = vadd.f32 %v7869_v40, %v7957_v18  ;;  %v8041_v18 = vld [vmem:[%s8643_s18 + $0x10] sm:$0xff] }
 0x309   : > { %v2860_v42 = vmax.f32 %v2538_v29, 0.0  ;;  %v2530_v27 = vadd.f32 %v7869_v40, %v2529_v41  ;;  %v2835_v29 = vmax.f32 %v2439_v46, 0.0  ;;  %v2935_v62 = vcombine.high %v8041_v18, %v8041_v18 }
 0x30a   : > { %v7971_v45 = vpop.f32.mrf.mxu0  ;;  %v2846_v54 = vmax.f32 %v2482_v1, 0.0 }
 0x30b   : > { %5848 = vmatprep.subr.mxu1 %v2860_v42  ;;  %v2858_v4 = vmax.f32 %v2530_v27, 0.0  ;;  %v2850_v42 = vmax.f32 %v2498_v36, 0.0  ;;  %v2834_v27 = vmax.f32 %v2434_v10, 0.0 }
 0x30c   : > { %v7975_v28 = vpop.f32.mrf.mxu0  ;;  %5849 = vmatpush3.msra.mxu1 %v2844_v3 }
 0x30d   : > { %5850 = vmatprep.subr.mxu1 %v2859_v32  ;;  %v2833_v32 = vmax.f32 %v2431_v5, 0.0 }
 0x30e   : > { %v7980_v63 = vpop.f32.mrf.mxu0  ;;  %5851 = vmatpush3.msra.mxu1 %v2843_v8  ;;  %v2832_v8 = vmax.f32 %v2426_v39, 0.0 }
 0x30f   : > { %5852 = vmatprep.subr.mxu1 %v2858_v4  ;;  %v2831_v4 = vmax.f32 %v2423_v30, 0.0 }
 0x310   : > { %v7985_v61 = vpop.f32.mrf.mxu0  ;;  %5853 = vmatpush3.msra.mxu1 %v2842_v23 }
 0x311   : > { %5854 = vmatprep.subr.mxu1 %v2857_v55  ;;  %v2830_v55 = vmax.f32 %v2418_v48, 0.0 }
 0x312   : > { %v7990_v6 = vpop.f32.mrf.mxu0  ;;  %5855 = vmatpush3.msra.mxu1 %v2841_v57  ;;  %v2829_v57 = vmax.f32 %v2415_v52, 0.0 }
 0x313   : > { %5856 = vmatprep.subr.mxu1 %v2856_v58 }
 0x314   : > { %v7995_v13 = vpop.f32.mrf.mxu0  ;;  %5857 = vmatpush3.msra.mxu1 %v2840_v49 }
 0x315   : > { %5858 = vmatprep.subr.mxu1 %v2855_v7 }
 0x316   : > { %v8000_v14 = vpop.f32.mrf.mxu0  ;;  %5859 = vmatpush3.msra.mxu1 %v2839_v43 }
 0x317   : > { %5860 = vmatprep.subr.mxu1 %v2854_v22 }
 0x318   : > { %v8006_v59 = vpop.f32.mrf.mxu0  ;;  %5861 = vmatpush3.msra.mxu1 %v2838_v31 }
 0x319   : > { %5862 = vmatprep.subr.mxu1 %v2853_v35 }
 0x31a   : > { %v8012_v38 = vpop.f32.mrf.mxu0  ;;  %5863 = vmatpush3.msra.mxu1 %v2837_v34 }
 0x31b   : > { %5864 = vmatprep.subr.mxu1 %v2852_v9 }
 0x31c   : > { %v8018_v41 = vpop.f32.mrf.mxu0  ;;  %5865 = vmatpush3.msra.mxu1 %v2836_v37 }
 0x31d   : > { %5866 = vmatprep.subr.mxu1 %v2851_v20 }
 0x31e   : > { %v8024_v3 = vpop.f32.mrf.mxu0  ;;  %5867 = vmatpush3.msra.mxu1 %v2835_v29 }
 0x31f   : > { %5868 = vmatprep.subr.mxu1 %v2850_v42 }
 0x320   : > { %v8030_v47 = vpop.f32.mrf.mxu0  ;;  %5869 = vmatpush3.msra.mxu1 %v2834_v27 }
 0x321   : > { %5870 = vmatprep.subr.mxu1 %v2849_v44 }
 0x322   : > { %v6136_v17 = vpop.f32.mrf.mxu0  ;;  %5871 = vmatpush3.msra.mxu1 %v2833_v32  ;;  %v2586_v32 = vadd.f32 %v8024_v3, %v7869_v40 }
 0x323   : > { %5872 = vmatprep.subr.mxu1 %v2848_v11  ;;  %v2599_v36 = vadd.f32 %v6136_v17, %v7869_v40  ;;  %v2583_v17 = vadd.f32 %v8012_v38, %v7869_v40 }
 0x324   : > { %v2590_v23 = vpop.f32.mrf.mxu0  ;;  %5873 = vmatpush3.msra.mxu1 %v2832_v8  ;;  %v2872_v3 = vmax.f32 %v2586_v32, 0.0  ;;  %v2543_v32 = vadd.f32 %v7869_v40, %v7975_v28 }
 0x325   : > { %5874 = vmatprep.subr.mxu1 %v2847_v50  ;;  %v2875_v39 = vmax.f32 %v2599_v36, 0.0  ;;  %v2591_v27 = vadd.f32 %v7869_v40, %v2590_v23  ;;  %v2578_v23 = vadd.f32 %v7869_v40, %v8030_v47  ;;  %v2871_v38 = vmax.f32 %v2583_v17, 0.0 }
 0x326   : > { %v6137_v21 = vpop.f32.mrf.mxu0  ;;  %5875 = vmatpush3.msra.mxu1 %v2831_v4  ;;  %v2570_v47 = vadd.f32 %v8000_v14, %v7869_v40  ;;  %v2559_v36 = vadd.f32 %v7869_v40, %v7995_v13  ;;  %v2551_v13 = vadd.f32 %v7971_v45, %v7869_v40 }
 0x327   : > { %5876 = vmatprep.subr.mxu1 %v2846_v54  ;;  %v2602_v35 = vadd.f32 %v6137_v21, %v7869_v40  ;;  %v2873_v50 = vmax.f32 %v2591_v27, 0.0  ;;  %v2546_v27 = vadd.f32 %v7869_v40, %v7985_v61 }
 0x328   : > { %v2593_v58 = vpop.f32.mrf.mxu0  ;;  %5877 = vmatpush3.msra.mxu1 %v2830_v55 }
 0x329   : > { %5878 = vmatprep.subr.mxu1 %v2845_v15  ;;  %v2876_v19 = vmax.f32 %v2602_v35, 0.0  ;;  %v2594_v29 = vadd.f32 %v7869_v40, %v2593_v58  ;;  %v2575_v15 = vadd.f32 %v7869_v40, %v8018_v41  ;;  %v2567_v41 = vadd.f32 %v7990_v6, %v7869_v40 }
 0x32a   : > { %v8045_v60 = vpop.f32.mrf.mxu0  ;;  %5879 = vmatpush3.msra.mxu1 %v2829_v57  ;;  %v2868_v35 = vmax.f32 %v2570_v47, 0.0 }
 0x32b   : > { %3076 = vmatmul.mubr.f32.vlgmr.msra.gmra.mxu1 %v7946_v26  ;;  %v2874_v11 = vmax.f32 %v2594_v29, 0.0 }
 0x32c   : > { %v8048_v56 = vpop.f32.mrf.mxu0  ;;  %3145 = vmatprep.mubr.f32.mxu1 %v2935_v62 }
 0x32d   : > { %v2607_v45 = vadd.f32 %v7869_v40, %v8048_v56 }
 0x32e   : > { %v8050_v49 = vpop.f32.mrf.mxu0 }
 0x32f   : > { %v2877_v61 = vmax.f32 %v2607_v45, 0.0 }
 0x330   : > { %v8052_v0 = vpop.f32.mrf.mxu0 }
 0x332   : > { %v8054_v7 = vpop.f32.mrf.mxu0 }
 0x334   : > { %v8056_v12 = vpop.f32.mrf.mxu0 }
 0x335   : > { %v2623_v6 = vadd.f32 %v7869_v40, %v8056_v12  ;;  %v2615_v12 = vadd.f32 %v8045_v60, %v7869_v40 }
 0x336   : > { %v6145_v43 = vpop.f32.mrf.mxu0 }
 0x337   : > { %v2634_v58 = vadd.f32 %v6145_v43, %v7869_v40  ;;  %v2881_v29 = vmax.f32 %v2623_v6, 0.0 }
 0x338   : > { %v8058_v2 = vpop.f32.mrf.mxu0 }
 0x339   : > { %v2884_v43 = vmax.f32 %v2634_v58, 0.0  ;;  %v2626_v14 = vadd.f32 %v7869_v40, %v8058_v2  ;;  %v2618_v2 = vadd.f32 %v8050_v49, %v7869_v40 }
 0x33a   : > { %v6148_v16 = vpop.f32.mrf.mxu0 }
 0x33b   : > { %v2647_v8 = vadd.f32 %v6148_v16, %v7869_v40  ;;  %v2870_v16 = vmax.f32 %v2578_v23, 0.0  ;;  %v2880_v49 = vmax.f32 %v2618_v2, 0.0 }
 0x33c   : > { %v2638_v22 = vpop.f32.mrf.mxu0 }
 0x33d   : > { %v2887_v55 = vmax.f32 %v2647_v8, 0.0  ;;  %v2639_v21 = vadd.f32 %v7869_v40, %v2638_v22  ;;  %v2631_v22 = vadd.f32 %v8054_v7, %v7869_v40 }
 0x33e   : > { %v6149_v53 = vpop.f32.mrf.mxu0 }
 0x33f   : > { %v2650_v44 = vadd.f32 %v6149_v53, %v7869_v40  ;;  %v2883_v7 = vmax.f32 %v2631_v22, 0.0 }
 0x340   : > { %v2641_v31 = vpop.f32.mrf.mxu0 }
 0x341   : > { %v2888_v4 = vmax.f32 %v2650_v44, 0.0  ;;  %v2642_v52 = vadd.f32 %v7869_v40, %v2641_v31  ;;  %v2885_v31 = vmax.f32 %v2639_v21, 0.0  ;;  %v2879_v44 = vmax.f32 %v2615_v12, 0.0 }
 0x342   : > { %v6152_v33 = vpop.f32.mrf.mxu0 }
 0x343   : > { %v2663_v34 = vadd.f32 %v6152_v33, %v7869_v40  ;;  %v2886_v62 = vmax.f32 %v2642_v52, 0.0  ;;  %v2869_v33 = vmax.f32 %v2575_v15, 0.0 }
 0x344   : > { %v2654_v26 = vpop.f32.mrf.mxu0 }
 0x345   : > { %v2891_v25 = vmax.f32 %v2663_v34, 0.0  ;;  %v2655_v42 = vadd.f32 %v7869_v40, %v2654_v26 }
 0x346   : > { %v6153_v46 = vpop.f32.mrf.mxu0 }
 0x347   : > { %v2666_v9 = vadd.f32 %v6153_v46, %v7869_v40  ;;  %v2889_v48 = vmax.f32 %v2655_v42, 0.0  ;;  %v2562_v46 = vadd.f32 %v7869_v40, %v8006_v59  ;;  %v2554_v59 = vadd.f32 %v7980_v63, %v7869_v40 }
 0x348   : > { %v2657_v37 = vpop.f32.mrf.mxu0  ;;  %v2610_v63 = vadd.f32 %v7869_v40, %v8052_v0  ;;  %v8136_v0 = vld [vmem:[%s8643_s18 + $0x18] sm:$0xff] }
 0x349   : > { %v2892_v10 = vmax.f32 %v2666_v9, 0.0  ;;  %v2658_v20 = vadd.f32 %v7869_v40, %v2657_v37  ;;  %v2867_v9 = vmax.f32 %v2567_v41, 0.0  ;;  %v2936_v56 = vcombine.high %v8136_v0, %v8136_v0 }
 0x34a   : > { %v8066_v5 = vpop.f32.mrf.mxu0  ;;  %v2878_v8 = vmax.f32 %v2610_v63, 0.0 }
 0x34b   : > { %5883 = vmatprep.subr.mxu1 %v2892_v10  ;;  %v2890_v30 = vmax.f32 %v2658_v20, 0.0  ;;  %v2882_v10 = vmax.f32 %v2626_v14, 0.0  ;;  %v2866_v20 = vmax.f32 %v2562_v46, 0.0 }
 0x34c   : > { %v8070_v24 = vpop.f32.mrf.mxu0  ;;  %5884 = vmatpush3.msra.mxu1 %v2876_v19 }
 0x34d   : > { %5885 = vmatprep.subr.mxu1 %v2891_v25  ;;  %v2865_v25 = vmax.f32 %v2559_v36, 0.0 }
 0x34e   : > { %v8075_v1 = vpop.f32.mrf.mxu0  ;;  %5886 = vmatpush3.msra.mxu1 %v2875_v39  ;;  %v2864_v39 = vmax.f32 %v2554_v59, 0.0 }
 0x34f   : > { %5887 = vmatprep.subr.mxu1 %v2890_v30  ;;  %v2863_v30 = vmax.f32 %v2551_v13, 0.0 }
 0x350   : > { %v8080_v51 = vpop.f32.mrf.mxu0  ;;  %5888 = vmatpush3.msra.mxu1 %v2874_v11 }
 0x351   : > { %5889 = vmatprep.subr.mxu1 %v2889_v48  ;;  %v2862_v48 = vmax.f32 %v2546_v27, 0.0 }
 0x352   : > { %v8085_v54 = vpop.f32.mrf.mxu0  ;;  %5890 = vmatpush3.msra.mxu1 %v2873_v50  ;;  %v2861_v50 = vmax.f32 %v2543_v32, 0.0 }
 0x353   : > { %5891 = vmatprep.subr.mxu1 %v2888_v4 }
 0x354   : > { %v8090_v57 = vpop.f32.mrf.mxu0  ;;  %5892 = vmatpush3.msra.mxu1 %v2872_v3 }
 0x355   : > { %5893 = vmatprep.subr.mxu1 %v2887_v55 }
 0x356   : > { %v8095_v53 = vpop.f32.mrf.mxu0  ;;  %5894 = vmatpush3.msra.mxu1 %v2871_v38 }
 0x357   : > { %5895 = vmatprep.subr.mxu1 %v2886_v62 }
 0x358   : > { %v8101_v26 = vpop.f32.mrf.mxu0  ;;  %5896 = vmatpush3.msra.mxu1 %v2870_v16 }
 0x359   : > { %5897 = vmatprep.subr.mxu1 %v2885_v31 }
 0x35a   : > { %v8107_v34 = vpop.f32.mrf.mxu0  ;;  %5898 = vmatpush3.msra.mxu1 %v2869_v33 }
 0x35b   : > { %5899 = vmatprep.subr.mxu1 %v2884_v43  ;;  %v2711_v63 = vadd.f32 %v8107_v34, %v7869_v40 }
 0x35c   : > { %v8113_v37 = vpop.f32.mrf.mxu0  ;;  %5900 = vmatpush3.msra.mxu1 %v2868_v35 }
 0x35d   : > { %5901 = vmatprep.subr.mxu1 %v2883_v7  ;;  %v2903_v32 = vmax.f32 %v2711_v63, 0.0 }
 0x35e   : > { %v8119_v19 = vpop.f32.mrf.mxu0  ;;  %5902 = vmatpush3.msra.mxu1 %v2867_v9 }
 0x35f   : > { %5903 = vmatprep.subr.mxu1 %v2882_v10 }
 0x360   : > { %v8125_v42 = vpop.f32.mrf.mxu0  ;;  %5904 = vmatpush3.msra.mxu1 %v2866_v20 }
 0x361   : > { %5905 = vmatprep.subr.mxu1 %v2881_v29  ;;  %v2714_v29 = vadd.f32 %v8119_v19, %v7869_v40  ;;  %v2706_v45 = vadd.f32 %v7869_v40, %v8125_v42 }
 0x362   : > { %v6168_v60 = vpop.f32.mrf.mxu0  ;;  %5906 = vmatpush3.msra.mxu1 %v2865_v25 }
 0x363   : > { %5907 = vmatprep.subr.mxu1 %v2880_v49  ;;  %v2727_v14 = vadd.f32 %v6168_v60, %v7869_v40 }
 0x364   : > { %v2718_v11 = vpop.f32.mrf.mxu0  ;;  %5908 = vmatpush3.msra.mxu1 %v2864_v39 }
 0x365   : > { %5909 = vmatprep.subr.mxu1 %v2879_v44  ;;  %v2907_v10 = vmax.f32 %v2727_v14, 0.0  ;;  %v2719_v59 = vadd.f32 %v7869_v40, %v2718_v11  ;;  %v2904_v44 = vmax.f32 %v2714_v29, 0.0  ;;  %v2703_v11 = vadd.f32 %v7869_v40, %v8113_v37 }
 0x366   : > { %v6169_v17 = vpop.f32.mrf.mxu0  ;;  %5910 = vmatpush3.msra.mxu1 %v2863_v30 }
 0x367   : > { %5911 = vmatprep.subr.mxu1 %v2878_v8  ;;  %v2905_v39 = vmax.f32 %v2719_v59, 0.0 }
 0x368   : > { %v2721_v4 = vpop.f32.mrf.mxu0  ;;  %5912 = vmatpush3.msra.mxu1 %v2862_v48  ;;  %v2698_v48 = vadd.f32 %v8095_v53, %v7869_v40 }
 0x369   : > { %5913 = vmatprep.subr.mxu1 %v2877_v61  ;;  %v2722_v9 = vadd.f32 %v7869_v40, %v2721_v4  ;;  %v2901_v4 = vmax.f32 %v2703_v11, 0.0  ;;  %v5640_v11 = vld [vmem:[%s1311_s11] ss:$0 sm:$0xff]  ;;  %s1352_s11 = scalar_lea.vmem [#allocation12], %s7798_s13 }
 0x36a   : > { %v8140_v52 = vpop.f32.mrf.mxu0  ;;  %5914 = vmatpush3.msra.mxu1 %v2861_v50  ;;  %v2695_v50 = vadd.f32 %v8085_v54, %v7869_v40  ;;  %v2687_v54 = vadd.f32 %v7869_v40, %v8090_v57 }
 0x36b   : > { %3146 = vmatmul.mubr.f32.vlgmr.msra.gmra.mxu1 %v8041_v18  ;;  %v2730_v18 = vadd.f32 %v6169_v17, %v7869_v40  ;;  %v2906_v13 = vmax.f32 %v2722_v9, 0.0  ;;  %v2902_v17 = vmax.f32 %v2706_v45, 0.0  ;;  %v3309_v45 = vld [vmem:[%s1319_s22] sm:$0x1] }
 0x36c   : > { %v8143_v28 = vpop.f32.mrf.mxu0  ;;  %3215 = vmatprep.mubr.f32.mxu1 %v2936_v56  ;;  %v2897_v57 = vmax.f32 %v2687_v54, 0.0 }
 0x36d   : > { %v2908_v6 = vmax.f32 %v2730_v18, 0.0 }
 0x36e   : > { %v8145_v3 = vpop.f32.mrf.mxu0 }
 0x370   : > { %v8147_v23 = vpop.f32.mrf.mxu0 }
 0x372   : > { %v6176_v55 = vpop.f32.mrf.mxu0 }
 0x373   : > { %v2759_v42 = vadd.f32 %v6176_v55, %v7869_v40 }
 0x374   : > { %v8149_v21 = vpop.f32.mrf.mxu0 }
 0x375   : > { %v2915_v53 = vmax.f32 %v2759_v42, 0.0  ;;  %v2751_v55 = vadd.f32 %v7869_v40, %v8149_v21 }
 0x376   : > { %v6177_v38 = vpop.f32.mrf.mxu0 }
 0x377   : > { %v2762_v34 = vadd.f32 %v6177_v38, %v7869_v40  ;;  %v2900_v38 = vmax.f32 %v2698_v48, 0.0  ;;  %v2913_v21 = vmax.f32 %v2751_v55, 0.0 }
 0x378   : > { %v2753_v15 = vpop.f32.mrf.mxu0 }
 0x379   : > { %v2916_v37 = vmax.f32 %v2762_v34, 0.0  ;;  %v2754_v56 = vadd.f32 %v7869_v40, %v2753_v15 }
 0x37a   : > { %v6180_v58 = vpop.f32.mrf.mxu0 }
 0x37b   : > { %v2775_v25 = vadd.f32 %v6180_v58, %v7869_v40  ;;  %v2690_v58 = vadd.f32 %v7869_v40, %v8101_v26  ;;  %v2914_v15 = vmax.f32 %v2754_v56, 0.0  ;;  %v5650_v56 = vld [vmem:[%s1327_s17] ss:$0 sm:$0xff]  ;;  %s1344_s17 = scalar_lea.vmem [#allocation11], %s7798_s13 }
 0x37c   : > { %v2766_v62 = vpop.f32.mrf.mxu0 }
 0x37d   : > { %v2919_v19 = vmax.f32 %v2775_v25, 0.0  ;;  %v2767_v30 = vadd.f32 %v7869_v40, %v2766_v62  ;;  %v2899_v62 = vmax.f32 %v2695_v50, 0.0  ;;  %v2898_v26 = vmax.f32 %v2690_v58, 0.0 }
 0x37e   : > { %v6181_v47 = vpop.f32.mrf.mxu0 }
 0x37f   : > { %v2778_v20 = vadd.f32 %v6181_v47, %v7869_v40  ;;  %v2917_v61 = vmax.f32 %v2767_v30, 0.0  ;;  %v2746_v47 = vadd.f32 %v8145_v3, %v7869_v40  ;;  %v2738_v3 = vadd.f32 %v7869_v40, %v8147_v23 }
 0x380   : > { %v2769_v16 = vpop.f32.mrf.mxu0 }
 0x381   : > { %v2920_v27 = vmax.f32 %v2778_v20, 0.0  ;;  %v2770_v60 = vadd.f32 %v7869_v40, %v2769_v16  ;;  %v2682_v16 = vadd.f32 %v8075_v1, %v7869_v40  ;;  %v2912_v18 = vmax.f32 %v2746_v47, 0.0 }
 0x382   : > { %v6184_v22 = vpop.f32.mrf.mxu0  ;;  %v2674_v1 = vadd.f32 %v7869_v40, %v8080_v51  ;;  %v2910_v14 = vmax.f32 %v2738_v3, 0.0 }
 0x383   : > { %v2791_v33 = vadd.f32 %v6184_v22, %v7869_v40  ;;  %v2918_v8 = vmax.f32 %v2770_v60, 0.0  ;;  %v2743_v22 = vadd.f32 %v8140_v52, %v7869_v40  ;;  %v2735_v52 = vadd.f32 %v7869_v40, %v8143_v28 }
 0x384   : > { %v2782_v31 = vpop.f32.mrf.mxu0  ;;  %v2894_v23 = vmax.f32 %v2674_v1, 0.0  ;;  %v7299_v28 = vmov 0.0  }
 0x385   : > { %v2923_v36 = vmax.f32 %v2791_v33, 0.0  ;;  %v2783_v2 = vadd.f32 %v7869_v40, %v2782_v31  ;;  %v2679_v31 = vadd.f32 %v8066_v5, %v7869_v40  ;;  %v2911_v33 = vmax.f32 %v2743_v22, 0.0  ;;  %6314 = vmatprep.subr.bf16.mxu0 %v7299_v28  ;;  %6318 = vmatprep.mubr.msk.bf16.mxu0 %vm7300_vm0, %v7299_v28 }
 0x386   : > { %v6185_v41 = vpop.f32.mrf.mxu0  ;;  %v2671_v5 = vadd.f32 %v7869_v40, %v8070_v24  ;;  %v6666_v24 = vld [vmem:[%s1608_s1 + $0x10] sm:$0xff]  }
 0x387   : > { %v2794_v43 = vadd.f32 %v6185_v41, %v7869_v40  ;;  %v2921_v49 = vmax.f32 %v2783_v2, 0.0  ;;  %v2896_v41 = vmax.f32 %v2682_v16, 0.0 }
 0x388   : > { %v2785_v35 = vpop.f32.mrf.mxu0  ;;  %v2893_v51 = vmax.f32 %v2671_v5, 0.0 }
 0x389   : > { %v2924_v46 = vmax.f32 %v2794_v43, 0.0  ;;  %v2786_v7 = vadd.f32 %v7869_v40, %v2785_v35  ;;  %v2895_v43 = vmax.f32 %v2679_v31, 0.0  ;;  %v2909_v35 = vmax.f32 %v2735_v52, 0.0  ;;  %v6665_v40 = vld [vmem:[%s1608_s1 + $0x18] sm:$0xff]  }
 0x38b   : > { %5918 = vmatprep.subr.mxu1 %v2924_v46  ;;  %v2922_v12 = vmax.f32 %v2786_v7, 0.0  ;;  %v6667_v46 = vld [vmem:[%s1608_s1 + $0x8] sm:$0xff]  }
 0x38c   : > { %5919 = vmatpush3.msra.mxu1 %v2908_v6 }
 0x38d   : > { %5920 = vmatprep.subr.mxu1 %v2923_v36 }
 0x38e   : > { %5921 = vmatpush3.msra.mxu1 %v2907_v10 }
 0x38f   : > { %5922 = vmatprep.subr.mxu1 %v2922_v12 }
 0x390   : > { %5923 = vmatpush3.msra.mxu1 %v2906_v13 }
 0x391   : > { %5924 = vmatprep.subr.mxu1 %v2921_v49 }
 0x392   : > { %5925 = vmatpush3.msra.mxu1 %v2905_v39 }
 0x393   : > { %5926 = vmatprep.subr.mxu1 %v2920_v27  ;;  %v8218_v27 = vld [vmem:[%s1613_s16 + $0x8] sm:$0xff]  }
 0x394   : > { %5927 = vmatpush3.msra.mxu1 %v2904_v44  ;;  %v8221_v44 = vld [vmem:[%s1613_s16] sm:$0xff]   ;;  %s8323_s16 = sshll.u32 %s7798_s13, 4 }
 0x395   : > { %5928 = vmatprep.subr.mxu1 %v2919_v19  ;;  %v3311_v19 = vpack.c.bf16 %v3309_v45, %v3309_v45  ;;  %s1336_s22 = scalar_lea.vmem [#allocation10], %s8323_s16 }
 0x396   : > { %5929 = vmatpush3.msra.mxu1 %v2903_v32 }
 0x397   : > { %5930 = vmatprep.subr.mxu1 %v2918_v8 }
 0x398   : > { %5931 = vmatpush3.msra.mxu1 %v2902_v17 }
 0x399   : > { %5932 = vmatprep.subr.mxu1 %v2917_v61 }
 0x39a   : > { %5933 = vmatpush3.msra.mxu1 %v2901_v4 }
 0x39b   : > { %5934 = vmatprep.subr.mxu1 %v2916_v37 }
 0x39c   : > { %5935 = vmatpush3.msra.mxu1 %v2900_v38 }
 0x39d   : > { %5936 = vmatprep.subr.mxu1 %v2915_v53 }
 0x39e   : > { %5937 = vmatpush3.msra.mxu1 %v2899_v62 }
 0x39f   : > { %5938 = vmatprep.subr.mxu1 %v2914_v15 }
 0x3a0   : > { %5939 = vmatpush3.msra.mxu1 %v2898_v26 }
 0x3a1   : > { %5940 = vmatprep.subr.mxu1 %v2913_v21 }
 0x3a2   : > { %5941 = vmatpush3.msra.mxu1 %v2897_v57 }
 0x3a3   : > { %5942 = vmatprep.subr.mxu1 %v2912_v18 }
 0x3a4   : > { %5943 = vmatpush3.msra.mxu1 %v2896_v41 }
 0x3a5   : > { %5944 = vmatprep.subr.mxu1 %v2911_v33 }
 0x3a6   : > { %5945 = vmatpush3.msra.mxu1 %v2895_v43 }
 0x3a7   : > { %5946 = vmatprep.subr.mxu1 %v2910_v14 }
 0x3a8   : > { %5947 = vmatpush3.msra.mxu1 %v2894_v23 }
 0x3a9   : > { %5948 = vmatprep.subr.mxu1 %v2909_v35 }
 0x3aa   : > { %5949 = vmatpush3.msra.mxu1 %v2893_v51 }
 0x3ab   : > { %3216 = vmatmul.mubr.f32.vlgmr.msra.gmra.mxu1 %v8136_v0  ;;  %6186 = vmatprep.subr.bf16.mxu1 %v7299_v28  ;;  %v6668_v0 = vld [vmem:[%s1608_s1] sm:$0xff]   ;;  %v5845_v7 = vpop.f32.mrf.mxu1  ;;  %s1618_s1 = scalar_lea.vmem %s8648_s12, %s6431_s23  ;;  %s1623_s12 = scalar_lea.vmem %s8649_s10, %s6431_s23 }
 0x3ac   : > { %6187 = vmatpush3.bf16.msra.mxu1 %v6665_v40  ;;  %6194 = vmatprep.mubr.msk.bf16.mxu1 %vm7300_vm0, %v7299_v28  ;;  %s8651_s23 = sld [smem:[#allocation36_spill]] }
 0x3ad   : > { %6188 = vmatprep.subr.bf16.mxu1 %v7299_v28  ;;  %v5846_v6 = vpop.f32.mrf.mxu1 }
 0x3ae   : > { %v5847_v59 = vadd.f32 %v5846_v6, %v5845_v7 }
 0x3b0   : > { %6189 = vmatpush3.bf16.msra.mxu1 %v6666_v24 }
 0x3b1   : > { %6190 = vmatprep.subr.bf16.mxu1 %v7299_v28 }
 0x3b4   : > { %6191 = vmatpush3.bf16.msra.mxu1 %v6667_v46 }
 0x3b5   : > { %6192 = vmatprep.subr.bf16.mxu1 %v7299_v28 }
 0x3b8   : > { %6193 = vmatpush3.bf16.msra.mxu1 %v6668_v0 }
 0x3b9   : > { %6198 = vmatprep.subr.bf16.mxu1 %v7299_v28 }
 0x3eb   : > { %v5880_v9 = vpop.f32.mrf.mxu1 }
 0x3ed   : > { %v5881_v36 = vpop.f32.mrf.mxu1 }
 0x3ee   : > { %v5882_v20 = vadd.f32 %v5881_v36, %v5880_v9 }
 0x3f0   : > { %v3078_v13 = vadd.f32 %v5882_v20, %v5847_v59 }
 0x42b   : > { %v5915_v2 = vpop.f32.mrf.mxu1 }
 0x42d   : > { %v5916_v10 = vpop.f32.mrf.mxu1 }
 0x42e   : > { %v5917_v12 = vadd.f32 %v5916_v10, %v5915_v2 }
 0x430   : > { %v3148_v49 = vadd.f32 %v5917_v12, %v3078_v13 }
 0x46b   : > { %v5950_v29 = vpop.f32.mrf.mxu1 }
 0x46d   : > { %v5951_v25 = vpop.f32.mrf.mxu1 }
 0x46e   : > { %v5952_v63 = vadd.f32 %v5951_v25, %v5950_v29 }
 0x470   : > { %v3218_v39 = vadd.f32 %v5952_v63, %v3148_v49 }
 0x472   : > { %v3221_v60 = vpack.c.bf16 %v3218_v39, %v3218_v39 }
 0x474   : > { %6195 = vmatmul.mubr.msk.bf16.vlgmr.msra.gmra.mxu1 %vm3261_vm1, %v3221_v60 }
 0x475   : > { %6199 = vmatpush3.bf16.msra.mxu1 %v8218_v27  ;;  %6202 = vmatprep.mubr.msk.bf16.mxu1 %vm7300_vm0, %v7299_v28 }
 0x476   : > { %6200 = vmatprep.subr.bf16.mxu1 %v7299_v28 }
 0x479   : > { %6201 = vmatpush3.bf16.msra.mxu1 %v8221_v44 }
 0x47a   : > { %6206 = vmatprep.subr.bf16.mxu1 %v7299_v28 }
 0x47c   : > { %6203 = vmatmul.mubr.msk.bf16.vlgmr.msra.gmra.mxu1 %vm3324_vm2, %v3311_v19 }
 0x47d   : > { %6207 = vmatpush3.bf16.msra.mxu1 %v8218_v27  ;;  %6210 = vmatprep.mubr.msk.bf16.mxu1 %vm7300_vm0, %v7299_v28 }
 0x47e   : > { %6208 = vmatprep.subr.bf16.mxu1 %v7299_v28 }
 0x481   : > { %6209 = vmatpush3.bf16.msra.mxu1 %v8221_v44 }
 0x482   : > { %6214 = vmatprep.subr.bf16.mxu1 %v7299_v28 }
 0x534   : > { %v3299_v30 = vpop.f32.mrf.mxu1 }
 0x535   : > { %v8237_v48 = vadd.f32 %v5640_v11, %v3299_v30 }
 0x536   : > { %v6196_v32 = vpop.f32.mrf.mxu1 }
 0x538   : > { %v3302_v34 = vpop.f32.mrf.mxu1 }
 0x53a   : > { %v6197_v8 = vpop.f32.mrf.mxu1 }
 0x53c   : > { %v3362_v17 = vpop.f32.mrf.mxu1 }
 0x53d   : > { %v3368_v42 = vadd.f32 %v3362_v17, %v8237_v48 }
 0x53e   : > { %v6204_v61 = vpop.f32.mrf.mxu1 }
 0x53f   : > { %6703 = vtanh.f32 %v3368_v42  ;;  %v5649_v38 = vmul.f32 -1.442695, %v3368_v42 }
 0x540   : > { %v3365_v50 = vpop.f32.mrf.mxu1 }
 0x541   : > { %6705 = vpow2.f32 %v5649_v38  ;;  %v6672_v38 = vld [vmem:[%s1628_s24] sm:$0xff]  }
 0x542   : > { %v6205_v4 = vpop.f32.mrf.mxu1 }
 0x54c   : > { %v6704_v37 = vpop.eup %6703 }
 0x54d   : > { %3386 = vrot.lane.b32.xlu0 %v6704_v37, %s7301_s26  ;;  %v6671_v37 = vld [vmem:[%s1628_s24 + $0x8] sm:$0xff]   ;;  %s8650_s24 = sld [smem:[#allocation35_spill]] }
 0x54e   : > { %v6706_v58 = vpop.eup %6705 }
 0x54f   : > { %v3372_v53 = vadd.f32 1.0, %v6706_v58  ;;  %v8284_v58 = vld [vmem:[%s1618_s1] sm:$0xff] }
 0x551   : > { %3381 = vrot.lane.b32.xlu0 %v5650_v56, %s7302_s5  ;;  %6707 = vrcp.f32 %v3372_v53  ;;  %v8286_v53 = vld [vmem:[%s1618_s1 + $0x8] sm:$0xff] }
 0x55e   : > { %v6708_v55 = vpop.eup %6707 }
 0x5bf   : > { %v3387_v62 = vpop.permute.xlu0 %3386 }
 0x5c0   : > { %v3389_v54 = vmul.f32 %v6708_v55, %v3387_v62  ;;  %v6673_v62 = vld [vmem:[%s1633_s8 + $0x8] sm:$0xff]  }
 0x5c2   : > { %3391 = vrot.lane.b32.xlu1 %v3389_v54, %s7302_s5  ;;  %v8295_v54 = vld [vmem:[%s1618_s1 + $0x10] sm:$0xff] }
 0x5c3   : > { %v3382_v47 = vpop.permute.xlu0 %3381 }
 0x5c4   : > { %v3384_v15 = vmul.f32 %v6708_v55, %v3382_v47  ;;  %v8297_v47 = vld [vmem:[%s1618_s1 + $0x18] sm:$0xff] }
 0x634   : > { %v3392_v16 = vpop.permute.xlu1 %3391 }
 0x635   : > { %v3394_v26 = vadd.f32 %v3392_v16, %v3384_v15  ;;  %v6674_v15 = vld [vmem:[%s1633_s8] sm:$0xff]   ;;  %v3644_v16 = vpack.c.bf16 %v8297_v47, %v8295_v54  ;;  %s8370_s8 = scalar_lea.vmem %s8650_s24, %s8209_s3  ;;  %s1368_s3 = scalar_lea.vmem [#allocation14], %s7798_s13 }
 0x636   : > { %s1377_s13 = scalar_lea.vmem [#allocation15], %s8323_s16 }
 0x637   : > { %6709 = vtanh.f32 %v3394_v26  ;;  %v3460_v46 = vrot.slane %v3394_v26, 7  ;;  %v8306_v26 = vld [vmem:[%s1618_s1 + $0x20] sm:$0xff]  ;;  %s1641_s1 = scalar_lea.vmem %s8651_s23, %s7807_s30 }
 0x644   : > { %v6710_v22 = vpop.eup %6709 }
 0x645   : > { %3397 = vrot.lane.b32.xlu1 %v6710_v22, %s7301_s26  ;;  %v3645_v22 = vpack.c.bf16 %v8306_v26, %v8306_v26 }
 0x6b7   : > { %v3398_v21 = vpop.permute.xlu1 %3397 }
 0x6b8   : > { %v3400_v31 = vmul.f32 %v6708_v55, %v3398_v21  ;;  %v3643_v55 = vpack.c.bf16 %v8286_v53, %v8284_v58  ;;  %v6675_v21 = vld [vmem:[%s1336_s22 + $0x8] sm:$0xff]  }
 0x6ba   : > { %v3401_v57 = vpack.c.bf16 %v3400_v31, %v3400_v31  ;;  %v6676_v31 = vld [vmem:[%s1336_s22] sm:$0xff]  }
 0x6bc   : > { %3403 = vrot.lane.b32.xlu0 %v3401_v57, %s7302_s5 }
 0x72e   : > { %v3404_v18 = vpop.permute.xlu0 %3403 }
 0x72f   : > { %6211 = vmatmul.mubr.msk.bf16.vlgmr.msra.gmra.mxu1 %vm3324_vm2, %v3404_v18 }
 0x730   : > { %6215 = vmatpush3.bf16.msra.mxu1 %v8218_v27  ;;  %6218 = vmatprep.mubr.msk.bf16.mxu1 %vm7300_vm0, %v7299_v28 }
 0x731   : > { %6216 = vmatprep.subr.bf16.mxu1 %v7299_v28 }
 0x734   : > { %6217 = vmatpush3.bf16.msra.mxu1 %v8221_v44 }
 0x735   : > { %6222 = vmatprep.subr.bf16.mxu1 %v7299_v28 }
 0x7ef   : > { %v3442_v3 = vpop.f32.mrf.mxu1 }
 0x7f0   : > { %v3449_v41 = vrot.slane %v3442_v3, 7 }
 0x7f1   : > { %v6212_v1 = vpop.f32.mrf.mxu1 }
 0x7f2   : > { %v3451_v33 = vadd.f32 %v3449_v41, %v8237_v48 }
 0x7f3   : > { %v3445_v52 = vpop.f32.mrf.mxu1 }
 0x7f4   : > { %6711 = vtanh.f32 %v3451_v33  ;;  %v5652_v14 = vmul.f32 -1.442695, %v3451_v33 }
 0x7f5   : > { %v6213_v43 = vpop.f32.mrf.mxu1 }
 0x7f6   : > { %6713 = vpow2.f32 %v5652_v14 }
 0x801   : > { %v6712_v5 = vpop.eup %6711 }
 0x802   : > { %3464 = vrot.lane.b32.xlu1 %v6712_v5, %s7301_s26 }
 0x803   : > { %v6714_v23 = vpop.eup %6713 }
 0x804   : > { %v3455_v35 = vadd.f32 1.0, %v6714_v23 }
 0x806   : > { %6715 = vrcp.f32 %v3455_v35 }
 0x813   : > { %v6716_v51 = vpop.eup %6715 }
 0x814   : > { %v3462_v0 = vmul.f32 %v6716_v51, %v3460_v46 }
 0x874   : > { %v3465_v40 = vpop.permute.xlu1 %3464 }
 0x875   : > { %v3467_v24 = vmul.f32 %v6716_v51, %v3465_v40 }
 0x877   : > { %3469 = vrot.lane.b32.xlu0 %v3467_v24, %s7302_s5 }
 0x8e9   : > { %v3470_v7 = vpop.permute.xlu0 %3469 }
 0x8ea   : > { %v3472_v6 = vadd.f32 %v3470_v7, %v3462_v0 }
 0x8ec   : > { %6717 = vtanh.f32 %v3472_v6  ;;  %v3540_v32 = vrot.slane %v3472_v6, 7 }
 0x8f9   : > { %v6718_v9 = vpop.eup %6717 }
 0x8fa   : > { %3475 = vrot.lane.b32.xlu1 %v6718_v9, %s7301_s26 }
 0x96c   : > { %v3476_v36 = vpop.permute.xlu1 %3475 }
 0x96d   : > { %v3478_v2 = vmul.f32 %v6716_v51, %v3476_v36 }
 0x96f   : > { %v3479_v10 = vpack.c.bf16 %v3478_v2, %v3478_v2 }
 0x971   : > { %v3481_v59 = vshrl.u32 %v3479_v10, 16 }
 0x973   : > { %3483 = vrot.lane.b32.xlu0 %v3481_v59, %s7302_s5 }
 0x9e5   : > { %v3484_v20 = vpop.permute.xlu0 %3483 }
 0x9e6   : > { %6219 = vmatmul.mubr.msk.bf16.vlgmr.msra.gmra.mxu1 %vm3324_vm2, %v3484_v20  ;;  %v5663_v20 = vld [vmem:[%s1352_s11] ss:$0 sm:$0xff]  ;;  %s1386_s11 = scalar_lea.vmem [#allocation16], %s8323_s16 }
 0x9e7   : > { %6223 = vmatpush3.bf16.msra.mxu1 %v8218_v27  ;;  %6226 = vmatprep.mubr.msk.bf16.mxu1 %vm7300_vm0, %v7299_v28 }
 0x9e8   : > { %6224 = vmatprep.subr.bf16.mxu1 %v7299_v28 }
 0x9eb   : > { %6225 = vmatpush3.bf16.msra.mxu1 %v8221_v44 }
 0x9ec   : > { %6230 = vmatprep.subr.bf16.mxu1 %v7299_v28 }
 0xaa6   : > { %v3522_v12 = vpop.f32.mrf.mxu1 }
 0xaa7   : > { %v3529_v29 = vrot.slane %v3522_v12, 6 }
 0xaa8   : > { %v6220_v13 = vpop.f32.mrf.mxu1 }
 0xaa9   : > { %v3531_v25 = vadd.f32 %v3529_v29, %v8237_v48 }
 0xaaa   : > { %v3525_v49 = vpop.f32.mrf.mxu1 }
 0xaab   : > { %6719 = vtanh.f32 %v3531_v25  ;;  %v5654_v27 = vmul.f32 -1.442695, %v3531_v25 }
 0xaac   : > { %v6221_v63 = vpop.f32.mrf.mxu1 }
 0xaad   : > { %6721 = vpow2.f32 %v5654_v27 }
 0xab8   : > { %v6720_v39 = vpop.eup %6719 }
 0xab9   : > { %3544 = vrot.lane.b32.xlu1 %v6720_v39, %s7301_s26 }
 0xaba   : > { %v6722_v60 = vpop.eup %6721 }
 0xabb   : > { %v3535_v45 = vadd.f32 1.0, %v6722_v60 }
 0xabd   : > { %6723 = vrcp.f32 %v3535_v45 }
 0xaca   : > { %v6724_v44 = vpop.eup %6723 }
 0xacb   : > { %v3542_v11 = vmul.f32 %v6724_v44, %v3540_v32 }
 0xb2b   : > { %v3545_v19 = vpop.permute.xlu1 %3544 }
 0xb2c   : > { %v3547_v30 = vmul.f32 %v6724_v44, %v3545_v19 }
 0xb2e   : > { %3549 = vrot.lane.b32.xlu0 %v3547_v30, %s7302_s5 }
 0xba0   : > { %v3550_v34 = vpop.permute.xlu0 %3549 }
 0xba1   : > { %v8268_v8 = vadd.f32 %v3550_v34, %v3542_v11  ;;  %v5657_v34 = vld [vmem:[%s1344_s17] ss:$0 sm:$0xff]  ;;  %s1395_s17 = scalar_lea.vmem [#allocation17], %s8323_s16 }
 0xba3   : > { %6725 = vtanh.f32 %v8268_v8 }
 0xbb0   : > { %v6726_v17 = vpop.eup %6725 }
 0xbb1   : > { %3555 = vrot.lane.b32.xlu1 %v6726_v17, %s7301_s26 }
 0xc23   : > { %v3556_v42 = vpop.permute.xlu1 %3555 }
 0xc24   : > { %v3558_v61 = vmul.f32 %v6724_v44, %v3556_v42 }
 0xc26   : > { %v3559_v50 = vpack.c.bf16 %v3558_v61, %v3558_v61 }
 0xc28   : > { %v3561_v4 = vrot.slane %v3559_v50, 1 }
 0xc2a   : > { %3562 = vrot.lane.b32.xlu0 %v3561_v4, %s7302_s5 }
 0xc9c   : > { %v3563_v56 = vpop.permute.xlu0 %3562 }
 0xc9d   : > { %6227 = vmatmul.mubr.msk.bf16.vlgmr.msra.gmra.mxu1 %vm3324_vm2, %v3563_v56 }
 0xc9e   : > { %6231 = vmatpush3.bf16.msra.mxu1 %v6671_v37  ;;  %6234 = vmatprep.mubr.msk.bf16.mxu1 %vm7300_vm0, %v7299_v28 }
 0xc9f   : > { %6232 = vmatprep.subr.bf16.mxu1 %v7299_v28 }
 0xca2   : > { %6233 = vmatpush3.bf16.msra.mxu1 %v6672_v38 }
 0xca3   : > { %6246 = vmatprep.subr.bf16.mxu1 %v7299_v28 }
 0xca5   : > { %6235 = vmatmul.mubr.msk.bf16.vlgmr.msra.gmra.mxu1 %vm3324_vm2, %v3643_v55 }
 0xca6   : > { %6238 = vmatprep.mubr.msk.bf16.mxu1 %vm7300_vm0, %v7299_v28  ;;  %6247 = vmatpush3.bf16.msra.mxu1 %v6673_v62 }
 0xca7   : > { %6248 = vmatprep.subr.bf16.mxu1 %v7299_v28 }
 0xcaa   : > { %6249 = vmatpush3.bf16.msra.mxu1 %v6674_v15 }
 0xcab   : > { %6262 = vmatprep.subr.bf16.mxu1 %v7299_v28 }
 0xcad   : > { %6239 = vmatmul.mubr.msk.bf16.gmra.mxu1 %vm3324_vm2, %v3644_v16 }
 0xcae   : > { %6242 = vmatprep.mubr.msk.bf16.mxu1 %vm7300_vm0, %v7299_v28 }
 0xcb5   : > { %6243 = vmatmul.mubr.msk.bf16.gmra.mxu1 %vm3324_vm2, %v3645_v22 }
 0xcb6   : > { %6250 = vmatprep.mubr.msk.bf16.mxu1 %vm7300_vm0, %v7299_v28 }
 0xcbd   : > { %6251 = vmatmul.mubr.msk.bf16.vlgmr.msra.gmra.mxu1 %vm3324_vm2, %v3643_v55 }
 0xcbe   : > { %6254 = vmatprep.mubr.msk.bf16.mxu1 %vm7300_vm0, %v7299_v28  ;;  %6263 = vmatpush3.bf16.msra.mxu1 %v6675_v21 }
 0xcbf   : > { %6264 = vmatprep.subr.bf16.mxu1 %v7299_v28 }
 0xcc2   : > { %6265 = vmatpush3.bf16.msra.mxu1 %v6676_v31 }
 0xcc3   : > { %6278 = vmatprep.subr.bf16.mxu1 %v7299_v28 }
 0xcc5   : > { %6255 = vmatmul.mubr.msk.bf16.gmra.mxu1 %vm3324_vm2, %v3644_v16 }
 0xcc6   : > { %6258 = vmatprep.mubr.msk.bf16.mxu1 %vm7300_vm0, %v7299_v28 }
 0xccd   : > { %6259 = vmatmul.mubr.msk.bf16.gmra.mxu1 %vm3324_vm2, %v3645_v22 }
 0xcce   : > { %6266 = vmatprep.mubr.msk.bf16.mxu1 %vm7300_vm0, %v7299_v28 }
 0xcd5   : > { %6267 = vmatmul.mubr.msk.bf16.vlgmr.msra.gmra.mxu1 %vm3324_vm2, %v3643_v55 }
 0xcd6   : > { %6270 = vmatprep.mubr.msk.bf16.mxu1 %vm7300_vm0, %v7299_v28 }
 0xcdd   : > { %6271 = vmatmul.mubr.msk.bf16.gmra.mxu1 %vm3324_vm2, %v3644_v16 }
 0xcde   : > { %6274 = vmatprep.mubr.msk.bf16.mxu1 %vm7300_vm0, %v7299_v28 }
 0xce5   : > { %6275 = vmatmul.mubr.msk.bf16.gmra.mxu1 %vm3324_vm2, %v3645_v22 }
 0xce6   : > { %6284 = vmatprep.mubr.msk.bf16.mxu1 %vm7300_vm0, %v7299_v28 }
 0xd5d   : > { %v8337_v57 = vpop.f32.mrf.mxu1 }
 0xd5f   : > { %v6228_v18 = vpop.f32.mrf.mxu1 }
 0xd60   : > { %v5669_v18 = vld [vmem:[%s1360_s28] ss:$0 sm:$0xff]  ;;  %s8653_s28 = sld [smem:[#allocation39_spill]] }
 0xd61   : > { %v3604_v3 = vpop.f32.mrf.mxu1 }
 0xd63   : > { %v6229_v41 = vpop.f32.mrf.mxu1 }
 0xd65   : > { %v3712_v1 = vpop.f32.mrf.mxu1 }
 0xd66   : > { %v3713_v42 = vadd.f32 %v5657_v34, %v3712_v1  ;;  %s1652_s10 = scalar_lea.vmem %s8653_s28, %s7807_s30 }
 0xd67   : > { %v6236_v33 = vpop.f32.mrf.mxu1 }
 0xd69   : > { %v3715_v52 = vpop.f32.mrf.mxu1 }
 0xd6a   : > { %v3716_v17 = vadd.f32 %v5657_v34, %v3715_v52 }
 0xd6b   : > { %v6237_v43 = vpop.f32.mrf.mxu1 }
 0xd6c   : > { %v3892_v61 = vpack.c.bf16 %v3716_v17, %v3713_v42 }
 0xd6d   : > { %v3720_v5 = vpop.f32.mrf.mxu1 }
 0xd6e   : > { %v3721_v4 = vadd.f32 %v5657_v34, %v3720_v5 }
 0xd6f   : > { %v6240_v14 = vpop.f32.mrf.mxu1 }
 0xd71   : > { %v3723_v23 = vpop.f32.mrf.mxu1 }
 0xd72   : > { %v3724_v50 = vadd.f32 %v5657_v34, %v3723_v23 }
 0xd73   : > { %v6241_v35 = vpop.f32.mrf.mxu1 }
 0xd74   : > { %v3893_v37 = vpack.c.bf16 %v3724_v50, %v3721_v4 }
 0xd75   : > { %v3728_v51 = vpop.f32.mrf.mxu1 }
 0xd76   : > { %v3729_v56 = vadd.f32 %v5657_v34, %v3728_v51 }
 0xd77   : > { %v6244_v40 = vpop.f32.mrf.mxu1 }
 0xd78   : > { %v3894_v38 = vpack.c.bf16 %v3729_v56, %v3729_v56 }
 0xd79   : > { %v3731_v24 = vpop.f32.mrf.mxu1 }
 0xd7b   : > { %v6245_v46 = vpop.f32.mrf.mxu1 }
 0xd7d   : > { %v3791_v0 = vpop.f32.mrf.mxu1 }
 0xd7e   : > { %v3792_v30 = vadd.f32 %v5663_v20, %v3791_v0  ;;  %v3898_v0 = vld [vmem:[%s1623_s12] sm:$0xff] }
 0xd7f   : > { %v6252_v7 = vpop.f32.mrf.mxu1 }
 0xd81   : > { %v3794_v6 = vpop.f32.mrf.mxu1 }
 0xd82   : > { %v3795_v44 = vadd.f32 %v5663_v20, %v3794_v6 }
 0xd83   : > { %v6253_v9 = vpop.f32.mrf.mxu1 }
 0xd84   : > { %v3895_v32 = vpack.c.bf16 %v3795_v44, %v3792_v30  ;;  %v3902_v44 = vld [vmem:[%s1623_s12 + $0x20] sm:$0xff] }
 0xd85   : > { %v3799_v36 = vpop.f32.mrf.mxu1 }
 0xd86   : > { %v3800_v60 = vadd.f32 %v5663_v20, %v3799_v36  ;;  %v3913_v11 = vsel %vm3324_vm2, %v3895_v32, 0  ;;  %v3899_v36 = vld [vmem:[%s1623_s12 + $0x8] sm:$0xff] }
 0xd87   : > { %v6256_v2 = vpop.f32.mrf.mxu1 }
 0xd89   : > { %v3802_v10 = vpop.f32.mrf.mxu1 }
 0xd8a   : > { %v3803_v63 = vadd.f32 %v5663_v20, %v3802_v10 }
 0xd8b   : > { %v6257_v59 = vpop.f32.mrf.mxu1 }
 0xd8c   : > { %v3896_v45 = vpack.c.bf16 %v3803_v63, %v3800_v60  ;;  %v3901_v63 = vld [vmem:[%s1623_s12 + $0x18] sm:$0xff] }
 0xd8d   : > { %v3807_v12 = vpop.f32.mrf.mxu1 }
 0xd8e   : > { %v3808_v29 = vadd.f32 %v5663_v20, %v3807_v12  ;;  %v3916_v19 = vsel %vm3324_vm2, %v3896_v45, 0  ;;  %v3900_v12 = vld [vmem:[%s1623_s12 + $0x10] sm:$0xff] }
 0xd8f   : > { %v6260_v13 = vpop.f32.mrf.mxu1 }
 0xd90   : > { %v3897_v25 = vpack.c.bf16 %v3808_v29, %v3808_v29 }
 0xd91   : > { %v3810_v49 = vpop.f32.mrf.mxu1 }
 0xd92   : > { %v3919_v39 = vsel %vm3324_vm2, %v3897_v25, 0 }
 0xd93   : > { %v6261_v27 = vpop.f32.mrf.mxu1  ;;  %6279 = vmatpush3.bf16.xpose.msra.mxu1 %v3919_v39 }
 0xd94   : > { %6280 = vmatprep.subr.bf16.mxu1 %v7299_v28 }
 0xd95   : > { %v3870_v55 = vpop.f32.mrf.mxu1 }
 0xd96   : > { %v3871_v35 = vadd.f32 %v5669_v18, %v3870_v55 }
 0xd97   : > { %v6268_v62 = vpop.f32.mrf.mxu1 }
 0xd99   : > { %v3873_v15 = vpop.f32.mrf.mxu1 }
 0xd9a   : > { %v3874_v51 = vadd.f32 %v5669_v18, %v3873_v15 }
 0xd9b   : > { %6281 = vmatpush3.bf16.xpose.msra.mxu1 %v3916_v19  ;;  %v6269_v16 = vpop.f32.mrf.mxu1 }
 0xd9c   : > { %6282 = vmatprep.subr.bf16.mxu1 %v7299_v28  ;;  %v4036_v46 = vpack.c.bf16 %v3874_v51, %v3871_v35 }
 0xd9d   : > { %v3878_v22 = vpop.f32.mrf.mxu1 }
 0xd9e   : > { %v3879_v33 = vadd.f32 %v5669_v18, %v3878_v22 }
 0xd9f   : > { %v6272_v21 = vpop.f32.mrf.mxu1 }
 0xda1   : > { %v3881_v31 = vpop.f32.mrf.mxu1 }
 0xda2   : > { %v3882_v52 = vadd.f32 %v5669_v18, %v3881_v31 }
 0xda3   : > { %6283 = vmatpush3.bf16.xpose.msra.mxu1 %v3913_v11  ;;  %v6273_v3 = vpop.f32.mrf.mxu1 }
 0xda4   : > { %6296 = vmatprep.subr.bf16.mxu1 %v7299_v28  ;;  %v4037_v40 = vpack.c.bf16 %v3882_v52, %v3879_v33 }
 0xda5   : > { %v3886_v41 = vpop.f32.mrf.mxu1 }
 0xda6   : > { %v3887_v1 = vadd.f32 %v5669_v18, %v3886_v41 }
 0xda7   : > { %v6276_v43 = vpop.f32.mrf.mxu1 }
 0xda8   : > { %v4038_v5 = vpack.c.bf16 %v3887_v1, %v3887_v1 }
 0xda9   : > { %v3889_v14 = vpop.f32.mrf.mxu1 }
 0xdaa   : > { %6285 = vmatmul.mubr.msk.bf16.vlgmr.msra.gmra.mxu1 %vm3324_vm2, %v3892_v61  ;;  %v4050_v23 = vsel %vm4048_vm3, %v4038_v5, 0  ;;  %v6677_v61 = vld [vmem:[%s8370_s8 + $0x8] sm:$0xff]  }
 0xdab   : > { %6288 = vmatprep.mubr.msk.bf16.mxu1 %vm7300_vm0, %v7299_v28  ;;  %6297 = vmatpush3.bf16.msra.mxu1 %v4050_v23  ;;  %v6277_v24 = vpop.f32.mrf.mxu1 }
 0xdac   : > { %6298 = vmatprep.subr.bf16.mxu1 %v7299_v28  ;;  %6315 = vmatpush3.bf16.msra.mxu0 %v6677_v61  ;;  %v6678_v24 = vld [vmem:[%s8370_s8] sm:$0xff]  }
 0xdad   : > { %6316 = vmatprep.subr.bf16.mxu0 %v7299_v28 }
 0xdaf   : > { %6299 = vmatpush3.bf16.msra.mxu1 %v4037_v40 }
 0xdb0   : > { %6300 = vmatprep.subr.bf16.mxu1 %v7299_v28  ;;  %6317 = vmatpush3.bf16.msra.mxu0 %v6678_v24 }
 0xdb1   : > { %6346 = vmatprep.subr.bf16.mxu0 %v7299_v28 }
 0xdb2   : > { %6289 = vmatmul.mubr.msk.bf16.gmra.mxu1 %vm3324_vm2, %v3893_v37 }
 0xdb3   : > { %6292 = vmatprep.mubr.msk.bf16.mxu1 %vm7300_vm0, %v7299_v28  ;;  %6301 = vmatpush3.bf16.msra.mxu1 %v4036_v46 }
 0xdb4   : > { %6330 = vmatprep.subr.bf16.mxu1 %v7299_v28 }
 0xdba   : > { %6293 = vmatmul.mubr.msk.bf16.gmra.mxu1 %vm3324_vm2, %v3894_v38 }
 0xdbb   : > { %6302 = vmatprep.mubr.msk.bf16.mxu1 %vm7300_vm0, %v7299_v28 }
 0xe6a   : > { %v3955_v7 = vpop.f32.mrf.mxu1 }
 0xe6b   : > { %v3956_v6 = vadd.f32 %v3955_v7, %v3898_v0 }
 0xe6c   : > { %v6286_v9 = vpop.f32.mrf.mxu1 }
 0xe6d   : > { %v3978_v2 = vsel %vm3977_vm4, %v3956_v6, -inf }
 0xe6e   : > { %3979 = vmax.xlane.f32.xlu1 %v3978_v2  ;;  %v3958_v10 = vpop.f32.mrf.mxu1 }
 0xe6f   : > { %v3959_v59 = vadd.f32 %v3958_v10, %v3899_v36 }
 0xe70   : > { %v6287_v20 = vpop.f32.mrf.mxu1 }
 0xe71   : > { %v3981_v29 = vsel %vm3977_vm4, %v3959_v59, -inf }
 0xe72   : > { %3982 = vmax.xlane.f32.xlu0 %v3981_v29  ;;  %v3963_v13 = vpop.f32.mrf.mxu1 }
 0xe73   : > { %v3964_v25 = vadd.f32 %v3963_v13, %v3900_v12 }
 0xe74   : > { %v6290_v49 = vpop.f32.mrf.mxu1 }
 0xe75   : > { %v3984_v39 = vsel %vm3977_vm4, %v3964_v25, -inf }
 0xe76   : > { %3985 = vmax.xlane.f32.xlu0 %v3984_v39  ;;  %v3966_v27 = vpop.f32.mrf.mxu1 }
 0xe77   : > { %v3967_v60 = vadd.f32 %v3966_v27, %v3901_v63 }
 0xe78   : > { %v6291_v45 = vpop.f32.mrf.mxu1 }
 0xe79   : > { %v3987_v19 = vsel %vm3977_vm4, %v3967_v60, -inf }
 0xe7a   : > { %3988 = vmax.xlane.f32.xlu1 %v3987_v19  ;;  %v3971_v30 = vpop.f32.mrf.mxu1 }
 0xe7b   : > { %v3972_v32 = vadd.f32 %v3971_v30, %v3902_v44 }
 0xe7c   : > { %v6294_v11 = vpop.f32.mrf.mxu1 }
 0xe7d   : > { %v3990_v34 = vsel %vm3977_vm4, %v3972_v32, -inf }
 0xe7e   : > { %3991 = vmax.xlane.f32.xlu0 %v3990_v34  ;;  %v3974_v17 = vpop.f32.mrf.mxu1 }
 0xe80   : > { %v6295_v42 = vpop.f32.mrf.mxu1 }
 0xef7   : > { %v3980_v50 = vpop.xlane.xlu1 %3979 }
 0xef8   : > { %v3993_v4 = vsub.f32 %v3956_v6, %v3980_v50 }
 0xefa   : > { %v3998_v37 = vmul.f32 1.442695, %v3993_v4 }
 0xefb   : > { %v3983_v56 = vpop.xlane.xlu0 %3982 }
 0xefc   : > { %6727 = vpow2.f32 %v3998_v37  ;;  %v3994_v38 = vsub.f32 %v3959_v59, %v3983_v56 }
 0xefe   : > { %v4000_v55 = vmul.f32 1.442695, %v3994_v38  ;;  %v5681_v38 = vld [vmem:[%s1368_s3] ss:$0 sm:$0xff] }
 0xeff   : > { %v3986_v62 = vpop.xlane.xlu0 %3985 }
 0xf00   : > { %6729 = vpow2.f32 %v4000_v55  ;;  %v3995_v15 = vsub.f32 %v3964_v25, %v3986_v62 }
 0xf02   : > { %v4002_v16 = vmul.f32 1.442695, %v3995_v15 }
 0xf03   : > { %v3989_v22 = vpop.xlane.xlu1 %3988 }
 0xf04   : > { %6731 = vpow2.f32 %v4002_v16  ;;  %v3996_v21 = vsub.f32 %v3967_v60, %v3989_v22 }
 0xf06   : > { %v4004_v31 = vmul.f32 1.442695, %v3996_v21 }
 0xf07   : > { %v3992_v18 = vpop.xlane.xlu0 %3991 }
 0xf08   : > { %6733 = vpow2.f32 %v4004_v31  ;;  %v3997_v3 = vsub.f32 %v3972_v32, %v3992_v18 }
 0xf09   : > { %v6728_v41 = vpop.eup %6727 }
 0xf0a   : > { %v4006_v1 = vmul.f32 1.442695, %v3997_v3  ;;  %v4008_v33 = vsel %vm3977_vm4, %v6728_v41, 0.0 }
 0xf0b   : > { %4009 = vadd.xlane.f32.xlu1 %v4008_v33 }
 0xf0c   : > { %6735 = vpow2.f32 %v4006_v1 }
 0xf0d   : > { %v6730_v52 = vpop.eup %6729 }
 0xf0e   : > { %v4011_v43 = vsel %vm3977_vm4, %v6730_v52, 0.0 }
 0xf0f   : > { %4012 = vadd.xlane.f32.xlu0 %v4011_v43 }
 0xf11   : > { %v6732_v5 = vpop.eup %6731 }
 0xf12   : > { %v4014_v14 = vsel %vm3977_vm4, %v6732_v5, 0.0 }
 0xf13   : > { %4015 = vadd.xlane.f32.xlu1 %v4014_v14 }
 0xf15   : > { %v6734_v23 = vpop.eup %6733 }
 0xf16   : > { %v4017_v35 = vsel %vm3977_vm4, %v6734_v23, 0.0 }
 0xf17   : > { %4018 = vadd.xlane.f32.xlu0 %v4017_v35 }
 0xf19   : > { %v6736_v51 = vpop.eup %6735 }
 0xf1a   : > { %v4020_v40 = vsel %vm3977_vm4, %v6736_v51, 0.0 }
 0xf1b   : > { %4021 = vadd.xlane.f32.xlu1 %v4020_v40 }
 0xf94   : > { %v4010_v46 = vpop.xlane.xlu1 %4009 }
 0xf95   : > { %6737 = vrcp.f32 %v4010_v46 }
 0xf98   : > { %v4013_v0 = vpop.xlane.xlu0 %4012 }
 0xf99   : > { %6739 = vrcp.f32 %v4013_v0 }
 0xf9c   : > { %v4016_v7 = vpop.xlane.xlu1 %4015 }
 0xf9d   : > { %6741 = vrcp.f32 %v4016_v7 }
 0xfa0   : > { %v4019_v6 = vpop.xlane.xlu0 %4018 }
 0xfa1   : > { %6743 = vrcp.f32 %v4019_v6 }
 0xfa2   : > { %v6738_v9 = vpop.eup %6737 }
 0xfa3   : > { %v4028_v10 = vmul.f32 %v6738_v9, %v6728_v41 }
 0xfa4   : > { %v4022_v36 = vpop.xlane.xlu1 %4021 }
 0xfa5   : > { %6745 = vrcp.f32 %v4022_v36 }
 0xfa6   : > { %v6740_v2 = vpop.eup %6739 }
 0xfa7   : > { %v4029_v59 = vmul.f32 %v6740_v2, %v6730_v52 }
 0xfa9   : > { %v4033_v20 = vpack.c.bf16 %v4029_v59, %v4028_v10 }
 0xfaa   : > { %v6742_v12 = vpop.eup %6741 }
 0xfab   : > { %6303 = vmatmul.mubr.msk.bf16.vlgmr.msra.gmra.mxu1 %vm3977_vm4, %v4033_v20  ;;  %v4030_v13 = vmul.f32 %v6742_v12, %v6732_v5 }
 0xfac   : > { %6306 = vmatprep.mubr.msk.bf16.mxu1 %vm7300_vm0, %v7299_v28 }
 0xfae   : > { %v6744_v29 = vpop.eup %6743 }
 0xfaf   : > { %v4031_v25 = vmul.f32 %v6744_v29, %v6734_v23 }
 0xfb1   : > { %v4034_v49 = vpack.c.bf16 %v4031_v25, %v4030_v13 }
 0xfb2   : > { %v6746_v63 = vpop.eup %6745 }
 0xfb3   : > { %6307 = vmatmul.mubr.msk.bf16.gmra.mxu1 %vm3977_vm4, %v4034_v49  ;;  %v4032_v39 = vmul.f32 %v6746_v63, %v6736_v51 }
 0xfb4   : > { %6310 = vmatprep.mubr.msk.bf16.mxu1 %vm7300_vm0, %v7299_v28 }
 0xfb5   : > { %v4035_v27 = vpack.c.bf16 %v4032_v39, %v4032_v39 }
 0xfbb   : > { %6311 = vmatmul.mubr.msk.bf16.gmra.mxu1 %vm3977_vm4, %v4035_v27 }
 0xfbc   : > { %6334 = vmatprep.mubr.msk.bf16.mxu1 %vm7300_vm0, %v7299_v28 }
0x106b   : > { %v4086_v60 = vpop.f32.mrf.mxu1 }
0x106d   : > { %v6304_v45 = vpop.f32.mrf.mxu1 }
0x106f   : > { %v4089_v44 = vpop.f32.mrf.mxu1 }
0x1070   : > { %v4108_v19 = vpack.c.bf16 %v4089_v44, %v4086_v60 }
0x1071   : > { %v6305_v30 = vpop.f32.mrf.mxu1 }
0x1072   : > { %6319 = vmatmul.mubr.msk.bf16.vlgmr.msra.gmra.mxu0 %vm3324_vm2, %v4108_v19 }
0x1073   : > { %v4094_v32 = vpop.f32.mrf.mxu1  ;;  %6322 = vmatprep.mubr.msk.bf16.mxu0 %vm7300_vm0, %v7299_v28 }
0x1075   : > { %v6308_v11 = vpop.f32.mrf.mxu1 }
0x1077   : > { %v4097_v34 = vpop.f32.mrf.mxu1 }
0x1078   : > { %v4109_v17 = vpack.c.bf16 %v4097_v34, %v4094_v32 }
0x1079   : > { %v6309_v42 = vpop.f32.mrf.mxu1 }
0x107a   : > { %6323 = vmatmul.mubr.msk.bf16.gmra.mxu0 %vm3324_vm2, %v4109_v17  ;;  %v6679_v17 = vld [vmem:[%s1377_s13 + $0x8] sm:$0xff]   ;;  %v6680_v42 = vld [vmem:[%s1377_s13] sm:$0xff]  }
0x107b   : > { %v4102_v61 = vpop.f32.mrf.mxu1  ;;  %6326 = vmatprep.mubr.msk.bf16.mxu0 %vm7300_vm0, %v7299_v28  ;;  %6331 = vmatpush3.bf16.msra.mxu1 %v6679_v17 }
0x107c   : > { %v4110_v37 = vpack.c.bf16 %v4102_v61, %v4102_v61  ;;  %6332 = vmatprep.subr.bf16.mxu1 %v7299_v28 }
0x107d   : > { %v6312_v50 = vpop.f32.mrf.mxu1 }
0x107f   : > { %v4105_v4 = vpop.f32.mrf.mxu1  ;;  %6333 = vmatpush3.bf16.msra.mxu1 %v6680_v42 }
0x1080   : > { %6374 = vmatprep.subr.mxu1 %v7299_v28 }
0x1081   : > { %v6313_v56 = vpop.f32.mrf.mxu1 }
0x1082   : > { %6327 = vmatmul.mubr.msk.bf16.gmra.mxu0 %vm3324_vm2, %v4110_v37 }
0x1083   : > { %6362 = vmatprep.mubr.msk.bf16.mxu0 %vm7300_vm0, %v7299_v28 }
0x1132   : > { %v4177_v55 = vpop.f32.mrf.mxu0 }
0x1133   : > { %v4178_v62 = vadd.f32 %v5681_v38, %v4177_v55 }
0x1134   : > { %v6320_v15 = vpop.f32.mrf.mxu0 }
0x1135   : > { %v4199_v16 = vadd.f32 %v4178_v62, %v8284_v58 }
0x1136   : > { %v4180_v22 = vpop.f32.mrf.mxu0 }
0x1137   : > { %v4181_v21 = vadd.f32 %v5681_v38, %v4180_v22  ;;  %v4204_v31 = vsel %vm3324_vm2, %v4199_v16, 0.0 }
0x1138   : > { %4205 = vadd.xlane.f32.xlu0 %v4204_v31  ;;  %v6321_v18 = vpop.f32.mrf.mxu0 }
0x1139   : > { %v4200_v3 = vadd.f32 %v4181_v21, %v8286_v53 }
0x113a   : > { %v4185_v41 = vpop.f32.mrf.mxu0 }
0x113b   : > { %v4186_v1 = vadd.f32 %v5681_v38, %v4185_v41  ;;  %v4207_v33 = vsel %vm3324_vm2, %v4200_v3, 0.0 }
0x113c   : > { %4208 = vadd.xlane.f32.xlu1 %v4207_v33  ;;  %v6324_v52 = vpop.f32.mrf.mxu0 }
0x113d   : > { %v4201_v43 = vadd.f32 %v4186_v1, %v8295_v54 }
0x113e   : > { %v4188_v5 = vpop.f32.mrf.mxu0 }
0x113f   : > { %v4189_v14 = vadd.f32 %v5681_v38, %v4188_v5  ;;  %v4210_v58 = vsel %vm3324_vm2, %v4201_v43, 0.0 }
0x1140   : > { %4211 = vadd.xlane.f32.xlu0 %v4210_v58  ;;  %v6325_v23 = vpop.f32.mrf.mxu0 }
0x1141   : > { %v4202_v35 = vadd.f32 %v4189_v14, %v8297_v47 }
0x1142   : > { %v4193_v51 = vpop.f32.mrf.mxu0 }
0x1143   : > { %v4194_v40 = vadd.f32 %v5681_v38, %v4193_v51  ;;  %v4213_v53 = vsel %vm3324_vm2, %v4202_v35, 0.0 }
0x1144   : > { %4214 = vadd.xlane.f32.xlu1 %v4213_v53  ;;  %v6328_v24 = vpop.f32.mrf.mxu0 }
0x1145   : > { %v4203_v46 = vadd.f32 %v4194_v40, %v8306_v26  ;;  %v6681_v24 = vld [vmem:[%s7820_s7 + $0x38] sm:$0xff]  }
0x1146   : > { %v4196_v0 = vpop.f32.mrf.mxu0  ;;  %6347 = vmatpush3.bf16.msra.mxu0 %v6681_v24 }
0x1147   : > { %v4216_v7 = vsel %vm3324_vm2, %v4203_v46, 0.0  ;;  %6348 = vmatprep.subr.bf16.mxu0 %v7299_v28  ;;  %v6683_v0 = vld [vmem:[%s7820_s7 + $0x28] sm:$0xff]  }
0x1148   : > { %4217 = vadd.xlane.f32.xlu0 %v4216_v7  ;;  %v6329_v54 = vpop.f32.mrf.mxu0  ;;  %v6684_v7 = vld [vmem:[%s7820_s7 + $0x20] sm:$0xff]  }
0x1149   : > { %v6685_v54 = vld [vmem:[%s7820_s7 + $0x18] sm:$0xff]  }
0x11c1   : > { %v4206_v6 = vpop.xlane.xlu0 %4205 }
0x11c2   : > { %v4220_v9 = vmul.f32 0.03125, %v4206_v6  ;;  %v6686_v6 = vld [vmem:[%s7820_s7 + $0x10] sm:$0xff]  }
0x11c4   : > { %v4225_v36 = vsub.f32 %v4199_v16, %v4220_v9  ;;  %v6687_v9 = vld [vmem:[%s7820_s7 + $0x8] sm:$0xff]  }
0x11c5   : > { %v4209_v2 = vpop.xlane.xlu1 %4208 }
0x11c6   : > { %v4221_v10 = vmul.f32 0.03125, %v4209_v2  ;;  %v4230_v59 = vmul.f32 %v4225_v36, %v4225_v36  ;;  %v5687_v2 = vld [vmem:[%s1641_s1] ss:$0 sm:$0xff] }
0x11c8   : > { %v4226_v47 = vsub.f32 %v4200_v3, %v4221_v10  ;;  %v4235_v20 = vsel %vm3324_vm2, %v4230_v59, 0.0 }
0x11c9   : > { %v4212_v12 = vpop.xlane.xlu0 %4211  ;;  %4236 = vadd.xlane.f32.xlu1 %v4235_v20 }
0x11ca   : > { %v4222_v29 = vmul.f32 0.03125, %v4212_v12  ;;  %v4231_v13 = vmul.f32 %v4226_v47, %v4226_v47 }
0x11cc   : > { %v4227_v25 = vsub.f32 %v4201_v43, %v4222_v29  ;;  %v4238_v26 = vsel %vm3324_vm2, %v4231_v13, 0.0 }
0x11cd   : > { %v4215_v49 = vpop.xlane.xlu1 %4214  ;;  %4239 = vadd.xlane.f32.xlu0 %v4238_v26 }
0x11ce   : > { %v4223_v63 = vmul.f32 0.03125, %v4215_v49  ;;  %v4232_v39 = vmul.f32 %v4227_v25, %v4227_v25 }
0x11d0   : > { %v4228_v27 = vsub.f32 %v4202_v35, %v4223_v63  ;;  %v4241_v60 = vsel %vm3324_vm2, %v4232_v39, 0.0 }
0x11d1   : > { %4242 = vadd.xlane.f32.xlu1 %v4241_v60  ;;  %v4218_v45 = vpop.xlane.xlu0 %4217 }
0x11d2   : > { %v4224_v44 = vmul.f32 0.03125, %v4218_v45  ;;  %v4233_v19 = vmul.f32 %v4228_v27, %v4228_v27 }
0x11d4   : > { %v4229_v30 = vsub.f32 %v4203_v46, %v4224_v44  ;;  %v4244_v32 = vsel %vm3324_vm2, %v4233_v19, 0.0  ;;  %v6682_v46 = vld [vmem:[%s7820_s7 + $0x30] sm:$0xff]  }
0x11d5   : > { %4245 = vadd.xlane.f32.xlu0 %v4244_v32  ;;  %6349 = vmatpush3.bf16.msra.mxu0 %v6682_v46 }
0x11d6   : > { %v4234_v11 = vmul.f32 %v4229_v30, %v4229_v30  ;;  %6350 = vmatprep.subr.bf16.mxu0 %v7299_v28 }
0x11d8   : > { %v4247_v34 = vsel %vm3324_vm2, %v4234_v11, 0.0 }
0x11d9   : > { %4248 = vadd.xlane.f32.xlu1 %v4247_v34  ;;  %6351 = vmatpush3.bf16.msra.mxu0 %v6683_v0 }
0x11da   : > { %6352 = vmatprep.subr.bf16.mxu0 %v7299_v28 }
0x11dd   : > { %6353 = vmatpush3.bf16.msra.mxu0 %v6684_v7 }
0x11de   : > { %6354 = vmatprep.subr.bf16.mxu0 %v7299_v28 }
0x11e1   : > { %6355 = vmatpush3.bf16.msra.mxu0 %v6685_v54 }
0x11e2   : > { %6356 = vmatprep.subr.bf16.mxu0 %v7299_v28 }
0x11e5   : > { %6357 = vmatpush3.bf16.msra.mxu0 %v6686_v6 }
0x11e6   : > { %6358 = vmatprep.subr.bf16.mxu0 %v7299_v28 }
0x11e9   : > { %6359 = vmatpush3.bf16.msra.mxu0 %v6687_v9 }
0x11ea   : > { %6360 = vmatprep.subr.bf16.mxu0 %v7299_v28 }
0x1252   : > { %v4237_v61 = vpop.xlane.xlu1 %4236 }
0x1253   : > { %v4250_v50 = vmul.f32 0.03125, %v4237_v61 }
0x1255   : > { %v4255_v4 = vadd.f32 1e-12, %v4250_v50 }
0x1256   : > { %v4240_v37 = vpop.xlane.xlu0 %4239 }
0x1257   : > { %v4251_v56 = vmul.f32 0.03125, %v4240_v37  ;;  %6747 = vrsqrt.f32 %v4255_v4 }
0x1259   : > { %v4256_v38 = vadd.f32 1e-12, %v4251_v56 }
0x125a   : > { %v4243_v55 = vpop.xlane.xlu1 %4242 }
0x125b   : > { %6749 = vrsqrt.f32 %v4256_v38  ;;  %v4252_v62 = vmul.f32 0.03125, %v4243_v55 }
0x125d   : > { %v4257_v15 = vadd.f32 1e-12, %v4252_v62 }
0x125e   : > { %v4246_v16 = vpop.xlane.xlu0 %4245 }
0x125f   : > { %v4253_v22 = vmul.f32 0.03125, %v4246_v16  ;;  %6751 = vrsqrt.f32 %v4257_v15 }
0x1261   : > { %v4258_v21 = vadd.f32 1e-12, %v4253_v22 }
0x1262   : > { %v4249_v31 = vpop.xlane.xlu1 %4248 }
0x1263   : > { %6753 = vrsqrt.f32 %v4258_v21  ;;  %v4254_v18 = vmul.f32 0.03125, %v4249_v31 }
0x1264   : > { %v6748_v41 = vpop.eup %6747 }
0x1265   : > { %v4259_v3 = vadd.f32 1e-12, %v4254_v18  ;;  %v8418_v33 = vmul.f32 %v6748_v41, %v4225_v36  ;;  %v6688_v36 = vld [vmem:[%s7820_s7] sm:$0xff]   ;;  %s8652_s7 = sld [smem:[#allocation38_spill]] }
0x1266   : > { %6361 = vmatpush3.bf16.msra.mxu0 %v6688_v36 }
0x1267   : > { %6755 = vrsqrt.f32 %v4259_v3  ;;  %6411 = vmatprep.subr.bf16.mxu0 %v7299_v28 }
0x1268   : > { %v6750_v1 = vpop.eup %6749 }
0x1269   : > { %v8420_v52 = vmul.f32 %v6750_v1, %v4226_v47 }
0x126b   : > { %v4270_v43 = vpack.c.bf16 %v8420_v52, %v8418_v33  ;;  %s1649_s22 = scalar_lea.vmem %s8652_s7, %s7807_s30 }
0x126c   : > { %v6752_v5 = vpop.eup %6751 }
0x126d   : > { %6335 = vmatmul.mubr.msk.bf16.vlgmr.msra.gmra.mxu1 %vm3324_vm2, %v4270_v43  ;;  %v8427_v58 = vmul.f32 %v6752_v5, %v4227_v25 }
0x126e   : > { %6338 = vmatprep.mubr.msk.bf16.mxu1 %vm7300_vm0, %v7299_v28 }
0x1270   : > { %v6754_v14 = vpop.eup %6753 }
0x1271   : > { %v8429_v23 = vmul.f32 %v6754_v14, %v4228_v27 }
0x1273   : > { %v4271_v35 = vpack.c.bf16 %v8429_v23, %v8427_v58 }
0x1274   : > { %v6756_v51 = vpop.eup %6755 }
0x1275   : > { %6339 = vmatmul.mubr.msk.bf16.gmra.mxu1 %vm3324_vm2, %v4271_v35  ;;  %v8436_v40 = vmul.f32 %v6756_v51, %v4229_v30 }
0x1276   : > { %6342 = vmatprep.mubr.msk.bf16.mxu1 %vm7300_vm0, %v7299_v28 }
0x1277   : > { %v4272_v53 = vpack.c.bf16 %v8436_v40, %v8436_v40 }
0x127d   : > { %6343 = vmatmul.mubr.msk.bf16.gmra.mxu1 %vm3324_vm2, %v4272_v53 }
0x127e   : > { %6384 = vmatprep.mubr.msk.f32.mxu1 %vm7300_vm0, %v7299_v28 }
0x132d   : > { %v4339_v10 = vpop.f32.mrf.mxu1 }
0x132e   : > { %v4340_v59 = vadd.f32 %v5687_v2, %v4339_v10 }
0x132f   : > { %v6336_v47 = vpop.f32.mrf.mxu1 }
0x1330   : > { %v4361_v20 = vmul.f32 %v4340_v59, %v4340_v59 }
0x1331   : > { %v4342_v12 = vpop.f32.mrf.mxu1 }
0x1332   : > { %v4366_v29 = vmul.f32 %v4361_v20, %v4340_v59  ;;  %v4343_v13 = vadd.f32 %v5687_v2, %v4342_v12 }
0x1333   : > { %v6337_v25 = vpop.f32.mrf.mxu1 }
0x1334   : > { %v4371_v26 = vmul.f32 0.044715, %v4366_v29  ;;  %v4362_v49 = vmul.f32 %v4343_v13, %v4343_v13 }
0x1335   : > { %v4347_v63 = vpop.f32.mrf.mxu1 }
0x1336   : > { %v4376_v39 = vadd.f32 %v4371_v26, %v4340_v59  ;;  %v4367_v27 = vmul.f32 %v4362_v49, %v4343_v13  ;;  %v4348_v60 = vadd.f32 %v5687_v2, %v4347_v63 }
0x1337   : > { %v6340_v45 = vpop.f32.mrf.mxu1 }
0x1338   : > { %v4381_v44 = vmul.f32 0.7978846, %v4376_v39  ;;  %v4372_v19 = vmul.f32 0.044715, %v4367_v27  ;;  %v4363_v30 = vmul.f32 %v4348_v60, %v4348_v60 }
0x1339   : > { %v4350_v32 = vpop.f32.mrf.mxu1 }
0x133a   : > { %6757 = vtanh.f32 %v4381_v44  ;;  %v4377_v11 = vadd.f32 %v4372_v19, %v4343_v13  ;;  %v4368_v34 = vmul.f32 %v4363_v30, %v4348_v60  ;;  %v4351_v17 = vadd.f32 %v5687_v2, %v4350_v32  ;;  %v5693_v19 = vld [vmem:[%s1649_s22] ss:$0 sm:$0xff] }
0x133b   : > { %v6341_v42 = vpop.f32.mrf.mxu1 }
0x133c   : > { %v4382_v61 = vmul.f32 0.7978846, %v4377_v11  ;;  %v4373_v50 = vmul.f32 0.044715, %v4368_v34  ;;  %v4364_v4 = vmul.f32 %v4351_v17, %v4351_v17 }
0x133d   : > { %v4355_v37 = vpop.f32.mrf.mxu1 }
0x133e   : > { %6759 = vtanh.f32 %v4382_v61  ;;  %v4378_v56 = vadd.f32 %v4373_v50, %v4348_v60  ;;  %v4369_v38 = vmul.f32 %v4364_v4, %v4351_v17  ;;  %v4356_v55 = vadd.f32 %v5687_v2, %v4355_v37 }
0x133f   : > { %v6344_v62 = vpop.f32.mrf.mxu1 }
0x1340   : > { %v4383_v15 = vmul.f32 0.7978846, %v4378_v56  ;;  %v4374_v16 = vmul.f32 0.044715, %v4369_v38  ;;  %v4365_v22 = vmul.f32 %v4356_v55, %v4356_v55 }
0x1341   : > { %v4358_v21 = vpop.f32.mrf.mxu1 }
0x1342   : > { %6761 = vtanh.f32 %v4383_v15  ;;  %v4379_v31 = vadd.f32 %v4374_v16, %v4351_v17  ;;  %v4370_v18 = vmul.f32 %v4365_v22, %v4356_v55 }
0x1343   : > { %v6345_v3 = vpop.f32.mrf.mxu1 }
0x1344   : > { %v4384_v41 = vmul.f32 0.7978846, %v4379_v31  ;;  %v4375_v1 = vmul.f32 0.044715, %v4370_v18 }
0x1346   : > { %6763 = vtanh.f32 %v4384_v41  ;;  %v4380_v43 = vadd.f32 %v4375_v1, %v4356_v55 }
0x1347   : > { %v6758_v5 = vpop.eup %6757 }
0x1348   : > { %v4391_v14 = vadd.f32 1.0, %v6758_v5  ;;  %v4385_v35 = vmul.f32 0.7978846, %v4380_v43 }
0x134a   : > { %6765 = vtanh.f32 %v4385_v35  ;;  %v4396_v53 = vmul.f32 0.5, %v4391_v14 }
0x134b   : > { %v6760_v51 = vpop.eup %6759 }
0x134c   : > { %v4392_v24 = vadd.f32 1.0, %v6760_v51  ;;  %v4401_v7 = vmul.f32 %v4396_v53, %v4340_v59 }
0x134e   : > { %v4397_v46 = vmul.f32 0.5, %v4392_v24 }
0x134f   : > { %v6762_v0 = vpop.eup %6761 }
0x1350   : > { %v4402_v54 = vmul.f32 %v4397_v46, %v4343_v13  ;;  %v4393_v6 = vadd.f32 1.0, %v6762_v0 }
0x1352   : > { %v4406_v9 = vpack.c.bf16 %v4402_v54, %v4401_v7  ;;  %v4398_v2 = vmul.f32 0.5, %v4393_v6  ;;  %v3608_v6 = vrot.slane %v8337_v57, 5 }
0x1353   : > { %v6764_v36 = vpop.eup %6763 }
0x1354   : > { %v4394_v10 = vadd.f32 1.0, %v6764_v36  ;;  %6363 = vmatmul.mubr.bf16.vlgmr.msra.gmra.mxu0 %v4406_v9  ;;  %v4403_v12 = vmul.f32 %v4398_v2, %v4348_v60 }
0x1355   : > { %6366 = vmatprep.mubr.msk.bf16.mxu0 %vm7300_vm0, %v7299_v28 }
0x1356   : > { %v4399_v47 = vmul.f32 0.5, %v4394_v10 }
0x1357   : > { %v6766_v20 = vpop.eup %6765 }
0x1358   : > { %v4404_v29 = vmul.f32 %v4399_v47, %v4351_v17  ;;  %v4395_v25 = vadd.f32 1.0, %v6766_v20  ;;  %v3610_v20 = vadd.f32 %v3608_v6, %v8237_v48 }
0x135a   : > { %v4407_v26 = vpack.c.bf16 %v4404_v29, %v4403_v12  ;;  %v4400_v49 = vmul.f32 0.5, %v4395_v25  ;;  %6767 = vtanh.f32 %v3610_v20  ;;  %v5656_v57 = vmul.f32 -1.442695, %v3610_v20 }
0x135c   : > { %6367 = vmatmul.mubr.bf16.gmra.mxu0 %v4407_v26  ;;  %v4405_v59 = vmul.f32 %v4400_v49, %v4356_v55  ;;  %6769 = vpow2.f32 %v5656_v57  ;;  %v6698_v57 = vld [vmem:[%s7824_s2 + $0x20] sm:$0xff]  }
0x135d   : > { %6370 = vmatprep.mubr.msk.bf16.mxu0 %vm7300_vm0, %v7299_v28 }
0x135e   : > { %v4408_v13 = vpack.c.bf16 %v4405_v59, %v4405_v59 }
0x1364   : > { %6371 = vmatmul.mubr.bf16.gmra.mxu0 %v4408_v13 }
0x1365   : > { %6427 = vmatprep.mubr.msk.bf16.mxu0 %vm7300_vm0, %v7299_v28 }
0x1367   : > { %v6768_v25 = vpop.eup %6767 }
0x1369   : > { %v6770_v26 = vpop.eup %6769 }
0x136a   : > { %v3614_v49 = vadd.f32 1.0, %v6770_v26  ;;  %v6699_v26 = vld [vmem:[%s7824_s2 + $0x18] sm:$0xff]  }
0x136c   : > { %6771 = vrcp.f32 %v3614_v49  ;;  %v6700_v49 = vld [vmem:[%s7824_s2 + $0x10] sm:$0xff]  }
0x1414   : > { %v4514_v63 = vpop.f32.mrf.mxu0 }
0x1415   : > { %v4515_v62 = vadd.f32 %v5693_v19, %v4514_v63 }
0x1416   : > { %v6364_v39 = vpop.f32.mrf.mxu0 }
0x1417   : > { %v4536_v31 = vadd.f32 %v4515_v62, %v8418_v33 }
0x1418   : > { %v4517_v27 = vpop.f32.mrf.mxu0 }
0x1419   : > { %v4518_v32 = vadd.f32 %v5693_v19, %v4517_v27 }
0x141a   : > { %v6365_v60 = vpop.f32.mrf.mxu0 }
0x141b   : > { %v4537_v37 = vadd.f32 %v4518_v32, %v8420_v52  ;;  %v4541_v52 = vsel %vm3324_vm2, %v4536_v31, 0.0 }
0x141c   : > { %v4522_v45 = vpop.f32.mrf.mxu0 }
0x141d   : > { %v4523_v61 = vadd.f32 %v5693_v19, %v4522_v45  ;;  %v4544_v15 = vsel %vm3324_vm2, %v4537_v37, 0.0 }
0x141e   : > { %v6368_v44 = vpop.f32.mrf.mxu0 }
0x141f   : > { %v4538_v22 = vadd.f32 %v4523_v61, %v8427_v58  ;;  %v8495_v44 = vpop.eup %6771 }
0x1420   : > { %v4525_v30 = vpop.f32.mrf.mxu0 }
0x1421   : > { %v4526_v11 = vadd.f32 %v5693_v19, %v4525_v30  ;;  %v4547_v21 = vsel %vm3324_vm2, %v4538_v22, 0.0 }
0x1422   : > { %v6369_v34 = vpop.f32.mrf.mxu0 }
0x1423   : > { %v4539_v17 = vadd.f32 %v4526_v11, %v8429_v23 }
0x1424   : > { %v4530_v42 = vpop.f32.mrf.mxu0 }
0x1425   : > { %v4531_v50 = vadd.f32 %v5693_v19, %v4530_v42  ;;  %v4550_v4 = vsel %vm3324_vm2, %v4539_v17, 0.0 }
0x1426   : > { %4551 = vadd.xlane.f32.xlu1 %v4550_v4  ;;  %v6372_v56 = vpop.f32.mrf.mxu0 }
0x1427   : > { %v4540_v38 = vadd.f32 %v4531_v50, %v8436_v40 }
0x1428   : > { %v4533_v55 = vpop.f32.mrf.mxu0 }
0x1429   : > { %v4553_v16 = vsel %vm3324_vm2, %v4540_v38, 0.0 }
0x142a   : > { %4545 = vadd.xlane.f32.xlu1 %v4544_v15  ;;  %4554 = vadd.xlane.f32.xlu0 %v4553_v16  ;;  %v6373_v23 = vpop.f32.mrf.mxu0 }
0x142e   : > { %4548 = vadd.xlane.f32.xlu0 %v4547_v21  ;;  %v4606_v21 = vld [vmem:[#allocation4] sm:$0x1f] }
0x1432   : > { %4542 = vadd.xlane.f32.xlu0 %v4541_v52  ;;  %v6690_v52 = vld [vmem:[%s1386_s11] sm:$0xff]  }
0x14af   : > { %v4552_v40 = vpop.xlane.xlu1 %4551 }
0x14b0   : > { %v4559_v18 = vmul.f32 0.03125, %v4552_v40  ;;  %v3619_v40 = vrot.slane %v8268_v8, 7 }
0x14b2   : > { %v8479_v3 = vsub.f32 %v4539_v17, %v4559_v18  ;;  %v3621_v18 = vmul.f32 %v8495_v44, %v3619_v40 }
0x14b3   : > { %v4546_v41 = vpop.xlane.xlu1 %4545  ;;  %v4555_v1 = vpop.xlane.xlu0 %4554 }
0x14b4   : > { %v4557_v43 = vmul.f32 0.03125, %v4546_v41  ;;  %v4560_v5 = vmul.f32 0.03125, %v4555_v1  ;;  %v4569_v58 = vmul.f32 %v8479_v3, %v8479_v3 }
0x14b6   : > { %v8483_v14 = vsub.f32 %v4537_v37, %v4557_v43  ;;  %v4565_v35 = vsub.f32 %v4540_v38, %v4560_v5  ;;  %v4580_v33 = vsel %vm3324_vm2, %v4569_v58, 0.0  ;;  %v6691_v5 = vld [vmem:[%s1395_s17 + $0x8] sm:$0xff]  }
0x14b7   : > { %4581 = vadd.xlane.f32.xlu0 %v4580_v33  ;;  %v4549_v51 = vpop.xlane.xlu0 %4548 }
0x14b8   : > { %v4558_v53 = vmul.f32 0.03125, %v4549_v51  ;;  %v4567_v24 = vmul.f32 %v8483_v14, %v8483_v14  ;;  %v4570_v46 = vmul.f32 %v4565_v35, %v4565_v35 }
0x14ba   : > { %v4563_v0 = vsub.f32 %v4538_v22, %v4558_v53  ;;  %v4574_v7 = vsel %vm3324_vm2, %v4567_v24, 0.0  ;;  %v4583_v54 = vsel %vm3324_vm2, %v4570_v46, 0.0 }
0x14bb   : > { %4575 = vadd.xlane.f32.xlu0 %v4574_v7  ;;  %4584 = vadd.xlane.f32.xlu1 %v4583_v54  ;;  %v4543_v9 = vpop.xlane.xlu0 %4542  ;;  %v5703_v54 = vld [vmem:[%s1652_s10] ss:$0 sm:$0xff] }
0x14bc   : > { %v4556_v36 = vmul.f32 0.03125, %v4543_v9  ;;  %v4568_v2 = vmul.f32 %v4563_v0, %v4563_v0 }
0x14be   : > { %v4561_v10 = vsub.f32 %v4536_v31, %v4556_v36  ;;  %v4577_v47 = vsel %vm3324_vm2, %v4568_v2, 0.0  ;;  %v6689_v31 = vld [vmem:[%s1386_s11 + $0x8] sm:$0xff]  }
0x14bf   : > { %4578 = vadd.xlane.f32.xlu1 %v4577_v47 }
0x14c0   : > { %v4566_v12 = vmul.f32 %v4561_v10, %v4561_v10 }
0x14c2   : > { %v4571_v29 = vsel %vm3324_vm2, %v4566_v12, 0.0  ;;  %v6695_v12 = vld [vmem:[%s7824_s2 + $0x38] sm:$0xff]  }
0x14c3   : > { %4572 = vadd.xlane.f32.xlu1 %v4571_v29  ;;  %6412 = vmatpush3.bf16.msra.mxu0 %v6695_v12  ;;  %v6696_v29 = vld [vmem:[%s7824_s2 + $0x30] sm:$0xff]  }
0x14c4   : > { %6413 = vmatprep.subr.bf16.mxu0 %v7299_v28 }
0x14c7   : > { %6414 = vmatpush3.bf16.msra.mxu0 %v6696_v29 }
0x14c8   : > { %6415 = vmatprep.subr.bf16.mxu0 %v7299_v28 }
0x14d1   : > { %3623 = vrot.lane.b32.xlu0 %v6768_v25, %s7301_s26  ;;  %v6697_v25 = vld [vmem:[%s7824_s2 + $0x28] sm:$0xff]  }
0x14d2   : > { %6416 = vmatpush3.bf16.msra.mxu0 %v6697_v25 }
0x14d3   : > { %6417 = vmatprep.subr.bf16.mxu0 %v7299_v28 }
0x14d6   : > { %6418 = vmatpush3.bf16.msra.mxu0 %v6698_v57 }
0x14d7   : > { %6419 = vmatprep.subr.bf16.mxu0 %v7299_v28 }
0x14da   : > { %6420 = vmatpush3.bf16.msra.mxu0 %v6699_v26 }
0x14db   : > { %6421 = vmatprep.subr.bf16.mxu0 %v7299_v28 }
0x14de   : > { %6422 = vmatpush3.bf16.msra.mxu0 %v6700_v49 }
0x14df   : > { %6423 = vmatprep.subr.bf16.mxu0 %v7299_v28 }
0x1540   : > { %v4582_v59 = vpop.xlane.xlu0 %4581 }
0x1541   : > { %v4589_v13 = vmul.f32 0.03125, %v4582_v59  ;;  %v6701_v59 = vld [vmem:[%s7824_s2 + $0x8] sm:$0xff]  }
0x1542   : > { %6424 = vmatpush3.bf16.msra.mxu0 %v6701_v59 }
0x1543   : > { %v4594_v63 = vadd.f32 1e-12, %v4589_v13  ;;  %6425 = vmatprep.subr.bf16.mxu0 %v7299_v28  ;;  %v6702_v13 = vld [vmem:[%s7824_s2] sm:$0xff]  }
0x1544   : > { %v4585_v39 = vpop.xlane.xlu1 %4584  ;;  %v4576_v27 = vpop.xlane.xlu0 %4575 }
0x1545   : > { %v4590_v48 = vmul.f32 0.03125, %v4585_v39  ;;  %v4587_v60 = vmul.f32 0.03125, %v4576_v27  ;;  %6773 = vrsqrt.f32 %v4594_v63 }
0x1546   : > { %6426 = vmatpush3.bf16.msra.mxu0 %v6702_v13 }
0x1547   : > { %v4595_v45 = vadd.f32 1e-12, %v4590_v48  ;;  %v4592_v19 = vadd.f32 1e-12, %v4587_v60  ;;  %v4874_v60 = vlaneseq }
0x1548   : > { %v4579_v30 = vpop.xlane.xlu1 %4578  ;;  %v3624_v32 = vpop.permute.xlu0 %3623 }
0x1549   : > { %6775 = vrsqrt.f32 %v4595_v45  ;;  %v4588_v11 = vmul.f32 0.03125, %v4579_v30  ;;  %v3626_v34 = vmul.f32 %v8495_v44, %v3624_v32  ;;  %v4875_v45 = vshrl.u32 %v4874_v60, 7 }
0x154a   : > { %6777 = vrsqrt.f32 %v4592_v19 }
0x154b   : > { %v4593_v17 = vadd.f32 1e-12, %v4588_v11  ;;  %3628 = vrot.lane.b32.xlu1 %v3626_v34, %s7302_s5 }
0x154c   : > { %v4573_v42 = vpop.xlane.xlu1 %4572 }
0x154d   : > { %6779 = vrsqrt.f32 %v4593_v17  ;;  %v4586_v61 = vmul.f32 0.03125, %v4573_v42 }
0x154f   : > { %v4591_v50 = vadd.f32 1e-12, %v4586_v61 }
0x1551   : > { %6781 = vrsqrt.f32 %v4591_v50 }
0x1552   : > { %v6774_v4 = vpop.eup %6773 }
0x1553   : > { %v4604_v55 = vmul.f32 %v6774_v4, %v8479_v3 }
0x1556   : > { %v6776_v37 = vpop.eup %6775 }
0x1557   : > { %v4605_v56 = vmul.f32 %v6776_v37, %v4565_v35  ;;  %v6778_v38 = vpop.eup %6777  ;;  %v6692_v35 = vld [vmem:[%s1395_s17] sm:$0xff]  }
0x1558   : > { %v4602_v16 = vmul.f32 %v6778_v38, %v8483_v14 }
0x1559   : > { %6375 = vmatpush3.msra.mxu1 %v4605_v56 }
0x155a   : > { %v6780_v62 = vpop.eup %6779  ;;  %6376 = vmatprep.subr.mxu1 %v7299_v28 }
0x155b   : > { %6377 = vmatpush3.msra.mxu1 %v4604_v55  ;;  %v4603_v15 = vmul.f32 %v6780_v62, %v4563_v0 }
0x155c   : > { %6378 = vmatprep.subr.mxu1 %v7299_v28 }
0x155d   : > { %6379 = vmatpush3.msra.mxu1 %v4603_v15 }
0x155e   : > { %v6782_v22 = vpop.eup %6781  ;;  %6380 = vmatprep.subr.mxu1 %v7299_v28 }
0x155f   : > { %6381 = vmatpush3.msra.mxu1 %v4602_v16  ;;  %v4601_v23 = vmul.f32 %v6782_v22, %v4561_v10 }
0x1560   : > { %6382 = vmatprep.subr.mxu1 %v7299_v28 }
0x1561   : > { %6383 = vmatpush3.msra.mxu1 %v4601_v23 }
0x1562   : > { %6385 = vmatmul.mubr.msk.f32.vlgmr.msra.gmra.mxu1 %vm3977_vm4, %v4606_v21  ;;  %6387 = vmatprep.subr.bf16.mxu1 %v7299_v28 }
0x1563   : > { %6388 = vmatpush3.bf16.msra.mxu1 %v6689_v31  ;;  %6391 = vmatprep.mubr.msk.bf16.mxu1 %vm7300_vm0, %v7299_v28 }
0x1564   : > { %6389 = vmatprep.subr.bf16.mxu1 %v7299_v28 }
0x1567   : > { %6390 = vmatpush3.bf16.msra.mxu1 %v6690_v52 }
0x1568   : > { %6395 = vmatprep.subr.bf16.mxu1 %v7299_v28 }
0x15bd   : > { %v3629_v3 = vpop.permute.xlu1 %3628 }
0x15be   : > { %v3631_v41 = vadd.f32 %v3629_v3, %v3621_v18 }
0x15c0   : > { %6783 = vtanh.f32 %v3631_v41 }
0x15cd   : > { %v6784_v1 = vpop.eup %6783 }
0x15ce   : > { %3634 = vrot.lane.b32.xlu1 %v6784_v1, %s7301_s26  ;;  %s1404_s26 = scalar_lea.vmem [#allocation18], %s8323_s16  ;;  %s8655_s16 = sld [smem:[#allocation42_spill]] }
0x15cf   : > { %v6693_v46 = vld [vmem:[%s1404_s26 + $0x8] sm:$0xff]   ;;  %v6694_v7 = vld [vmem:[%s1404_s26] sm:$0xff]  }
0x15d4   : > { %s1663_s2 = scalar_lea.vmem %s8655_s16, %s7807_s30 }
0x15d5   : > { %v5714_v4 = vld [vmem:[%s1663_s2] ss:$0 sm:$0xff] }
0x1622   : > { %v4676_v43 = vpop.f32.mrf.mxu1 }
0x1623   : > { %v4680_v58 = vpack.c.bf16 %v4676_v43, %v4676_v43 }
0x1624   : > { %v6386_v14 = vpop.f32.mrf.mxu1 }
0x1625   : > { %6392 = vmatmul.mubr.msk.bf16.vlgmr.msra.gmra.mxu1 %vm3324_vm2, %v4680_v58 }
0x1626   : > { %6396 = vmatpush3.bf16.msra.mxu1 %v6691_v5  ;;  %6399 = vmatprep.mubr.msk.bf16.mxu1 %vm7300_vm0, %v7299_v28 }
0x1627   : > { %6397 = vmatprep.subr.bf16.mxu1 %v7299_v28 }
0x162a   : > { %6398 = vmatpush3.bf16.msra.mxu1 %v6692_v35 }
0x162b   : > { %6403 = vmatprep.subr.bf16.mxu1 %v7299_v28 }
0x1640   : > { %v3635_v8 = vpop.permute.xlu1 %3634 }
0x1641   : > { %v3637_v33 = vmul.f32 %v8495_v44, %v3635_v8  ;;  %v4876_v44 = vsub.s32 0, %v4875_v45 }
0x1643   : > { %v4748_v51 = vpack.c.bf16 %v3637_v33, %v3637_v33 }
0x1645   : > { %v4754_v53 = vshrl.u32 %v4748_v51, 16 }
0x1647   : > { %v4756_v24 = vrot.slane %v4754_v53, 1 }
0x1649   : > { %4757 = vrot.lane.b32.xlu0 %v4756_v24, %s7302_s5  ;;  %s8654_s5 = sld [smem:[#allocation40_spill]] }
0x164f   : > { %s1655_s12 = scalar_lea.vmem %s8654_s5, %s7807_s30 }
0x1650   : > { %v5713_v32 = vld [vmem:[%s1655_s12] ss:$0 sm:$0xff] }
0x16bb   : > { %v4758_v0 = vpop.permute.xlu0 %4757 }
0x16bc   : > { %6400 = vmatmul.mubr.msk.bf16.vlgmr.msra.gmra.mxu1 %vm3324_vm2, %v4758_v0 }
0x16bd   : > { %6404 = vmatpush3.bf16.msra.mxu1 %v6693_v46  ;;  %6407 = vmatprep.mubr.msk.bf16.mxu1 %vm7300_vm0, %v7299_v28 }
0x16be   : > { %6405 = vmatprep.subr.bf16.mxu1 %v7299_v28 }
0x16c1   : > { %6406 = vmatpush3.bf16.msra.mxu1 %v6694_v7 }
0x16e5   : > { %v4741_v6 = vpop.f32.mrf.mxu1 }
0x16e6   : > { %v4742_v9 = vadd.f32 %v5703_v54, %v4741_v6 }
0x16e7   : > { %v6393_v36 = vpop.f32.mrf.mxu1 }
0x16e8   : > { %6785 = vtanh.f32 %v4742_v9 }
0x16e9   : > { %v4744_v2 = vpop.f32.mrf.mxu1 }
0x16eb   : > { %v6394_v10 = vpop.f32.mrf.mxu1 }
0x16f5   : > { %v6786_v47 = vpop.eup %6785 }
0x16f6   : > { %v4814_v20 = vpack.c.bf16 %v6786_v47, %v6786_v47 }
0x16f8   : > { %6408 = vmatmul.mubr.msk.bf16.vlgmr.msra.gmra.mxu1 %vm3324_vm2, %v4814_v20 }
0x177c   : > { %v4808_v63 = vpop.f32.mrf.mxu1 }
0x177d   : > { %v4877_v19 = vrot.slane %v4808_v63, %v4876_v44 }
0x177e   : > { %v6401_v39 = vpop.f32.mrf.mxu1 }
0x1780   : > { %v4811_v27 = vpop.f32.mrf.mxu1 }
0x1782   : > { %v6402_v48 = vpop.f32.mrf.mxu1 }
0x17b8   : > { %v4868_v30 = vpop.f32.mrf.mxu1 }
0x17b9   : > { %v4878_v11 = vadd.f32 %v4877_v19, %v4868_v30 }
0x17ba   : > { %v6409_v34 = vpop.f32.mrf.mxu1 }
0x17bb   : > { %v4886_v17 = vadd.f32 %v5713_v32, %v4878_v11 }
0x17bc   : > { %v4871_v42 = vpop.f32.mrf.mxu1 }
0x17bd   : > { %v4887_v28 = vmax.f32 %v4886_v17, 0.0 }
0x17be   : > { %v6410_v61 = vpop.f32.mrf.mxu1 }
0x17bf   : > { %v4888_v50 = vpack.c.bf16 %v4887_v28, %v4887_v28 }
0x17c1   : > { %6428 = vmatmul.mubr.bf16.vlgmr.msra.gmra.mxu0 %v4888_v50 }
0x1881   : > { %v4994_v37 = vpop.f32.mrf.mxu0 }
0x1882   : > { %v4995_v56 = vadd.f32 %v5714_v4, %v4994_v37 }
0x1883   : > { %v6429_v38 = vpop.f32.mrf.mxu0  ;;  %5003 = sbr.rel (%p8656_p12) target bundleno = 6281 (0x1889), region = 208 }
0x1885   : > { %v4997_v55 = vpop.f32.mrf.mxu0 }
0x1887   : > { %v6430_v62 = vpop.f32.mrf.mxu0 }
0x1888   : > { %5004 = vst [vmem:[%s7816_s15] sm:$0x1f] %v4995_v56 }
0x1889 PF: > { %p5724_p13 = scmp.ne.s32.totalorder %s7487_s0, 1 }
0x188b   : > { %5008 = sbr.rel (%p5724_p13) target bundleno = 6321 (0x18b1), region = 212 }
0x1890   : > { %v5725_v15 = vmul.f32 -1.442695, %v4995_v56 }
0x1892   : > { %6787 = vpow2.f32 %v5725_v15 }
0x189f   : > { %v6788_v16 = vpop.eup %6787 }
0x18a0   : > { %v5012_v22 = vadd.f32 1.0, %v6788_v16 }
0x18a2   : > { %6789 = vrcp.f32 %v5012_v22 }
0x18af   : > { %v6790_v23 = vpop.eup %6789 }
0x18b0   : > { %5015 = vst [vmem:[%s7816_s15] sm:$0x1f] %v6790_v23 }
0x18b1 PF: > { %s8657_s28 = sld [smem:[#allocation46_spill]] }
0x18b2   : > { %s8658_s22 = sld [smem:[#allocation44_spill]] }
0x18b3   : > { %s8659_s23 = sld [smem:[#allocation45_spill]] }
0x18b4   : > { %s8660_s26 = sld [smem:[#allocation47_spill]] }
0x18b7   : > { %p72_p9 = scmp.ge.s32.totalorder %s8657_s28, 4  }
0x18b9   :  { %74 = sbr.rel (!%p72_p9) target bundleno = 60 (0x3c), region = 407 }
0x18be   :  { %5035 = vsyncpa [#allocation3], 1 }
0x18bf   :  { %5037 = vsyncpa [#allocation3 + $0x1], 1 }
0x18c0   :  { %5038 = vsyncpa [#allocation5], 1 }

</bundles_post_ra>
